<compile_context>
chip_gen: v6e
topology: v6e:2x2x1
jax: 0.10.0
libtpu: 0.0.40
codegen_flags: <defaults>
</compile_context>

<pallas_src>
import functools
import math

import jax
import jax.numpy as jnp
from jax import lax
from jax.experimental import pallas as pl
from jax.experimental.pallas import tpu as pltpu


LOSS_PAD_ROWS = 8  # broadcast-loss rows appended below the logits in the output slab


# ------------------------------ slab layouts --------------------------------

def _layout(entries):
    """entries: [(name, width)] -> ({name: (offset, width)}, total_width)."""
    table, off = {}, 0
    for name, w in entries:
        table[name] = (off, w)
        off += w
    return table, off


def make_layouts(D, FF, V):
    enc = _layout([
        ("m_wqkv", 3 * D), ("m_wo", D), ("m_ff_w1", FF), ("m_ff_w2", D),
    ])
    dec = _layout([
        ("ds_wqkv", 3 * D), ("ds_wo", D),
        ("dc_wq", D), ("dc_wkv", 2 * D), ("dc_wo", D),
        ("d_ff_w1", FF), ("d_ff_w2", D),
        ("lm_w", V),                     # tied lm_head = tok_emb.T, packed last
    ])
    bia = _layout([
        ("emb_b", D),
        ("m_ln1_g", D), ("m_ln1_b", D), ("m_ln2_g", D), ("m_ln2_b", D),
        ("m_bqkv", 3 * D), ("m_bo", D), ("m_ff_b1", FF), ("m_ff_b2", D),
        ("d_ln1_g", D), ("d_ln2_g", D), ("d_ln3_g", D), ("d_lnf_g", D),
        ("ds_bqkv", 3 * D), ("ds_bo", D),
        ("dc_bq", D), ("dc_bkv", 2 * D), ("dc_bo", D),
        ("d_ff_b1", FF), ("d_ff_b2", D),
    ])
    return enc, dec, bia


# ------------------------------ fused kernel --------------------------------

def _fused_forward_kernel(ids_ref, x_ref, embw_ref, wenc_ref, wdec_ref, b_ref,
                          tokemb_ref, out_ref, xd_scr,
                          *, H, D, FF, V, L, ENC, DEC, BIA):
    f32 = jnp.float32
    dh = D // H

    # ---- point-of-use slab readers (static, 128-aligned lane slices) ----
    def wE(name):
        off, w = ENC[name]
        return wenc_ref[:, off:off + w]

    def wD(name):
        off, w = DEC[name]
        return wdec_ref[:, off:off + w]

    def b(name):
        off, w = BIA[name]
        return b_ref[:, off:off + w]

    def layernorm(x, g, bb, eps=1e-5):
        mu = jnp.mean(x, axis=-1, keepdims=True)
        xc = x - mu
        var = jnp.mean(xc * xc, axis=-1, keepdims=True)
        return xc * lax.rsqrt(var + eps) * g + bb

    def rmsnorm(x, g, eps=1e-6):
        var = jnp.mean(x * x, axis=-1, keepdims=True)
        return x * lax.rsqrt(var + eps) * g

    def attention(q, k, v, wo, bo, *, causal, scale):
        Lq, Lk = q.shape[0], k.shape[0]
        if causal:  # mask built ONCE per attention call (hoisted out of head loop)
            qi = lax.broadcasted_iota(jnp.int32, (Lq, Lk), 0)
            ki = lax.broadcasted_iota(jnp.int32, (Lq, Lk), 1)
            neg = jnp.where(ki <= qi, 0.0, -1e30).astype(f32)
        heads = []
        for h in range(H):                       # dh == 128 -> lane-aligned views
            sl = slice(h * dh, (h + 1) * dh)
            s = lax.dot_general(q[:, sl], k[:, sl], (((1,), (1,)), ((), ())),
                                preferred_element_type=f32)
            if scale != 1.0:
                s = s * scale
            if causal:
                s = s + neg
            m = jnp.max(s, axis=-1, keepdims=True)
            e = jnp.exp(s - m)
            p = e * pl.reciprocal(jnp.sum(e, axis=-1, keepdims=True), approx=True)
            heads.append(jnp.dot(p, v[:, sl], preferred_element_type=f32))
        o = heads[0] if H == 1 else jnp.concatenate(heads, axis=-1)   # (Lq, D)
        return jnp.dot(o, wo, preferred_element_type=f32) + bo        # ONE out-proj

    # ---- embedder(dataset_holder_dict): per-cell feature -> D ----
    # TODO(synk): the real embedder tokenizes cell strings; synthetic numeric
    # cell features + linear projection are used instead.
    tok = jnp.dot(x_ref[...], embw_ref[...], preferred_element_type=f32) + b("emb_b")

    # ---- ConTabulizer block: model(x) ----
    # TODO(synk): the real ConTabulizer architecture is injected at runtime and
    # not given in the source; a pre-LN transformer encoder block stands in.
    h1 = layernorm(tok, b("m_ln1_g"), b("m_ln1_b"))
    qkv = jnp.dot(h1, wE("m_wqkv"), preferred_element_type=f32) + b("m_bqkv")
    xe = tok + attention(qkv[:, 0:D], qkv[:, D:2 * D], qkv[:, 2 * D:3 * D],
                         wE("m_wo"), b("m_bo"),
                         causal=False, scale=1.0 / math.sqrt(dh))
    h2 = layernorm(xe, b("m_ln2_g"), b("m_ln2_b"))
    ff = jax.nn.gelu(jnp.dot(h2, wE("m_ff_w1"), preferred_element_type=f32)
                     + b("m_ff_b1"))
    enc = xe + jnp.dot(ff, wE("m_ff_w2"), preferred_element_type=f32) + b("m_ff_b2")

    # ---- decoder token embedding: L scalar-indexed row reads (ids in SMEM) ----
    for i in range(L):
        idx = ids_ref[0, i]
        xd_scr[pl.ds(i, 1), :] = tokemb_ref[pl.ds(idx, 1), :]
    xd = xd_scr[...]                                                   # (L, D)

    # ---- T5-style decoder consuming enc as encoder_outputs ----
    # TODO(synk): pretrained t5-base weights / multi-layer stack not replicated;
    # single-layer T5-style decoder (RMSNorm, no attn scaling, ReLU FFN, tied head).
    hd = rmsnorm(xd, b("d_ln1_g"))
    qkv = jnp.dot(hd, wD("ds_wqkv"), preferred_element_type=f32) + b("ds_bqkv")
    xd = xd + attention(qkv[:, 0:D], qkv[:, D:2 * D], qkv[:, 2 * D:3 * D],
                        wD("ds_wo"), b("ds_bo"), causal=True, scale=1.0)
    hd = rmsnorm(xd, b("d_ln2_g"))
    qx = jnp.dot(hd, wD("dc_wq"), preferred_element_type=f32) + b("dc_bq")
    kv = jnp.dot(enc, wD("dc_wkv"), preferred_element_type=f32) + b("dc_bkv")
    xd = xd + attention(qx, kv[:, 0:D], kv[:, D:2 * D],
                        wD("dc_wo"), b("dc_bo"), causal=False, scale=1.0)
    hd = rmsnorm(xd, b("d_ln3_g"))
    ff = jnp.maximum(jnp.dot(hd, wD("d_ff_w1"), preferred_element_type=f32)
                     + b("d_ff_b1"), 0.0)
    xd = xd + jnp.dot(ff, wD("d_ff_w2"), preferred_element_type=f32) + b("d_ff_b2")
    xd = rmsnorm(xd, b("d_lnf_g"))

    # tied lm_head (no bias, like real T5); tok_emb.T packed into the dec slab.
    logits = jnp.dot(xd * (D ** -0.5), wD("lm_w"), preferred_element_type=f32)  # (L,V)

    # ---- cross-entropy, labels read as SMEM scalars ----
    # TODO(synk): HF T5 masks labels == -100 (padding); synthetic labels have
    # no padding so every position contributes, matching the wrapper.
    m = jnp.max(logits, axis=-1, keepdims=True)
    lse = jnp.log(jnp.sum(jnp.exp(logits - m), axis=-1, keepdims=True)) + m      # (L,1)
    lane = lax.broadcasted_iota(jnp.int32, (1, V), 1)
    tgt_rows = []
    for i in range(L):
        lab_i = ids_ref[1, i]
        row = logits[i:i + 1, :]
        tgt_rows.append(jnp.sum(jnp.where(lane == lab_i, row, 0.0),
                                axis=-1, keepdims=True))
    tgt = jnp.concatenate(tgt_rows, axis=0)                                       # (L,1)
    loss = jnp.sum(lse - tgt, axis=0, keepdims=True) * (1.0 / L)                  # (1,1)

    # Single lane-dense output slab: rows [0,L) = logits, rows [L,L+8) = loss.
    out_ref[0:L, :] = logits.astype(out_ref.dtype)
    out_ref[L:L + LOSS_PAD_ROWS, :] = jnp.broadcast_to(
        loss, (LOSS_PAD_ROWS, V)).astype(out_ref.dtype)


# ------------------------------ model wrapper --------------------------------

def forward(packed, x_feat, labels, *, H):
    R, C, F = x_feat.shape
    L = int(labels.shape[0])
    D = packed["emb_w"].shape[1]
    FF = D
    V = packed["tok_emb"].shape[0]
    (ENC, _), (DEC, _), (BIA, _) = make_layouts(D, FF, V)

    x2d = x_feat.reshape(R * C, F)
    lab = labels.astype(jnp.int32)
    # T5 shift_right with decoder_start_token_id = 0 (tiny host-side op; all
    # downstream work is one pallas_call).
    dec_in = jnp.concatenate([jnp.zeros((1,), jnp.int32), lab[:-1]], axis=0)
    ids = jnp.stack([dec_in, lab], axis=0)              # (2, L) int32 -> SMEM

    idx2 = lambda i, ids: (0, 0)
    grid_spec = pltpu.PrefetchScalarGridSpec(
        num_scalar_prefetch=1,
        grid=(1,),
        in_specs=[
            pl.BlockSpec(x2d.shape, idx2),
            pl.BlockSpec(packed["emb_w"].shape, idx2),
            pl.BlockSpec(packed["w_enc"].shape, idx2),
            pl.BlockSpec(packed["w_dec"].shape, idx2),
            pl.BlockSpec(packed["b_all"].shape, idx2),
            pl.BlockSpec(packed["tok_emb"].shape, idx2),
        ],
        out_specs=pl.BlockSpec((L + LOSS_PAD_ROWS, V), idx2),
        scratch_shapes=[pltpu.VMEM((L, D), jnp.float32)],   # decoder-embed gather
    )
    kern = functools.partial(_fused_forward_kernel, H=H, D=D, FF=FF, V=V, L=L,
                             ENC=ENC, DEC=DEC, BIA=BIA)
    out = pl.pallas_call(
        kern,
        out_shape=jax.ShapeDtypeStruct((L + LOSS_PAD_ROWS, V), jnp.float32),
        grid_spec=grid_spec,
        compiler_params=pltpu.CompilerParams(
            dimension_semantics=("arbitrary",)),
    )(ids, x2d, packed["emb_w"], packed["w_enc"], packed["w_dec"],
      packed["b_all"], packed["tok_emb"])
    return out[L, 0], out[:L]


# ------------------------------ parameter init -------------------------------

def init_params(key, F, D, FF, V):
    assert FF == D, "weight slabs assume FF == D so every weight has leading dim D"
    assert D % 128 == 0 and V % 128 == 0 and F % 8 == 0
    (ENC, enc_w), (DEC, dec_w), (BIA, _) = make_layouts(D, FF, V)

    k_enc, k_dec, k_emb, k_tok = jax.random.split(key, 4)
    tok_emb = 0.05 * jax.random.normal(k_tok, (V, D), jnp.float32)
    emb_w = 0.05 * jax.random.normal(k_emb, (F, D), jnp.float32)
    w_enc = 0.05 * jax.random.normal(k_enc, (D, enc_w), jnp.float32)
    # Decoder slab: random weights, then the tied lm_head (tok_emb.T) packed as
    # the final V lanes (transposed once at init; re-pack if tok_emb changes).
    w_dec = jnp.concatenate(
        [0.05 * jax.random.normal(k_dec, (D, dec_w - V), jnp.float32), tok_emb.T],
        axis=1)
    # Bias/norm slab: gains ("*_g") init to 1, biases/offsets to 0.
    pieces = [jnp.ones((1, w), jnp.float32) if name.endswith("_g")
              else jnp.zeros((1, w), jnp.float32)
              for name, (off, w) in sorted(BIA.items(), key=lambda kv: kv[1][0])]
    b_all = jnp.concatenate(pieces, axis=1)

    return {"emb_w": emb_w, "w_enc": w_enc, "w_dec": w_dec,
            "b_all": b_all, "tok_emb": tok_emb}


# ---------------------------------- main -------------------------------------

if __name__ == "__main__":
    R, C, F = 4, 4, 128        # table rows, fields, per-cell feature dim (lane-dense)
    D, H, FF = 256, 2, 256     # hidden, heads (dh = 128 -> aligned head slices), FFN
    L, V = 8, 128              # label length, vocab size

    root = jax.random.PRNGKey(0)
    k_param, k_feat, k_lab = jax.random.split(root, 3)

    params = init_params(k_param, F, D, FF, V)
    x_feat = jax.random.normal(k_feat, (R, C, F), jnp.float32)
    # TODO(synk): HF tokenizer on label strings has no Pallas equivalent;
    # deterministic synthetic token ids are used instead.
    labels = jax.random.randint(k_lab, (L,), 1, V, dtype=jnp.int32)

    fwd = jax.jit(functools.partial(forward, H=H))
    loss, logits = fwd(params, x_feat, labels)
    jax.block_until_ready((loss, logits))

    assert logits.shape == (L, V)
    assert bool(jnp.isfinite(loss))
    print("KERNEL_OK")
</pallas_src>

<mosaic_0001>
module attributes {stable_mosaic.version = 11 : i64} {
  func.func @_fused_forward_kernel(%arg0: i32, %arg1: memref<2x8xi32, #tpu.memory_space<smem>>, %arg2: memref<16x128xf32, #tpu.memory_space<vmem>>, %arg3: memref<128x256xf32, #tpu.memory_space<vmem>>, %arg4: memref<256x1536xf32, #tpu.memory_space<vmem>>, %arg5: memref<256x2688xf32, #tpu.memory_space<vmem>>, %arg6: memref<1x6400xf32, #tpu.memory_space<vmem>>, %arg7: memref<128x256xf32, #tpu.memory_space<vmem>>, %arg8: memref<16x128xf32, #tpu.memory_space<vmem>>, %arg9: memref<8x256xf32, #tpu.memory_space<vmem>>) attributes {dimension_semantics = [#tpu.dimension_semantics<arbitrary>], iteration_bounds = array<i64: 1>, scalar_prefetch = 1 : i64, scratch_operands = 1 : i64, tpu.core_type = #tpu.core_type<tc>, window_params = [{pipeline_mode = #tpu.pipeline_mode<synchronous>, transform_indices = @transform_0, window_bounds = array<i64: 16, 128>}, {pipeline_mode = #tpu.pipeline_mode<synchronous>, transform_indices = @transform_1, window_bounds = array<i64: 128, 256>}, {pipeline_mode = #tpu.pipeline_mode<synchronous>, transform_indices = @transform_2, window_bounds = array<i64: 256, 1536>}, {pipeline_mode = #tpu.pipeline_mode<synchronous>, transform_indices = @transform_3, window_bounds = array<i64: 256, 2688>}, {pipeline_mode = #tpu.pipeline_mode<synchronous>, transform_indices = @transform_4, window_bounds = array<i64: 1, 6400>}, {pipeline_mode = #tpu.pipeline_mode<synchronous>, transform_indices = @transform_5, window_bounds = array<i64: 128, 256>}, {pipeline_mode = #tpu.pipeline_mode<synchronous>, transform_indices = @transform_6, window_bounds = array<i64: 16, 128>}]} {
    %c0 = arith.constant 0 : index
    %c0_0 = arith.constant 0 : index
    %0 = vector.load %arg2[%c0, %c0_0] : memref<16x128xf32, #tpu.memory_space<vmem>>, vector<16x128xf32>
    %c0_1 = arith.constant 0 : index
    %c0_2 = arith.constant 0 : index
    %1 = vector.load %arg3[%c0_1, %c0_2] : memref<128x256xf32, #tpu.memory_space<vmem>>, vector<128x256xf32>
    %cst = arith.constant dense<0.000000e+00> : vector<16x256xf32>
    %2 = tpu.matmul %0, %1, %cst {dimension_numbers = #tpu.dot_dimension_numbers<[1], [0], [0], [1], [0, 0, 1, 1], [], []>} : vector<16x128xf32>, vector<128x256xf32>, vector<16x256xf32> -> vector<16x256xf32>
    %c0_3 = arith.constant 0 : index
    %c0_4 = arith.constant 0 : index
    %3 = vector.load %arg6[%c0_3, %c0_4] : memref<1x6400xf32, #tpu.memory_space<vmem>>, vector<1x256xf32>
    %4 = vector.broadcast %3 : vector<1x256xf32> to vector<16x256xf32>
    %5 = arith.addf %2, %4 : vector<16x256xf32>
    %c0_5 = arith.constant 0 : index
    %c256 = arith.constant 256 : index
    %6 = vector.load %arg6[%c0_5, %c256] : memref<1x6400xf32, #tpu.memory_space<vmem>>, vector<1x256xf32>
    %c0_6 = arith.constant 0 : index
    %c512 = arith.constant 512 : index
    %7 = vector.load %arg6[%c0_6, %c512] : memref<1x6400xf32, #tpu.memory_space<vmem>>, vector<1x256xf32>
    %cst_7 = arith.constant dense<0.000000e+00> : vector<16xf32>
    %8 = vector.multi_reduction <add>, %5, %cst_7 [1] : vector<16x256xf32> to vector<16xf32>
    %9 = vector.shape_cast %8 : vector<16xf32> to vector<16x1xf32>
    %cst_8 = arith.constant 2.560000e+02 : f32
    %10 = vector.broadcast %cst_8 : f32 to vector<16x1xf32>
    %11 = arith.divf %9, %10 : vector<16x1xf32>
    %12 = vector.broadcast %11 : vector<16x1xf32> to vector<16x256xf32>
    %13 = arith.subf %5, %12 : vector<16x256xf32>
    %14 = arith.mulf %13, %13 : vector<16x256xf32>
    %cst_9 = arith.constant dense<0.000000e+00> : vector<16xf32>
    %15 = vector.multi_reduction <add>, %14, %cst_9 [1] : vector<16x256xf32> to vector<16xf32>
    %16 = vector.shape_cast %15 : vector<16xf32> to vector<16x1xf32>
    %cst_10 = arith.constant 2.560000e+02 : f32
    %17 = vector.broadcast %cst_10 : f32 to vector<16x1xf32>
    %18 = arith.divf %16, %17 : vector<16x1xf32>
    %cst_11 = arith.constant 9.99999974E-6 : f32
    %19 = vector.broadcast %cst_11 : f32 to vector<16x1xf32>
    %20 = arith.addf %18, %19 : vector<16x1xf32>
    %21 = math.rsqrt %20 : vector<16x1xf32>
    %22 = vector.broadcast %21 : vector<16x1xf32> to vector<16x256xf32>
    %23 = arith.mulf %13, %22 : vector<16x256xf32>
    %24 = vector.broadcast %6 : vector<1x256xf32> to vector<16x256xf32>
    %25 = arith.mulf %23, %24 : vector<16x256xf32>
    %26 = vector.broadcast %7 : vector<1x256xf32> to vector<16x256xf32>
    %27 = arith.addf %25, %26 : vector<16x256xf32>
    %c0_12 = arith.constant 0 : index
    %c0_13 = arith.constant 0 : index
    %28 = vector.load %arg4[%c0_12, %c0_13] : memref<256x1536xf32, #tpu.memory_space<vmem>>, vector<256x768xf32>
    %cst_14 = arith.constant dense<0.000000e+00> : vector<16x768xf32>
    %29 = tpu.matmul %27, %28, %cst_14 {dimension_numbers = #tpu.dot_dimension_numbers<[1], [0], [0], [1], [0, 0, 1, 1], [], []>} : vector<16x256xf32>, vector<256x768xf32>, vector<16x768xf32> -> vector<16x768xf32>
    %c0_15 = arith.constant 0 : index
    %c1280 = arith.constant 1280 : index
    %30 = vector.load %arg6[%c0_15, %c1280] : memref<1x6400xf32, #tpu.memory_space<vmem>>, vector<1x768xf32>
    %31 = vector.broadcast %30 : vector<1x768xf32> to vector<16x768xf32>
    %32 = arith.addf %29, %31 : vector<16x768xf32>
    %33 = vector.extract_strided_slice %32 {offsets = [0, 0], sizes = [16, 256], strides = [1, 1]} : vector<16x768xf32> to vector<16x256xf32>
    %34 = vector.extract_strided_slice %32 {offsets = [0, 256], sizes = [16, 256], strides = [1, 1]} : vector<16x768xf32> to vector<16x256xf32>
    %35 = vector.extract_strided_slice %32 {offsets = [0, 512], sizes = [16, 256], strides = [1, 1]} : vector<16x768xf32> to vector<16x256xf32>
    %c0_16 = arith.constant 0 : index
    %c768 = arith.constant 768 : index
    %36 = vector.load %arg4[%c0_16, %c768] : memref<256x1536xf32, #tpu.memory_space<vmem>>, vector<256x256xf32>
    %c0_17 = arith.constant 0 : index
    %c2048 = arith.constant 2048 : index
    %37 = vector.load %arg6[%c0_17, %c2048] : memref<1x6400xf32, #tpu.memory_space<vmem>>, vector<1x256xf32>
    %38 = vector.extract_strided_slice %33 {offsets = [0, 0], sizes = [16, 128], strides = [1, 1]} : vector<16x256xf32> to vector<16x128xf32>
    %39 = vector.extract_strided_slice %34 {offsets = [0, 0], sizes = [16, 128], strides = [1, 1]} : vector<16x256xf32> to vector<16x128xf32>
    %cst_18 = arith.constant dense<0.000000e+00> : vector<16x16xf32>
    %40 = tpu.matmul %38, %39, %cst_18 {dimension_numbers = #tpu.dot_dimension_numbers<[1], [1], [0], [0], [0, 0, 1, 0], [], []>} : vector<16x128xf32>, vector<16x128xf32>, vector<16x16xf32> -> vector<16x16xf32>
    %cst_19 = arith.constant 0.0883883461 : f32
    %41 = vector.broadcast %cst_19 : f32 to vector<16x16xf32>
    %42 = arith.mulf %40, %41 : vector<16x16xf32>
    %cst_20 = arith.constant dense<0xFF800000> : vector<16xf32>
    %43 = vector.multi_reduction <maximumf>, %42, %cst_20 [1] : vector<16x16xf32> to vector<16xf32>
    %44 = vector.shape_cast %43 : vector<16xf32> to vector<16x1xf32>
    %45 = vector.broadcast %44 : vector<16x1xf32> to vector<16x16xf32>
    %46 = arith.subf %42, %45 : vector<16x16xf32>
    %47 = math.exp %46 : vector<16x16xf32>
    %cst_21 = arith.constant dense<0.000000e+00> : vector<16xf32>
    %48 = vector.multi_reduction <add>, %47, %cst_21 [1] : vector<16x16xf32> to vector<16xf32>
    %49 = vector.shape_cast %48 : vector<16xf32> to vector<16x1xf32>
    %50 = tpu.reciprocal %49 {approx = true} : vector<16x1xf32> -> vector<16x1xf32>
    %51 = vector.broadcast %50 : vector<16x1xf32> to vector<16x16xf32>
    %52 = arith.mulf %47, %51 : vector<16x16xf32>
    %53 = vector.extract_strided_slice %35 {offsets = [0, 0], sizes = [16, 128], strides = [1, 1]} : vector<16x256xf32> to vector<16x128xf32>
    %cst_22 = arith.constant dense<0.000000e+00> : vector<16x128xf32>
    %54 = tpu.matmul %52, %53, %cst_22 {dimension_numbers = #tpu.dot_dimension_numbers<[1], [0], [0], [1], [0, 0, 1, 1], [], []>} : vector<16x16xf32>, vector<16x128xf32>, vector<16x128xf32> -> vector<16x128xf32>
    %55 = vector.extract_strided_slice %33 {offsets = [0, 128], sizes = [16, 128], strides = [1, 1]} : vector<16x256xf32> to vector<16x128xf32>
    %56 = vector.extract_strided_slice %34 {offsets = [0, 128], sizes = [16, 128], strides = [1, 1]} : vector<16x256xf32> to vector<16x128xf32>
    %cst_23 = arith.constant dense<0.000000e+00> : vector<16x16xf32>
    %57 = tpu.matmul %55, %56, %cst_23 {dimension_numbers = #tpu.dot_dimension_numbers<[1], [1], [0], [0], [0, 0, 1, 0], [], []>} : vector<16x128xf32>, vector<16x128xf32>, vector<16x16xf32> -> vector<16x16xf32>
    %cst_24 = arith.constant 0.0883883461 : f32
    %58 = vector.broadcast %cst_24 : f32 to vector<16x16xf32>
    %59 = arith.mulf %57, %58 : vector<16x16xf32>
    %cst_25 = arith.constant dense<0xFF800000> : vector<16xf32>
    %60 = vector.multi_reduction <maximumf>, %59, %cst_25 [1] : vector<16x16xf32> to vector<16xf32>
    %61 = vector.shape_cast %60 : vector<16xf32> to vector<16x1xf32>
    %62 = vector.broadcast %61 : vector<16x1xf32> to vector<16x16xf32>
    %63 = arith.subf %59, %62 : vector<16x16xf32>
    %64 = math.exp %63 : vector<16x16xf32>
    %cst_26 = arith.constant dense<0.000000e+00> : vector<16xf32>
    %65 = vector.multi_reduction <add>, %64, %cst_26 [1] : vector<16x16xf32> to vector<16xf32>
    %66 = vector.shape_cast %65 : vector<16xf32> to vector<16x1xf32>
    %67 = tpu.reciprocal %66 {approx = true} : vector<16x1xf32> -> vector<16x1xf32>
    %68 = vector.broadcast %67 : vector<16x1xf32> to vector<16x16xf32>
    %69 = arith.mulf %64, %68 : vector<16x16xf32>
    %70 = vector.extract_strided_slice %35 {offsets = [0, 128], sizes = [16, 128], strides = [1, 1]} : vector<16x256xf32> to vector<16x128xf32>
    %cst_27 = arith.constant dense<0.000000e+00> : vector<16x128xf32>
    %71 = tpu.matmul %69, %70, %cst_27 {dimension_numbers = #tpu.dot_dimension_numbers<[1], [0], [0], [1], [0, 0, 1, 1], [], []>} : vector<16x16xf32>, vector<16x128xf32>, vector<16x128xf32> -> vector<16x128xf32>
    %72 = tpu.concatenate %54, %71 in 1 : vector<16x128xf32>, vector<16x128xf32> -> vector<16x256xf32>
    %cst_28 = arith.constant dense<0.000000e+00> : vector<16x256xf32>
    %73 = tpu.matmul %72, %36, %cst_28 {dimension_numbers = #tpu.dot_dimension_numbers<[1], [0], [0], [1], [0, 0, 1, 1], [], []>} : vector<16x256xf32>, vector<256x256xf32>, vector<16x256xf32> -> vector<16x256xf32>
    %74 = vector.broadcast %37 : vector<1x256xf32> to vector<16x256xf32>
    %75 = arith.addf %73, %74 : vector<16x256xf32>
    %76 = arith.addf %5, %75 : vector<16x256xf32>
    %c0_29 = arith.constant 0 : index
    %c768_30 = arith.constant 768 : index
    %77 = vector.load %arg6[%c0_29, %c768_30] : memref<1x6400xf32, #tpu.memory_space<vmem>>, vector<1x256xf32>
    %c0_31 = arith.constant 0 : index
    %c1024 = arith.constant 1024 : index
    %78 = vector.load %arg6[%c0_31, %c1024] : memref<1x6400xf32, #tpu.memory_space<vmem>>, vector<1x256xf32>
    %cst_32 = arith.constant dense<0.000000e+00> : vector<16xf32>
    %79 = vector.multi_reduction <add>, %76, %cst_32 [1] : vector<16x256xf32> to vector<16xf32>
    %80 = vector.shape_cast %79 : vector<16xf32> to vector<16x1xf32>
    %cst_33 = arith.constant 2.560000e+02 : f32
    %81 = vector.broadcast %cst_33 : f32 to vector<16x1xf32>
    %82 = arith.divf %80, %81 : vector<16x1xf32>
    %83 = vector.broadcast %82 : vector<16x1xf32> to vector<16x256xf32>
    %84 = arith.subf %76, %83 : vector<16x256xf32>
    %85 = arith.mulf %84, %84 : vector<16x256xf32>
    %cst_34 = arith.constant dense<0.000000e+00> : vector<16xf32>
    %86 = vector.multi_reduction <add>, %85, %cst_34 [1] : vector<16x256xf32> to vector<16xf32>
    %87 = vector.shape_cast %86 : vector<16xf32> to vector<16x1xf32>
    %cst_35 = arith.constant 2.560000e+02 : f32
    %88 = vector.broadcast %cst_35 : f32 to vector<16x1xf32>
    %89 = arith.divf %87, %88 : vector<16x1xf32>
    %cst_36 = arith.constant 9.99999974E-6 : f32
    %90 = vector.broadcast %cst_36 : f32 to vector<16x1xf32>
    %91 = arith.addf %89, %90 : vector<16x1xf32>
    %92 = math.rsqrt %91 : vector<16x1xf32>
    %93 = vector.broadcast %92 : vector<16x1xf32> to vector<16x256xf32>
    %94 = arith.mulf %84, %93 : vector<16x256xf32>
    %95 = vector.broadcast %77 : vector<1x256xf32> to vector<16x256xf32>
    %96 = arith.mulf %94, %95 : vector<16x256xf32>
    %97 = vector.broadcast %78 : vector<1x256xf32> to vector<16x256xf32>
    %98 = arith.addf %96, %97 : vector<16x256xf32>
    %c0_37 = arith.constant 0 : index
    %c1024_38 = arith.constant 1024 : index
    %99 = vector.load %arg4[%c0_37, %c1024_38] : memref<256x1536xf32, #tpu.memory_space<vmem>>, vector<256x256xf32>
    %cst_39 = arith.constant dense<0.000000e+00> : vector<16x256xf32>
    %100 = tpu.matmul %98, %99, %cst_39 {dimension_numbers = #tpu.dot_dimension_numbers<[1], [0], [0], [1], [0, 0, 1, 1], [], []>} : vector<16x256xf32>, vector<256x256xf32>, vector<16x256xf32> -> vector<16x256xf32>
    %c0_40 = arith.constant 0 : index
    %c2304 = arith.constant 2304 : index
    %101 = vector.load %arg6[%c0_40, %c2304] : memref<1x6400xf32, #tpu.memory_space<vmem>>, vector<1x256xf32>
    %102 = vector.broadcast %101 : vector<1x256xf32> to vector<16x256xf32>
    %103 = arith.addf %100, %102 : vector<16x256xf32>
    %104 = arith.mulf %103, %103 : vector<16x256xf32>
    %105 = arith.mulf %103, %104 : vector<16x256xf32>
    %cst_41 = arith.constant 4.471500e-02 : f32
    %106 = vector.broadcast %cst_41 : f32 to vector<16x256xf32>
    %107 = arith.mulf %106, %105 : vector<16x256xf32>
    %108 = arith.addf %103, %107 : vector<16x256xf32>
    %cst_42 = arith.constant 0.797884583 : f32
    %109 = vector.broadcast %cst_42 : f32 to vector<16x256xf32>
    %110 = arith.mulf %109, %108 : vector<16x256xf32>
    %111 = math.tanh %110 : vector<16x256xf32>
    %cst_43 = arith.constant 1.000000e+00 : f32
    %112 = vector.broadcast %cst_43 : f32 to vector<16x256xf32>
    %113 = arith.addf %112, %111 : vector<16x256xf32>
    %cst_44 = arith.constant 5.000000e-01 : f32
    %114 = vector.broadcast %cst_44 : f32 to vector<16x256xf32>
    %115 = arith.mulf %114, %113 : vector<16x256xf32>
    %116 = arith.mulf %103, %115 : vector<16x256xf32>
    %c0_45 = arith.constant 0 : index
    %c1280_46 = arith.constant 1280 : index
    %117 = vector.load %arg4[%c0_45, %c1280_46] : memref<256x1536xf32, #tpu.memory_space<vmem>>, vector<256x256xf32>
    %cst_47 = arith.constant dense<0.000000e+00> : vector<16x256xf32>
    %118 = tpu.matmul %116, %117, %cst_47 {dimension_numbers = #tpu.dot_dimension_numbers<[1], [0], [0], [1], [0, 0, 1, 1], [], []>} : vector<16x256xf32>, vector<256x256xf32>, vector<16x256xf32> -> vector<16x256xf32>
    %119 = arith.addf %76, %118 : vector<16x256xf32>
    %c0_48 = arith.constant 0 : index
    %c2560 = arith.constant 2560 : index
    %120 = vector.load %arg6[%c0_48, %c2560] : memref<1x6400xf32, #tpu.memory_space<vmem>>, vector<1x256xf32>
    %121 = vector.broadcast %120 : vector<1x256xf32> to vector<16x256xf32>
    %122 = arith.addf %119, %121 : vector<16x256xf32>
    %c0_49 = arith.constant 0 : index
    %c0_50 = arith.constant 0 : index
    %123 = memref.load %arg1[%c0_49, %c0_50] : memref<2x8xi32, #tpu.memory_space<smem>>
    %124 = arith.index_cast %123 : i32 to index
    %c0_51 = arith.constant 0 : index
    %125 = vector.load %arg7[%124, %c0_51] : memref<128x256xf32, #tpu.memory_space<vmem>>, vector<1x256xf32>
    %c0_52 = arith.constant 0 : index
    %c0_53 = arith.constant 0 : index
    %126 = vector.load %arg9[%c0_52, %c0_53] : memref<8x256xf32, #tpu.memory_space<vmem>>, vector<1x256xf32>
    tpu.vector_store %arg9[%c0_52, %c0_53], %125 {strides = array<i32>} : memref<8x256xf32, #tpu.memory_space<vmem>>, vector<1x256xf32>,
    %c0_54 = arith.constant 0 : index
    %c1 = arith.constant 1 : index
    %127 = memref.load %arg1[%c0_54, %c1] : memref<2x8xi32, #tpu.memory_space<smem>>
    %128 = arith.index_cast %127 : i32 to index
    %c0_55 = arith.constant 0 : index
    %129 = vector.load %arg7[%128, %c0_55] : memref<128x256xf32, #tpu.memory_space<vmem>>, vector<1x256xf32>
    %c1_56 = arith.constant 1 : index
    %c0_57 = arith.constant 0 : index
    %130 = vector.load %arg9[%c1_56, %c0_57] : memref<8x256xf32, #tpu.memory_space<vmem>>, vector<1x256xf32>
    tpu.vector_store %arg9[%c1_56, %c0_57], %129 {strides = array<i32>} : memref<8x256xf32, #tpu.memory_space<vmem>>, vector<1x256xf32>,
    %c0_58 = arith.constant 0 : index
    %c2 = arith.constant 2 : index
    %131 = memref.load %arg1[%c0_58, %c2] : memref<2x8xi32, #tpu.memory_space<smem>>
    %132 = arith.index_cast %131 : i32 to index
    %c0_59 = arith.constant 0 : index
    %133 = vector.load %arg7[%132, %c0_59] : memref<128x256xf32, #tpu.memory_space<vmem>>, vector<1x256xf32>
    %c2_60 = arith.constant 2 : index
    %c0_61 = arith.constant 0 : index
    %134 = vector.load %arg9[%c2_60, %c0_61] : memref<8x256xf32, #tpu.memory_space<vmem>>, vector<1x256xf32>
    tpu.vector_store %arg9[%c2_60, %c0_61], %133 {strides = array<i32>} : memref<8x256xf32, #tpu.memory_space<vmem>>, vector<1x256xf32>,
    %c0_62 = arith.constant 0 : index
    %c3 = arith.constant 3 : index
    %135 = memref.load %arg1[%c0_62, %c3] : memref<2x8xi32, #tpu.memory_space<smem>>
    %136 = arith.index_cast %135 : i32 to index
    %c0_63 = arith.constant 0 : index
    %137 = vector.load %arg7[%136, %c0_63] : memref<128x256xf32, #tpu.memory_space<vmem>>, vector<1x256xf32>
    %c3_64 = arith.constant 3 : index
    %c0_65 = arith.constant 0 : index
    %138 = vector.load %arg9[%c3_64, %c0_65] : memref<8x256xf32, #tpu.memory_space<vmem>>, vector<1x256xf32>
    tpu.vector_store %arg9[%c3_64, %c0_65], %137 {strides = array<i32>} : memref<8x256xf32, #tpu.memory_space<vmem>>, vector<1x256xf32>,
    %c0_66 = arith.constant 0 : index
    %c4 = arith.constant 4 : index
    %139 = memref.load %arg1[%c0_66, %c4] : memref<2x8xi32, #tpu.memory_space<smem>>
    %140 = arith.index_cast %139 : i32 to index
    %c0_67 = arith.constant 0 : index
    %141 = vector.load %arg7[%140, %c0_67] : memref<128x256xf32, #tpu.memory_space<vmem>>, vector<1x256xf32>
    %c4_68 = arith.constant 4 : index
    %c0_69 = arith.constant 0 : index
    %142 = vector.load %arg9[%c4_68, %c0_69] : memref<8x256xf32, #tpu.memory_space<vmem>>, vector<1x256xf32>
    tpu.vector_store %arg9[%c4_68, %c0_69], %141 {strides = array<i32>} : memref<8x256xf32, #tpu.memory_space<vmem>>, vector<1x256xf32>,
    %c0_70 = arith.constant 0 : index
    %c5 = arith.constant 5 : index
    %143 = memref.load %arg1[%c0_70, %c5] : memref<2x8xi32, #tpu.memory_space<smem>>
    %144 = arith.index_cast %143 : i32 to index
    %c0_71 = arith.constant 0 : index
    %145 = vector.load %arg7[%144, %c0_71] : memref<128x256xf32, #tpu.memory_space<vmem>>, vector<1x256xf32>
    %c5_72 = arith.constant 5 : index
    %c0_73 = arith.constant 0 : index
    %146 = vector.load %arg9[%c5_72, %c0_73] : memref<8x256xf32, #tpu.memory_space<vmem>>, vector<1x256xf32>
    tpu.vector_store %arg9[%c5_72, %c0_73], %145 {strides = array<i32>} : memref<8x256xf32, #tpu.memory_space<vmem>>, vector<1x256xf32>,
    %c0_74 = arith.constant 0 : index
    %c6 = arith.constant 6 : index
    %147 = memref.load %arg1[%c0_74, %c6] : memref<2x8xi32, #tpu.memory_space<smem>>
    %148 = arith.index_cast %147 : i32 to index
    %c0_75 = arith.constant 0 : index
    %149 = vector.load %arg7[%148, %c0_75] : memref<128x256xf32, #tpu.memory_space<vmem>>, vector<1x256xf32>
    %c6_76 = arith.constant 6 : index
    %c0_77 = arith.constant 0 : index
    %150 = vector.load %arg9[%c6_76, %c0_77] : memref<8x256xf32, #tpu.memory_space<vmem>>, vector<1x256xf32>
    tpu.vector_store %arg9[%c6_76, %c0_77], %149 {strides = array<i32>} : memref<8x256xf32, #tpu.memory_space<vmem>>, vector<1x256xf32>,
    %c0_78 = arith.constant 0 : index
    %c7 = arith.constant 7 : index
    %151 = memref.load %arg1[%c0_78, %c7] : memref<2x8xi32, #tpu.memory_space<smem>>
    %152 = arith.index_cast %151 : i32 to index
    %c0_79 = arith.constant 0 : index
    %153 = vector.load %arg7[%152, %c0_79] : memref<128x256xf32, #tpu.memory_space<vmem>>, vector<1x256xf32>
    %c7_80 = arith.constant 7 : index
    %c0_81 = arith.constant 0 : index
    %154 = vector.load %arg9[%c7_80, %c0_81] : memref<8x256xf32, #tpu.memory_space<vmem>>, vector<1x256xf32>
    tpu.vector_store %arg9[%c7_80, %c0_81], %153 {strides = array<i32>} : memref<8x256xf32, #tpu.memory_space<vmem>>, vector<1x256xf32>,
    %c0_82 = arith.constant 0 : index
    %c0_83 = arith.constant 0 : index
    %155 = vector.load %arg9[%c0_82, %c0_83] : memref<8x256xf32, #tpu.memory_space<vmem>>, vector<8x256xf32>
    %c0_84 = arith.constant 0 : index
    %c2816 = arith.constant 2816 : index
    %156 = vector.load %arg6[%c0_84, %c2816] : memref<1x6400xf32, #tpu.memory_space<vmem>>, vector<1x256xf32>
    %157 = arith.mulf %155, %155 : vector<8x256xf32>
    %cst_85 = arith.constant dense<0.000000e+00> : vector<8xf32>
    %158 = vector.multi_reduction <add>, %157, %cst_85 [1] : vector<8x256xf32> to vector<8xf32>
    %159 = vector.shape_cast %158 : vector<8xf32> to vector<8x1xf32>
    %cst_86 = arith.constant 2.560000e+02 : f32
    %160 = vector.broadcast %cst_86 : f32 to vector<8x1xf32>
    %161 = arith.divf %159, %160 : vector<8x1xf32>
    %cst_87 = arith.constant 9.99999997E-7 : f32
    %162 = vector.broadcast %cst_87 : f32 to vector<8x1xf32>
    %163 = arith.addf %161, %162 : vector<8x1xf32>
    %164 = math.rsqrt %163 : vector<8x1xf32>
    %165 = vector.broadcast %164 : vector<8x1xf32> to vector<8x256xf32>
    %166 = arith.mulf %155, %165 : vector<8x256xf32>
    %167 = vector.broadcast %156 : vector<1x256xf32> to vector<8x256xf32>
    %168 = arith.mulf %166, %167 : vector<8x256xf32>
    %c0_88 = arith.constant 0 : index
    %c0_89 = arith.constant 0 : index
    %169 = vector.load %arg5[%c0_88, %c0_89] : memref<256x2688xf32, #tpu.memory_space<vmem>>, vector<256x768xf32>
    %cst_90 = arith.constant dense<0.000000e+00> : vector<8x768xf32>
    %170 = tpu.matmul %168, %169, %cst_90 {dimension_numbers = #tpu.dot_dimension_numbers<[1], [0], [0], [1], [0, 0, 1, 1], [], []>} : vector<8x256xf32>, vector<256x768xf32>, vector<8x768xf32> -> vector<8x768xf32>
    %c0_91 = arith.constant 0 : index
    %c3840 = arith.constant 3840 : index
    %171 = vector.load %arg6[%c0_91, %c3840] : memref<1x6400xf32, #tpu.memory_space<vmem>>, vector<1x768xf32>
    %172 = vector.broadcast %171 : vector<1x768xf32> to vector<8x768xf32>
    %173 = arith.addf %170, %172 : vector<8x768xf32>
    %174 = vector.extract_strided_slice %173 {offsets = [0, 0], sizes = [8, 256], strides = [1, 1]} : vector<8x768xf32> to vector<8x256xf32>
    %175 = vector.extract_strided_slice %173 {offsets = [0, 256], sizes = [8, 256], strides = [1, 1]} : vector<8x768xf32> to vector<8x256xf32>
    %176 = vector.extract_strided_slice %173 {offsets = [0, 512], sizes = [8, 256], strides = [1, 1]} : vector<8x768xf32> to vector<8x256xf32>
    %c0_92 = arith.constant 0 : index
    %c768_93 = arith.constant 768 : index
    %177 = vector.load %arg5[%c0_92, %c768_93] : memref<256x2688xf32, #tpu.memory_space<vmem>>, vector<256x256xf32>
    %c0_94 = arith.constant 0 : index
    %c4608 = arith.constant 4608 : index
    %178 = vector.load %arg6[%c0_94, %c4608] : memref<1x6400xf32, #tpu.memory_space<vmem>>, vector<1x256xf32>
    %179 = tpu.iota {dimensions = array<i32: 0>} : vector<8x8xi32>
    %180 = tpu.iota {dimensions = array<i32: 1>} : vector<8x8xi32>
    %181 = arith.cmpi sle, %180, %179 : vector<8x8xi32>
    %cst_95 = arith.constant 0.000000e+00 : f32
    %cst_96 = arith.constant -1.000000e+30 : f32
    %182 = vector.broadcast %cst_95 : f32 to vector<8x8xf32>
    %183 = vector.broadcast %cst_96 : f32 to vector<8x8xf32>
    %184 = arith.select %181, %182, %183 : vector<8x8xi1>, vector<8x8xf32>
    %185 = vector.extract_strided_slice %174 {offsets = [0, 0], sizes = [8, 128], strides = [1, 1]} : vector<8x256xf32> to vector<8x128xf32>
    %186 = vector.extract_strided_slice %175 {offsets = [0, 0], sizes = [8, 128], strides = [1, 1]} : vector<8x256xf32> to vector<8x128xf32>
    %cst_97 = arith.constant dense<0.000000e+00> : vector<8x8xf32>
    %187 = tpu.matmul %185, %186, %cst_97 {dimension_numbers = #tpu.dot_dimension_numbers<[1], [1], [0], [0], [0, 0, 1, 0], [], []>} : vector<8x128xf32>, vector<8x128xf32>, vector<8x8xf32> -> vector<8x8xf32>
    %188 = arith.addf %187, %184 : vector<8x8xf32>
    %cst_98 = arith.constant dense<0xFF800000> : vector<8xf32>
    %189 = vector.multi_reduction <maximumf>, %188, %cst_98 [1] : vector<8x8xf32> to vector<8xf32>
    %190 = vector.shape_cast %189 : vector<8xf32> to vector<8x1xf32>
    %191 = vector.broadcast %190 : vector<8x1xf32> to vector<8x8xf32>
    %192 = arith.subf %188, %191 : vector<8x8xf32>
    %193 = math.exp %192 : vector<8x8xf32>
    %cst_99 = arith.constant dense<0.000000e+00> : vector<8xf32>
    %194 = vector.multi_reduction <add>, %193, %cst_99 [1] : vector<8x8xf32> to vector<8xf32>
    %195 = vector.shape_cast %194 : vector<8xf32> to vector<8x1xf32>
    %196 = tpu.reciprocal %195 {approx = true} : vector<8x1xf32> -> vector<8x1xf32>
    %197 = vector.broadcast %196 : vector<8x1xf32> to vector<8x8xf32>
    %198 = arith.mulf %193, %197 : vector<8x8xf32>
    %199 = vector.extract_strided_slice %176 {offsets = [0, 0], sizes = [8, 128], strides = [1, 1]} : vector<8x256xf32> to vector<8x128xf32>
    %cst_100 = arith.constant dense<0.000000e+00> : vector<8x128xf32>
    %200 = tpu.matmul %198, %199, %cst_100 {dimension_numbers = #tpu.dot_dimension_numbers<[1], [0], [0], [1], [0, 0, 1, 1], [], []>} : vector<8x8xf32>, vector<8x128xf32>, vector<8x128xf32> -> vector<8x128xf32>
    %201 = vector.extract_strided_slice %174 {offsets = [0, 128], sizes = [8, 128], strides = [1, 1]} : vector<8x256xf32> to vector<8x128xf32>
    %202 = vector.extract_strided_slice %175 {offsets = [0, 128], sizes = [8, 128], strides = [1, 1]} : vector<8x256xf32> to vector<8x128xf32>
    %cst_101 = arith.constant dense<0.000000e+00> : vector<8x8xf32>
    %203 = tpu.matmul %201, %202, %cst_101 {dimension_numbers = #tpu.dot_dimension_numbers<[1], [1], [0], [0], [0, 0, 1, 0], [], []>} : vector<8x128xf32>, vector<8x128xf32>, vector<8x8xf32> -> vector<8x8xf32>
    %204 = arith.addf %203, %184 : vector<8x8xf32>
    %cst_102 = arith.constant dense<0xFF800000> : vector<8xf32>
    %205 = vector.multi_reduction <maximumf>, %204, %cst_102 [1] : vector<8x8xf32> to vector<8xf32>
    %206 = vector.shape_cast %205 : vector<8xf32> to vector<8x1xf32>
    %207 = vector.broadcast %206 : vector<8x1xf32> to vector<8x8xf32>
    %208 = arith.subf %204, %207 : vector<8x8xf32>
    %209 = math.exp %208 : vector<8x8xf32>
    %cst_103 = arith.constant dense<0.000000e+00> : vector<8xf32>
    %210 = vector.multi_reduction <add>, %209, %cst_103 [1] : vector<8x8xf32> to vector<8xf32>
    %211 = vector.shape_cast %210 : vector<8xf32> to vector<8x1xf32>
    %212 = tpu.reciprocal %211 {approx = true} : vector<8x1xf32> -> vector<8x1xf32>
    %213 = vector.broadcast %212 : vector<8x1xf32> to vector<8x8xf32>
    %214 = arith.mulf %209, %213 : vector<8x8xf32>
    %215 = vector.extract_strided_slice %176 {offsets = [0, 128], sizes = [8, 128], strides = [1, 1]} : vector<8x256xf32> to vector<8x128xf32>
    %cst_104 = arith.constant dense<0.000000e+00> : vector<8x128xf32>
    %216 = tpu.matmul %214, %215, %cst_104 {dimension_numbers = #tpu.dot_dimension_numbers<[1], [0], [0], [1], [0, 0, 1, 1], [], []>} : vector<8x8xf32>, vector<8x128xf32>, vector<8x128xf32> -> vector<8x128xf32>
    %217 = tpu.concatenate %200, %216 in 1 : vector<8x128xf32>, vector<8x128xf32> -> vector<8x256xf32>
    %cst_105 = arith.constant dense<0.000000e+00> : vector<8x256xf32>
    %218 = tpu.matmul %217, %177, %cst_105 {dimension_numbers = #tpu.dot_dimension_numbers<[1], [0], [0], [1], [0, 0, 1, 1], [], []>} : vector<8x256xf32>, vector<256x256xf32>, vector<8x256xf32> -> vector<8x256xf32>
    %219 = vector.broadcast %178 : vector<1x256xf32> to vector<8x256xf32>
    %220 = arith.addf %218, %219 : vector<8x256xf32>
    %221 = arith.addf %155, %220 : vector<8x256xf32>
    %c0_106 = arith.constant 0 : index
    %c3072 = arith.constant 3072 : index
    %222 = vector.load %arg6[%c0_106, %c3072] : memref<1x6400xf32, #tpu.memory_space<vmem>>, vector<1x256xf32>
    %223 = arith.mulf %221, %221 : vector<8x256xf32>
    %cst_107 = arith.constant dense<0.000000e+00> : vector<8xf32>
    %224 = vector.multi_reduction <add>, %223, %cst_107 [1] : vector<8x256xf32> to vector<8xf32>
    %225 = vector.shape_cast %224 : vector<8xf32> to vector<8x1xf32>
    %cst_108 = arith.constant 2.560000e+02 : f32
    %226 = vector.broadcast %cst_108 : f32 to vector<8x1xf32>
    %227 = arith.divf %225, %226 : vector<8x1xf32>
    %cst_109 = arith.constant 9.99999997E-7 : f32
    %228 = vector.broadcast %cst_109 : f32 to vector<8x1xf32>
    %229 = arith.addf %227, %228 : vector<8x1xf32>
    %230 = math.rsqrt %229 : vector<8x1xf32>
    %231 = vector.broadcast %230 : vector<8x1xf32> to vector<8x256xf32>
    %232 = arith.mulf %221, %231 : vector<8x256xf32>
    %233 = vector.broadcast %222 : vector<1x256xf32> to vector<8x256xf32>
    %234 = arith.mulf %232, %233 : vector<8x256xf32>
    %c0_110 = arith.constant 0 : index
    %c1024_111 = arith.constant 1024 : index
    %235 = vector.load %arg5[%c0_110, %c1024_111] : memref<256x2688xf32, #tpu.memory_space<vmem>>, vector<256x256xf32>
    %cst_112 = arith.constant dense<0.000000e+00> : vector<8x256xf32>
    %236 = tpu.matmul %234, %235, %cst_112 {dimension_numbers = #tpu.dot_dimension_numbers<[1], [0], [0], [1], [0, 0, 1, 1], [], []>} : vector<8x256xf32>, vector<256x256xf32>, vector<8x256xf32> -> vector<8x256xf32>
    %c0_113 = arith.constant 0 : index
    %c4864 = arith.constant 4864 : index
    %237 = vector.load %arg6[%c0_113, %c4864] : memref<1x6400xf32, #tpu.memory_space<vmem>>, vector<1x256xf32>
    %238 = vector.broadcast %237 : vector<1x256xf32> to vector<8x256xf32>
    %239 = arith.addf %236, %238 : vector<8x256xf32>
    %c0_114 = arith.constant 0 : index
    %c1280_115 = arith.constant 1280 : index
    %240 = vector.load %arg5[%c0_114, %c1280_115] : memref<256x2688xf32, #tpu.memory_space<vmem>>, vector<256x512xf32>
    %cst_116 = arith.constant dense<0.000000e+00> : vector<16x512xf32>
    %241 = tpu.matmul %122, %240, %cst_116 {dimension_numbers = #tpu.dot_dimension_numbers<[1], [0], [0], [1], [0, 0, 1, 1], [], []>} : vector<16x256xf32>, vector<256x512xf32>, vector<16x512xf32> -> vector<16x512xf32>
    %c0_117 = arith.constant 0 : index
    %c5120 = arith.constant 5120 : index
    %242 = vector.load %arg6[%c0_117, %c5120] : memref<1x6400xf32, #tpu.memory_space<vmem>>, vector<1x512xf32>
    %243 = vector.broadcast %242 : vector<1x512xf32> to vector<16x512xf32>
    %244 = arith.addf %241, %243 : vector<16x512xf32>
    %245 = vector.extract_strided_slice %244 {offsets = [0, 0], sizes = [16, 256], strides = [1, 1]} : vector<16x512xf32> to vector<16x256xf32>
    %246 = vector.extract_strided_slice %244 {offsets = [0, 256], sizes = [16, 256], strides = [1, 1]} : vector<16x512xf32> to vector<16x256xf32>
    %c0_118 = arith.constant 0 : index
    %c1792 = arith.constant 1792 : index
    %247 = vector.load %arg5[%c0_118, %c1792] : memref<256x2688xf32, #tpu.memory_space<vmem>>, vector<256x256xf32>
    %c0_119 = arith.constant 0 : index
    %c5632 = arith.constant 5632 : index
    %248 = vector.load %arg6[%c0_119, %c5632] : memref<1x6400xf32, #tpu.memory_space<vmem>>, vector<1x256xf32>
    %249 = vector.extract_strided_slice %239 {offsets = [0, 0], sizes = [8, 128], strides = [1, 1]} : vector<8x256xf32> to vector<8x128xf32>
    %250 = vector.extract_strided_slice %245 {offsets = [0, 0], sizes = [16, 128], strides = [1, 1]} : vector<16x256xf32> to vector<16x128xf32>
    %cst_120 = arith.constant dense<0.000000e+00> : vector<8x16xf32>
    %251 = tpu.matmul %249, %250, %cst_120 {dimension_numbers = #tpu.dot_dimension_numbers<[1], [1], [0], [0], [0, 0, 1, 0], [], []>} : vector<8x128xf32>, vector<16x128xf32>, vector<8x16xf32> -> vector<8x16xf32>
    %cst_121 = arith.constant dense<0xFF800000> : vector<8xf32>
    %252 = vector.multi_reduction <maximumf>, %251, %cst_121 [1] : vector<8x16xf32> to vector<8xf32>
    %253 = vector.shape_cast %252 : vector<8xf32> to vector<8x1xf32>
    %254 = vector.broadcast %253 : vector<8x1xf32> to vector<8x16xf32>
    %255 = arith.subf %251, %254 : vector<8x16xf32>
    %256 = math.exp %255 : vector<8x16xf32>
    %cst_122 = arith.constant dense<0.000000e+00> : vector<8xf32>
    %257 = vector.multi_reduction <add>, %256, %cst_122 [1] : vector<8x16xf32> to vector<8xf32>
    %258 = vector.shape_cast %257 : vector<8xf32> to vector<8x1xf32>
    %259 = tpu.reciprocal %258 {approx = true} : vector<8x1xf32> -> vector<8x1xf32>
    %260 = vector.broadcast %259 : vector<8x1xf32> to vector<8x16xf32>
    %261 = arith.mulf %256, %260 : vector<8x16xf32>
    %262 = vector.extract_strided_slice %246 {offsets = [0, 0], sizes = [16, 128], strides = [1, 1]} : vector<16x256xf32> to vector<16x128xf32>
    %cst_123 = arith.constant dense<0.000000e+00> : vector<8x128xf32>
    %263 = tpu.matmul %261, %262, %cst_123 {dimension_numbers = #tpu.dot_dimension_numbers<[1], [0], [0], [1], [0, 0, 1, 1], [], []>} : vector<8x16xf32>, vector<16x128xf32>, vector<8x128xf32> -> vector<8x128xf32>
    %264 = vector.extract_strided_slice %239 {offsets = [0, 128], sizes = [8, 128], strides = [1, 1]} : vector<8x256xf32> to vector<8x128xf32>
    %265 = vector.extract_strided_slice %245 {offsets = [0, 128], sizes = [16, 128], strides = [1, 1]} : vector<16x256xf32> to vector<16x128xf32>
    %cst_124 = arith.constant dense<0.000000e+00> : vector<8x16xf32>
    %266 = tpu.matmul %264, %265, %cst_124 {dimension_numbers = #tpu.dot_dimension_numbers<[1], [1], [0], [0], [0, 0, 1, 0], [], []>} : vector<8x128xf32>, vector<16x128xf32>, vector<8x16xf32> -> vector<8x16xf32>
    %cst_125 = arith.constant dense<0xFF800000> : vector<8xf32>
    %267 = vector.multi_reduction <maximumf>, %266, %cst_125 [1] : vector<8x16xf32> to vector<8xf32>
    %268 = vector.shape_cast %267 : vector<8xf32> to vector<8x1xf32>
    %269 = vector.broadcast %268 : vector<8x1xf32> to vector<8x16xf32>
    %270 = arith.subf %266, %269 : vector<8x16xf32>
    %271 = math.exp %270 : vector<8x16xf32>
    %cst_126 = arith.constant dense<0.000000e+00> : vector<8xf32>
    %272 = vector.multi_reduction <add>, %271, %cst_126 [1] : vector<8x16xf32> to vector<8xf32>
    %273 = vector.shape_cast %272 : vector<8xf32> to vector<8x1xf32>
    %274 = tpu.reciprocal %273 {approx = true} : vector<8x1xf32> -> vector<8x1xf32>
    %275 = vector.broadcast %274 : vector<8x1xf32> to vector<8x16xf32>
    %276 = arith.mulf %271, %275 : vector<8x16xf32>
    %277 = vector.extract_strided_slice %246 {offsets = [0, 128], sizes = [16, 128], strides = [1, 1]} : vector<16x256xf32> to vector<16x128xf32>
    %cst_127 = arith.constant dense<0.000000e+00> : vector<8x128xf32>
    %278 = tpu.matmul %276, %277, %cst_127 {dimension_numbers = #tpu.dot_dimension_numbers<[1], [0], [0], [1], [0, 0, 1, 1], [], []>} : vector<8x16xf32>, vector<16x128xf32>, vector<8x128xf32> -> vector<8x128xf32>
    %279 = tpu.concatenate %263, %278 in 1 : vector<8x128xf32>, vector<8x128xf32> -> vector<8x256xf32>
    %cst_128 = arith.constant dense<0.000000e+00> : vector<8x256xf32>
    %280 = tpu.matmul %279, %247, %cst_128 {dimension_numbers = #tpu.dot_dimension_numbers<[1], [0], [0], [1], [0, 0, 1, 1], [], []>} : vector<8x256xf32>, vector<256x256xf32>, vector<8x256xf32> -> vector<8x256xf32>
    %281 = vector.broadcast %248 : vector<1x256xf32> to vector<8x256xf32>
    %282 = arith.addf %280, %281 : vector<8x256xf32>
    %283 = arith.addf %221, %282 : vector<8x256xf32>
    %c0_129 = arith.constant 0 : index
    %c3328 = arith.constant 3328 : index
    %284 = vector.load %arg6[%c0_129, %c3328] : memref<1x6400xf32, #tpu.memory_space<vmem>>, vector<1x256xf32>
    %285 = arith.mulf %283, %283 : vector<8x256xf32>
    %cst_130 = arith.constant dense<0.000000e+00> : vector<8xf32>
    %286 = vector.multi_reduction <add>, %285, %cst_130 [1] : vector<8x256xf32> to vector<8xf32>
    %287 = vector.shape_cast %286 : vector<8xf32> to vector<8x1xf32>
    %cst_131 = arith.constant 2.560000e+02 : f32
    %288 = vector.broadcast %cst_131 : f32 to vector<8x1xf32>
    %289 = arith.divf %287, %288 : vector<8x1xf32>
    %cst_132 = arith.constant 9.99999997E-7 : f32
    %290 = vector.broadcast %cst_132 : f32 to vector<8x1xf32>
    %291 = arith.addf %289, %290 : vector<8x1xf32>
    %292 = math.rsqrt %291 : vector<8x1xf32>
    %293 = vector.broadcast %292 : vector<8x1xf32> to vector<8x256xf32>
    %294 = arith.mulf %283, %293 : vector<8x256xf32>
    %295 = vector.broadcast %284 : vector<1x256xf32> to vector<8x256xf32>
    %296 = arith.mulf %294, %295 : vector<8x256xf32>
    %c0_133 = arith.constant 0 : index
    %c2048_134 = arith.constant 2048 : index
    %297 = vector.load %arg5[%c0_133, %c2048_134] : memref<256x2688xf32, #tpu.memory_space<vmem>>, vector<256x256xf32>
    %cst_135 = arith.constant dense<0.000000e+00> : vector<8x256xf32>
    %298 = tpu.matmul %296, %297, %cst_135 {dimension_numbers = #tpu.dot_dimension_numbers<[1], [0], [0], [1], [0, 0, 1, 1], [], []>} : vector<8x256xf32>, vector<256x256xf32>, vector<8x256xf32> -> vector<8x256xf32>
    %c0_136 = arith.constant 0 : index
    %c5888 = arith.constant 5888 : index
    %299 = vector.load %arg6[%c0_136, %c5888] : memref<1x6400xf32, #tpu.memory_space<vmem>>, vector<1x256xf32>
    %300 = vector.broadcast %299 : vector<1x256xf32> to vector<8x256xf32>
    %301 = arith.addf %298, %300 : vector<8x256xf32>
    %cst_137 = arith.constant 0.000000e+00 : f32
    %302 = vector.broadcast %cst_137 : f32 to vector<8x256xf32>
    %303 = arith.maximumf %301, %302 : vector<8x256xf32>
    %c0_138 = arith.constant 0 : index
    %c2304_139 = arith.constant 2304 : index
    %304 = vector.load %arg5[%c0_138, %c2304_139] : memref<256x2688xf32, #tpu.memory_space<vmem>>, vector<256x256xf32>
    %cst_140 = arith.constant dense<0.000000e+00> : vector<8x256xf32>
    %305 = tpu.matmul %303, %304, %cst_140 {dimension_numbers = #tpu.dot_dimension_numbers<[1], [0], [0], [1], [0, 0, 1, 1], [], []>} : vector<8x256xf32>, vector<256x256xf32>, vector<8x256xf32> -> vector<8x256xf32>
    %306 = arith.addf %283, %305 : vector<8x256xf32>
    %c0_141 = arith.constant 0 : index
    %c6144 = arith.constant 6144 : index
    %307 = vector.load %arg6[%c0_141, %c6144] : memref<1x6400xf32, #tpu.memory_space<vmem>>, vector<1x256xf32>
    %308 = vector.broadcast %307 : vector<1x256xf32> to vector<8x256xf32>
    %309 = arith.addf %306, %308 : vector<8x256xf32>
    %c0_142 = arith.constant 0 : index
    %c3584 = arith.constant 3584 : index
    %310 = vector.load %arg6[%c0_142, %c3584] : memref<1x6400xf32, #tpu.memory_space<vmem>>, vector<1x256xf32>
    %311 = arith.mulf %309, %309 : vector<8x256xf32>
    %cst_143 = arith.constant dense<0.000000e+00> : vector<8xf32>
    %312 = vector.multi_reduction <add>, %311, %cst_143 [1] : vector<8x256xf32> to vector<8xf32>
    %313 = vector.shape_cast %312 : vector<8xf32> to vector<8x1xf32>
    %cst_144 = arith.constant 2.560000e+02 : f32
    %314 = vector.broadcast %cst_144 : f32 to vector<8x1xf32>
    %315 = arith.divf %313, %314 : vector<8x1xf32>
    %cst_145 = arith.constant 9.99999997E-7 : f32
    %316 = vector.broadcast %cst_145 : f32 to vector<8x1xf32>
    %317 = arith.addf %315, %316 : vector<8x1xf32>
    %318 = math.rsqrt %317 : vector<8x1xf32>
    %319 = vector.broadcast %318 : vector<8x1xf32> to vector<8x256xf32>
    %320 = arith.mulf %309, %319 : vector<8x256xf32>
    %321 = vector.broadcast %310 : vector<1x256xf32> to vector<8x256xf32>
    %322 = arith.mulf %320, %321 : vector<8x256xf32>
    %cst_146 = arith.constant 6.250000e-02 : f32
    %323 = vector.broadcast %cst_146 : f32 to vector<8x256xf32>
    %324 = arith.mulf %322, %323 : vector<8x256xf32>
    %c0_147 = arith.constant 0 : index
    %c2560_148 = arith.constant 2560 : index
    %325 = vector.load %arg5[%c0_147, %c2560_148] : memref<256x2688xf32, #tpu.memory_space<vmem>>, vector<256x128xf32>
    %cst_149 = arith.constant dense<0.000000e+00> : vector<8x128xf32>
    %326 = tpu.matmul %324, %325, %cst_149 {dimension_numbers = #tpu.dot_dimension_numbers<[1], [0], [0], [1], [0, 0, 1, 1], [], []>} : vector<8x256xf32>, vector<256x128xf32>, vector<8x128xf32> -> vector<8x128xf32>
    %cst_150 = arith.constant dense<0xFF800000> : vector<8xf32>
    %327 = vector.multi_reduction <maximumf>, %326, %cst_150 [1] : vector<8x128xf32> to vector<8xf32>
    %328 = vector.shape_cast %327 : vector<8xf32> to vector<8x1xf32>
    %329 = vector.broadcast %328 : vector<8x1xf32> to vector<8x128xf32>
    %330 = arith.subf %326, %329 : vector<8x128xf32>
    %331 = math.exp %330 : vector<8x128xf32>
    %cst_151 = arith.constant dense<0.000000e+00> : vector<8xf32>
    %332 = vector.multi_reduction <add>, %331, %cst_151 [1] : vector<8x128xf32> to vector<8xf32>
    %333 = vector.shape_cast %332 : vector<8xf32> to vector<8x1xf32>
    %334 = math.log %333 : vector<8x1xf32>
    %335 = arith.addf %334, %328 : vector<8x1xf32>
    %336 = tpu.iota {dimensions = array<i32: 1>} : vector<1x128xi32>
    %c1_152 = arith.constant 1 : index
    %c0_153 = arith.constant 0 : index
    %337 = memref.load %arg1[%c1_152, %c0_153] : memref<2x8xi32, #tpu.memory_space<smem>>
    %338 = vector.extract_strided_slice %326 {offsets = [0, 0], sizes = [1, 128], strides = [1, 1]} : vector<8x128xf32> to vector<1x128xf32>
    %339 = vector.broadcast %337 : i32 to vector<1x128xi32>
    %340 = arith.cmpi eq, %336, %339 : vector<1x128xi32>
    %cst_154 = arith.constant 0.000000e+00 : f32
    %341 = vector.broadcast %cst_154 : f32 to vector<1x128xf32>
    %342 = arith.select %340, %338, %341 : vector<1x128xi1>, vector<1x128xf32>
    %cst_155 = arith.constant dense<0.000000e+00> : vector<1xf32>
    %343 = vector.multi_reduction <add>, %342, %cst_155 [1] : vector<1x128xf32> to vector<1xf32>
    %344 = vector.shape_cast %343 : vector<1xf32> to vector<1x1xf32>
    %c1_156 = arith.constant 1 : index
    %c1_157 = arith.constant 1 : index
    %345 = memref.load %arg1[%c1_156, %c1_157] : memref<2x8xi32, #tpu.memory_space<smem>>
    %346 = vector.extract_strided_slice %326 {offsets = [1, 0], sizes = [1, 128], strides = [1, 1]} : vector<8x128xf32> to vector<1x128xf32>
    %347 = vector.broadcast %345 : i32 to vector<1x128xi32>
    %348 = arith.cmpi eq, %336, %347 : vector<1x128xi32>
    %cst_158 = arith.constant 0.000000e+00 : f32
    %349 = vector.broadcast %cst_158 : f32 to vector<1x128xf32>
    %350 = arith.select %348, %346, %349 : vector<1x128xi1>, vector<1x128xf32>
    %cst_159 = arith.constant dense<0.000000e+00> : vector<1xf32>
    %351 = vector.multi_reduction <add>, %350, %cst_159 [1] : vector<1x128xf32> to vector<1xf32>
    %352 = vector.shape_cast %351 : vector<1xf32> to vector<1x1xf32>
    %c1_160 = arith.constant 1 : index
    %c2_161 = arith.constant 2 : index
    %353 = memref.load %arg1[%c1_160, %c2_161] : memref<2x8xi32, #tpu.memory_space<smem>>
    %354 = vector.extract_strided_slice %326 {offsets = [2, 0], sizes = [1, 128], strides = [1, 1]} : vector<8x128xf32> to vector<1x128xf32>
    %355 = vector.broadcast %353 : i32 to vector<1x128xi32>
    %356 = arith.cmpi eq, %336, %355 : vector<1x128xi32>
    %cst_162 = arith.constant 0.000000e+00 : f32
    %357 = vector.broadcast %cst_162 : f32 to vector<1x128xf32>
    %358 = arith.select %356, %354, %357 : vector<1x128xi1>, vector<1x128xf32>
    %cst_163 = arith.constant dense<0.000000e+00> : vector<1xf32>
    %359 = vector.multi_reduction <add>, %358, %cst_163 [1] : vector<1x128xf32> to vector<1xf32>
    %360 = vector.shape_cast %359 : vector<1xf32> to vector<1x1xf32>
    %c1_164 = arith.constant 1 : index
    %c3_165 = arith.constant 3 : index
    %361 = memref.load %arg1[%c1_164, %c3_165] : memref<2x8xi32, #tpu.memory_space<smem>>
    %362 = vector.extract_strided_slice %326 {offsets = [3, 0], sizes = [1, 128], strides = [1, 1]} : vector<8x128xf32> to vector<1x128xf32>
    %363 = vector.broadcast %361 : i32 to vector<1x128xi32>
    %364 = arith.cmpi eq, %336, %363 : vector<1x128xi32>
    %cst_166 = arith.constant 0.000000e+00 : f32
    %365 = vector.broadcast %cst_166 : f32 to vector<1x128xf32>
    %366 = arith.select %364, %362, %365 : vector<1x128xi1>, vector<1x128xf32>
    %cst_167 = arith.constant dense<0.000000e+00> : vector<1xf32>
    %367 = vector.multi_reduction <add>, %366, %cst_167 [1] : vector<1x128xf32> to vector<1xf32>
    %368 = vector.shape_cast %367 : vector<1xf32> to vector<1x1xf32>
    %c1_168 = arith.constant 1 : index
    %c4_169 = arith.constant 4 : index
    %369 = memref.load %arg1[%c1_168, %c4_169] : memref<2x8xi32, #tpu.memory_space<smem>>
    %370 = vector.extract_strided_slice %326 {offsets = [4, 0], sizes = [1, 128], strides = [1, 1]} : vector<8x128xf32> to vector<1x128xf32>
    %371 = vector.broadcast %369 : i32 to vector<1x128xi32>
    %372 = arith.cmpi eq, %336, %371 : vector<1x128xi32>
    %cst_170 = arith.constant 0.000000e+00 : f32
    %373 = vector.broadcast %cst_170 : f32 to vector<1x128xf32>
    %374 = arith.select %372, %370, %373 : vector<1x128xi1>, vector<1x128xf32>
    %cst_171 = arith.constant dense<0.000000e+00> : vector<1xf32>
    %375 = vector.multi_reduction <add>, %374, %cst_171 [1] : vector<1x128xf32> to vector<1xf32>
    %376 = vector.shape_cast %375 : vector<1xf32> to vector<1x1xf32>
    %c1_172 = arith.constant 1 : index
    %c5_173 = arith.constant 5 : index
    %377 = memref.load %arg1[%c1_172, %c5_173] : memref<2x8xi32, #tpu.memory_space<smem>>
    %378 = vector.extract_strided_slice %326 {offsets = [5, 0], sizes = [1, 128], strides = [1, 1]} : vector<8x128xf32> to vector<1x128xf32>
    %379 = vector.broadcast %377 : i32 to vector<1x128xi32>
    %380 = arith.cmpi eq, %336, %379 : vector<1x128xi32>
    %cst_174 = arith.constant 0.000000e+00 : f32
    %381 = vector.broadcast %cst_174 : f32 to vector<1x128xf32>
    %382 = arith.select %380, %378, %381 : vector<1x128xi1>, vector<1x128xf32>
    %cst_175 = arith.constant dense<0.000000e+00> : vector<1xf32>
    %383 = vector.multi_reduction <add>, %382, %cst_175 [1] : vector<1x128xf32> to vector<1xf32>
    %384 = vector.shape_cast %383 : vector<1xf32> to vector<1x1xf32>
    %c1_176 = arith.constant 1 : index
    %c6_177 = arith.constant 6 : index
    %385 = memref.load %arg1[%c1_176, %c6_177] : memref<2x8xi32, #tpu.memory_space<smem>>
    %386 = vector.extract_strided_slice %326 {offsets = [6, 0], sizes = [1, 128], strides = [1, 1]} : vector<8x128xf32> to vector<1x128xf32>
    %387 = vector.broadcast %385 : i32 to vector<1x128xi32>
    %388 = arith.cmpi eq, %336, %387 : vector<1x128xi32>
    %cst_178 = arith.constant 0.000000e+00 : f32
    %389 = vector.broadcast %cst_178 : f32 to vector<1x128xf32>
    %390 = arith.select %388, %386, %389 : vector<1x128xi1>, vector<1x128xf32>
    %cst_179 = arith.constant dense<0.000000e+00> : vector<1xf32>
    %391 = vector.multi_reduction <add>, %390, %cst_179 [1] : vector<1x128xf32> to vector<1xf32>
    %392 = vector.shape_cast %391 : vector<1xf32> to vector<1x1xf32>
    %c1_180 = arith.constant 1 : index
    %c7_181 = arith.constant 7 : index
    %393 = memref.load %arg1[%c1_180, %c7_181] : memref<2x8xi32, #tpu.memory_space<smem>>
    %394 = vector.extract_strided_slice %326 {offsets = [7, 0], sizes = [1, 128], strides = [1, 1]} : vector<8x128xf32> to vector<1x128xf32>
    %395 = vector.broadcast %393 : i32 to vector<1x128xi32>
    %396 = arith.cmpi eq, %336, %395 : vector<1x128xi32>
    %cst_182 = arith.constant 0.000000e+00 : f32
    %397 = vector.broadcast %cst_182 : f32 to vector<1x128xf32>
    %398 = arith.select %396, %394, %397 : vector<1x128xi1>, vector<1x128xf32>
    %cst_183 = arith.constant dense<0.000000e+00> : vector<1xf32>
    %399 = vector.multi_reduction <add>, %398, %cst_183 [1] : vector<1x128xf32> to vector<1xf32>
    %400 = vector.shape_cast %399 : vector<1xf32> to vector<1x1xf32>
    %401 = tpu.concatenate %344, %352, %360, %368, %376, %384, %392, %400 in 0 : vector<1x1xf32>, vector<1x1xf32>, vector<1x1xf32>, vector<1x1xf32>, vector<1x1xf32>, vector<1x1xf32>, vector<1x1xf32>, vector<1x1xf32> -> vector<8x1xf32>
    %402 = arith.subf %335, %401 : vector<8x1xf32>
    %cst_184 = arith.constant dense<0.000000e+00> : vector<1xf32>
    %403 = vector.multi_reduction <add>, %402, %cst_184 [0] : vector<8x1xf32> to vector<1xf32>
    %404 = vector.shape_cast %403 : vector<1xf32> to vector<1x1xf32>
    %cst_185 = arith.constant 1.250000e-01 : f32
    %405 = vector.broadcast %cst_185 : f32 to vector<1x1xf32>
    %406 = arith.mulf %404, %405 : vector<1x1xf32>
    %c0_186 = arith.constant 0 : index
    %c0_187 = arith.constant 0 : index
    %407 = vector.load %arg8[%c0_186, %c0_187] : memref<16x128xf32, #tpu.memory_space<vmem>>, vector<8x128xf32>
    tpu.vector_store %arg8[%c0_186, %c0_187], %326 {strides = array<i32>} : memref<16x128xf32, #tpu.memory_space<vmem>>, vector<8x128xf32>,
    %408 = vector.shape_cast %406 : vector<1x1xf32> to vector<1x1xf32>
    %409 = vector.broadcast %408 : vector<1x1xf32> to vector<8x128xf32>
    %c8 = arith.constant 8 : index
    %c0_188 = arith.constant 0 : index
    %410 = vector.load %arg8[%c8, %c0_188] : memref<16x128xf32, #tpu.memory_space<vmem>>, vector<8x128xf32>
    tpu.vector_store %arg8[%c8, %c0_188], %409 {strides = array<i32>} : memref<16x128xf32, #tpu.memory_space<vmem>>, vector<8x128xf32>,
    return
  }
  func.func @transform_0(%arg0: i32, %arg1: memref<2x8xi32, #tpu.memory_space<smem>>) -> (i32, i32) {
    %c0_i32 = arith.constant 0 : i32
    %c0_i32_0 = arith.constant 0 : i32
    %c0_i32_1 = arith.constant 0 : i32
    return %c0_i32, %c0_i32_0 : i32, i32
  }
  func.func @transform_1(%arg0: i32, %arg1: memref<2x8xi32, #tpu.memory_space<smem>>) -> (i32, i32) {
    %c0_i32 = arith.constant 0 : i32
    %c0_i32_0 = arith.constant 0 : i32
    %c0_i32_1 = arith.constant 0 : i32
    return %c0_i32, %c0_i32_0 : i32, i32
  }
  func.func @transform_2(%arg0: i32, %arg1: memref<2x8xi32, #tpu.memory_space<smem>>) -> (i32, i32) {
    %c0_i32 = arith.constant 0 : i32
    %c0_i32_0 = arith.constant 0 : i32
    %c0_i32_1 = arith.constant 0 : i32
    return %c0_i32, %c0_i32_0 : i32, i32
  }
  func.func @transform_3(%arg0: i32, %arg1: memref<2x8xi32, #tpu.memory_space<smem>>) -> (i32, i32) {
    %c0_i32 = arith.constant 0 : i32
    %c0_i32_0 = arith.constant 0 : i32
    %c0_i32_1 = arith.constant 0 : i32
    return %c0_i32, %c0_i32_0 : i32, i32
  }
  func.func @transform_4(%arg0: i32, %arg1: memref<2x8xi32, #tpu.memory_space<smem>>) -> (i32, i32) {
    %c0_i32 = arith.constant 0 : i32
    %c0_i32_0 = arith.constant 0 : i32
    %c0_i32_1 = arith.constant 0 : i32
    return %c0_i32, %c0_i32_0 : i32, i32
  }
  func.func @transform_5(%arg0: i32, %arg1: memref<2x8xi32, #tpu.memory_space<smem>>) -> (i32, i32) {
    %c0_i32 = arith.constant 0 : i32
    %c0_i32_0 = arith.constant 0 : i32
    %c0_i32_1 = arith.constant 0 : i32
    return %c0_i32, %c0_i32_0 : i32, i32
  }
  func.func @transform_6(%arg0: i32, %arg1: memref<2x8xi32, #tpu.memory_space<smem>>) -> (i32, i32) {
    %c0_i32 = arith.constant 0 : i32
    %c0_i32_0 = arith.constant 0 : i32
    %c0_i32_1 = arith.constant 0 : i32
    return %c0_i32, %c0_i32_0 : i32, i32
  }
}

</mosaic_0001>

<bundles_post_ra>
// kernel: forward.1
= control target key start
LH: loop header
LB: loop body
LE: loop exit
PB: predicated region body
PF: predicated region fallthrough
CT: control target
= control target key end

     0   :  { %s5153_s0 = inlined_call_operand.vmem [shape: s32[2,8], index: 0, kind: input, shape index: {}]   ;;  %s5154_s1 = inlined_call_operand.hbm [shape: f32[16,128], index: 1, kind: input, shape index: {}]   ;;  %s5155_s2 = inlined_call_operand.hbm [shape: f32[128,256], index: 2, kind: input, shape index: {}]   ;;  %s5156_s3 = inlined_call_operand.hbm [shape: f32[256,1536], index: 3, kind: input, shape index: {}]   ;;  %s5157_s4 = inlined_call_operand.hbm [shape: f32[256,2688], index: 4, kind: input, shape index: {}]   ;;  %s5158_s5 = inlined_call_operand.hbm [shape: f32[1,6400], index: 5, kind: input, shape index: {}]   ;;  %s5159_s6 = inlined_call_operand.hbm [shape: f32[128,256], index: 6, kind: input, shape index: {}]   ;;  %s5160_s7 = inlined_call_operand.vmem [shape: f32[16,128], index: 7, kind: output, shape index: {}]  }
   0x1   :  { %s12_s26 = sshll.u32 %s5153_s0, 4  ;;  %s13_s26 = int_to_ptr.vmem [resolvable:$true] %s12_s26 }
   0x2   :  { %s4515_s27 = scalar_lea.vmem %s13_s26, 32  ;;  %p4520_p1 = scmp.lt.s32.totalorder %s13_s26, %s13_s26 }
   0x3   :  { %p4516_p0 = scmp.ne.s32.totalorder %s13_s26, %s4515_s27  ;;  %p4521_p2 = scmp.lt.s32.totalorder %s4515_s27, %s4515_s27 }
   0x5   :  { %p4522_p3 = por %p4521_p2, %p4520_p1 }
   0x7   :  { %p4523_p4 = pnand %p4522_p3, %p4516_p0 }
   0x9   :  { %4526 = shalt.err (!%p4523_p4)  }
   0xa   :  { %s4657_s28 = smov [#allocation4]  }
   0xb   :  { %15 = dma.vmem_to_smem %s13_s26, 32, %s4657_s28, [#allocation3] }
   0xc   :  { %4647 = dma.done.wait [#allocation3], 32 }
   0xd   :  { %4648 = vsyncadd [#allocation3], 4294967264 }
   0xe   :  { %17 = sfence }
   0xf   :  { %18 = vsyncpa [#allocation6], 0 }
  0x10   :  { %19 = vsyncpa [#allocation8], 0 }
  0x11   :  { %20 = vsyncpa [#allocation11], 0 }
  0x12   :  { %21 = vsyncpa [#allocation14], 0  ;;  %s4658_s29 = smov [#allocation7]  }
  0x13   :  { %s39_s30 = sshll.u32 %s4658_s29, 4  ;;  %s40_s30 = int_to_ptr.vmem [resolvable:$true] %s39_s30 }
  0x14   :  { %s4535_s0 = scalar_lea.vmem %s40_s30, 4096  ;;  %p4540_p6 = scmp.lt.s32.totalorder %s40_s30, %s40_s30 }
  0x15   :  { %p4536_p5 = scmp.ne.s32.totalorder %s40_s30, %s4535_s0  ;;  %p4541_p7 = scmp.lt.s32.totalorder %s4535_s0, %s4535_s0 }
  0x17   :  { %p4542_p8 = por %p4541_p7, %p4540_p6 }
  0x19   :  { %p4543_p9 = pnand %p4542_p8, %p4536_p5 }
  0x1b   :  { %4546 = shalt.err (!%p4543_p9)
}
  0x1c   :  { %s4659_s8 = smov 256   ;;  %s4660_s9 = smov 16  }
  0x1d   :  { %45 = dma.hbm_to_vmem [thread:$0]  %s5155_s2, 4096, %s40_s30, [#allocation8], %s4659_s8, %s4659_s8, %s4660_s9  }
  0x1e   :  { %s4661_s12 = smov [#allocation10]  }
  0x1f   :  { %s63_s13 = sshll.u32 %s4661_s12, 4  ;;  %s64_s13 = int_to_ptr.vmem [resolvable:$true] %s63_s13 }
  0x20   :  { %s4555_s14 = scalar_lea.vmem %s64_s13, 86016  ;;  %p4560_p11 = scmp.lt.s32.totalorder %s64_s13, %s64_s13 }
  0x21   :  { %p4556_p10 = scmp.ne.s32.totalorder %s64_s13, %s4555_s14  ;;  %p4561_p12 = scmp.lt.s32.totalorder %s4555_s14, %s4555_s14 }
  0x23   :  { %p4562_p13 = por %p4561_p12, %p4560_p11 }
  0x25   :  { %p4563_p0 = pnand %p4562_p13, %p4556_p10 }
  0x27   :  { %4566 = shalt.err (!%p4563_p0)
}
  0x28   :  { %s4662_s15 = smov 2688   ;;  %s4663_s16 = smov 168  }
  0x29   :  { %69 = dma.hbm_to_vmem [thread:$0]  %s5157_s4, 86016, %s64_s13, [#allocation11], %s4662_s15, %s4662_s15, %s4663_s16  }
  0x2a   :  { %s4664_s19 = smov [#allocation5]  }
  0x2b   :  { %s27_s20 = sshll.u32 %s4664_s19, 4  ;;  %s28_s20 = int_to_ptr.vmem [resolvable:$true] %s27_s20 }
  0x2c   :  { %s4575_s2 = scalar_lea.vmem %s28_s20, 256  ;;  %p4580_p2 = scmp.lt.s32.totalorder %s28_s20, %s28_s20 }
  0x2d   :  { %p4576_p1 = scmp.ne.s32.totalorder %s28_s20, %s4575_s2  ;;  %p4581_p3 = scmp.lt.s32.totalorder %s4575_s2, %s4575_s2 }
  0x2f   :  { %p4582_p4 = por %p4581_p3, %p4580_p2 }
  0x31   :  { %p4583_p5 = pnand %p4582_p4, %p4576_p1 }
  0x33   :  { %4586 = shalt.err (!%p4583_p5)
}
  0x34   :  { %s4665_s21 = smov 128   ;;  %s4666_s22 = smov 8  }
  0x35   :  { %33 = dma.hbm_to_vmem [thread:$0]  %s5154_s1, 256, %s28_s20, [#allocation6], %s4665_s21, %s4665_s21, %s4666_s22  }
  0x36   :  { %s4667_s25 = smov [#allocation9]  }
  0x37   :  { %s51_s26 = sshll.u32 %s4667_s25, 4  ;;  %s52_s26 = int_to_ptr.vmem [resolvable:$true] %s51_s26 }
  0x38   :  { %s4595_s4 = scalar_lea.vmem %s52_s26, 49152  ;;  %p4600_p7 = scmp.lt.s32.totalorder %s52_s26, %s52_s26 }
  0x39   :  { %p4596_p6 = scmp.ne.s32.totalorder %s52_s26, %s4595_s4  ;;  %p4601_p8 = scmp.lt.s32.totalorder %s4595_s4, %s4595_s4 }
  0x3b   :  { %p4602_p9 = por %p4601_p8, %p4600_p7 }
  0x3d   :  { %p4603_p10 = pnand %p4602_p9, %p4596_p6 }
  0x3f   :  { %4606 = shalt.err (!%p4603_p10)
}
  0x40   :  { %s4668_s27 = smov 1536   ;;  %s4669_s28 = smov 96  }
  0x41   :  { %57 = dma.hbm_to_vmem [thread:$0]  %s5156_s3, 49152, %s52_s26, [#allocation8], %s4668_s27, %s4668_s27, %s4669_s28  }
  0x42   :  { %s4670_s0 = smov [#allocation12]   ;;  %s4671_s11 = smov [#allocation13]  }
  0x43   :  { %s76_s10 = sshll.u32 %s4670_s0, 4  ;;  %s85_s1 = sshll.u32 %s4671_s11, 4  ;;  %s77_s10 = int_to_ptr.vmem [resolvable:$true] %s76_s10  ;;  %s86_s1 = int_to_ptr.vmem [resolvable:$true] %s85_s1 }
  0x44   :  { %s4615_s12 = scalar_lea.vmem %s77_s10, 800  ;;  %p4620_p12 = scmp.lt.s32.totalorder %s77_s10, %s77_s10 }
  0x45   :  { %p4616_p11 = scmp.ne.s32.totalorder %s77_s10, %s4615_s12  ;;  %p4621_p13 = scmp.lt.s32.totalorder %s4615_s12, %s4615_s12 }
  0x47   :  { %p4622_p0 = por %p4621_p13, %p4620_p12 }
  0x49   :  { %p4623_p1 = pnand %p4622_p0, %p4616_p11 }
  0x4b   :  { %4626 = shalt.err (!%p4623_p1)
}
  0x4c   :  { %79 = dma.hbm_to_vmem [thread:$0]  %s5158_s5, 800, %s77_s10, [#allocation11]  }
  0x4d   :  { %s4635_s15 = scalar_lea.vmem %s86_s1, 4096  ;;  %p4640_p3 = scmp.lt.s32.totalorder %s86_s1, %s86_s1 }
  0x4e   :  { %p4636_p2 = scmp.ne.s32.totalorder %s86_s1, %s4635_s15  ;;  %p4641_p4 = scmp.lt.s32.totalorder %s4635_s15, %s4635_s15 }
  0x50   :  { %p4642_p5 = por %p4641_p4, %p4640_p3 }
  0x52   :  { %p4643_p6 = pnand %p4642_p5, %p4636_p2 }
  0x54   :  { %4646 = shalt.err (!%p4643_p6)
}
  0x55   :  { %91 = dma.hbm_to_vmem [thread:$0]  %s5159_s6, 4096, %s86_s1, [#allocation14], %s4659_s8, %s4659_s8, %s4660_s9  }
  0x56   :  { %4649 = dma.done.wait [#allocation6], 256  }
  0x57   :  { %4650 = vsyncadd [#allocation6], 4294967040 }
  0x58   :  { %4651 = dma.done.wait [#allocation8], 53248  }
  0x59   :  { %4652 = vsyncadd [#allocation8], 4294914048 }
  0x5a   :  { %4653 = dma.done.wait [#allocation11], 86816  }
  0x5b   :  { %4654 = vsyncadd [#allocation11], 4294880480 }
  0x5c   :  { %4655 = dma.done.wait [#allocation14], 4096  }
  0x5d   :  { %4656 = vsyncadd [#allocation14], 4294963200  ;;  %v4672_v0 = vmov 0.0   ;;  %v143_v1 = vld [vmem:[#allocation7 + $0xf8] sm:$0xff]  ;;  %v142_v2 = vld [vmem:[#allocation7 + $0xf0] sm:$0xff]  ;;  %v146_v35 = vlaneseq  ;;  %vm895_vm0 = vcmask 130048  }
  0x5e   :  { %220 = vmatprep.mubr.f32.mxu0 %v4672_v0  ;;  %v141_v3 = vld [vmem:[#allocation7 + $0xe8] sm:$0xff]  ;;  %156 = vmatprep.subr.mxu0 %v143_v1  ;;  %v140_v4 = vld [vmem:[#allocation7 + $0xe0] sm:$0xff]  ;;  %v139_v5 = vld [vmem:[#allocation7 + $0xd8] sm:$0xff]  ;;  %s1685_s5 = sld [smem:[#allocation4]]  ;;  %vm4673_vm2 = vmmov 0   ;;  %vm2396_vm4 = vcmask 64512  }
  0x5f   :  { %157 = vmatpush1.msra.mxu0 %v142_v2  ;;  %v138_v6 = vld [vmem:[#allocation7 + $0xd0] sm:$0xff]  ;;  %v137_v7 = vld [vmem:[#allocation7 + $0xc8] sm:$0xff]  ;;  %v136_v8 = vld [vmem:[#allocation7 + $0xc0] sm:$0xff]  ;;  %v4746_v36 = vshrl.u32 %v146_v35, 7  ;;  %s4895_s6 = sld [smem:[#allocation4 + $0x1]]  ;;  %vm4907_vm1 = vcmp.lt.s32.totalorder %v146_v35, 256 }
  0x60   :  { %158 = vmatprep.subr.mxu0 %v141_v3  ;;  %v135_v9 = vld [vmem:[#allocation7 + $0xb8] sm:$0xff]  ;;  %v134_v10 = vld [vmem:[#allocation7 + $0xb0] sm:$0xff]  ;;  %v133_v11 = vld [vmem:[#allocation7 + $0xa8] sm:$0xff]  ;;  %s4897_s8 = sld [smem:[#allocation4 + $0x2]]  ;;  %vm4117_vm6 = vcmask 1040384   ;;  %vm4133_vm8 = vcmask 1042434  }
  0x61   :  { %159 = vmatpush1.msra.mxu0 %v140_v4  ;;  %v132_v12 = vld [vmem:[#allocation7 + $0xa0] sm:$0xff]  ;;  %v131_v13 = vld [vmem:[#allocation7 + $0x98] sm:$0xff]  ;;  %v130_v14 = vld [vmem:[#allocation7 + $0x90] sm:$0xff]  ;;  %v4749_v37 = vsub.s32 0, %v4746_v36  ;;  %v4752_v38 = vsub.s32 1, %v4746_v36  ;;  %s4899_s9 = sld [smem:[#allocation4 + $0x3]] }
  0x62   :  { %160 = vmatprep.subr.mxu0 %v139_v5  ;;  %v129_v15 = vld [vmem:[#allocation7 + $0x88] sm:$0xff]  ;;  %v128_v16 = vld [vmem:[#allocation7 + $0x80] sm:$0xff]  ;;  %v127_v17 = vld [vmem:[#allocation7 + $0x78] sm:$0xff]  ;;  %s4901_s17 = sld [smem:[#allocation4 + $0x4]]  ;;  %vm4149_vm10 = vcmask 1044484   ;;  %vm4165_vm12 = vcmask 1046534  }
  0x63   :  { %161 = vmatpush1.msra.mxu0 %v138_v6  ;;  %v126_v18 = vld [vmem:[#allocation7 + $0x70] sm:$0xff]  ;;  %v125_v19 = vld [vmem:[#allocation7 + $0x68] sm:$0xff]  ;;  %v124_v20 = vld [vmem:[#allocation7 + $0x60] sm:$0xff]  ;;  %s4903_s18 = sld [smem:[#allocation4 + $0x5]]  ;;  %vm4125_vm14 = vcmask 1041409  }
  0x64   :  { %162 = vmatprep.subr.mxu0 %v137_v7  ;;  %v123_v21 = vld [vmem:[#allocation7 + $0x58] sm:$0xff]  ;;  %v122_v22 = vld [vmem:[#allocation7 + $0x50] sm:$0xff]  ;;  %v121_v23 = vld [vmem:[#allocation7 + $0x48] sm:$0xff]  ;;  %s1686_s19 = sshra.s32 %s1685_s5, 3  ;;  %s1689_s20 = sand.u32 7, %s1685_s5 }
  0x65   :  { %163 = vmatpush1.msra.mxu0 %v136_v8  ;;  %v120_v24 = vld [vmem:[#allocation7 + $0x40] sm:$0xff]  ;;  %v119_v25 = vld [vmem:[#allocation7 + $0x38] sm:$0xff]  ;;  %v118_v26 = vld [vmem:[#allocation7 + $0x30] sm:$0xff]  ;;  %s4278_s2 = sshll.u32 %s1686_s19, 4  ;;  %s1702_s21 = sshra.s32 %s4895_s6, 3 }
  0x66   :  { %164 = vmatprep.subr.mxu0 %v135_v9  ;;  %v117_v27 = vld [vmem:[#allocation7 + $0x28] sm:$0xff]  ;;  %v116_v28 = vld [vmem:[#allocation7 + $0x20] sm:$0xff]  ;;  %v115_v29 = vld [vmem:[#allocation7 + $0x18] sm:$0xff]  ;;  %s1692_s22 = sadd.s32 %s4278_s2, %s1689_s20  ;;  %s1705_s23 = sand.u32 7, %s4895_s6 }
  0x67   :  { %165 = vmatpush1.msra.mxu0 %v134_v10  ;;  %v114_v30 = vld [vmem:[#allocation7 + $0x10] sm:$0xff]  ;;  %v113_v31 = vld [vmem:[#allocation7 + $0x8] sm:$0xff]  ;;  %v112_v32 = vld [vmem:[#allocation7] sm:$0xff]  ;;  %s4279_s24 = sshll.u32 %s1702_s21, 4  ;;  %s1693_s25 = scalar_lea.vmem [#allocation13], %s1692_s22 }
  0x68   :  { %166 = vmatprep.subr.mxu0 %v133_v11  ;;  %v110_v33 = vld [vmem:[#allocation5] sm:$0xff]  ;;  %v111_v34 = vld [vmem:[#allocation5 + $0x8] sm:$0xff]  ;;  %v144_v39 = vld [vmem:[#allocation12] sm:$0x3]  ;;  %s1708_s26 = sadd.s32 %s4279_s24, %s1705_s23  ;;  %s1715_s4 = sshra.s32 %s4897_s8, 3 }
  0x69   :  { %167 = vmatpush1.msra.mxu0 %v132_v12  ;;  %v149_v40 = vrot.slane %v144_v39, %v4749_v37  ;;  %v153_v41 = vrot.slane %v144_v39, %v4752_v38  ;;  %v389_v52 = vld [vmem:[#allocation9 + $0x5a8] sm:$0xff]  ;;  %v388_v53 = vld [vmem:[#allocation9 + $0x5a0] sm:$0xff]  ;;  %v391_v54 = vld [vmem:[#allocation9 + $0x5b8] sm:$0xff]  ;;  %s1718_s27 = sand.u32 7, %s4897_s8  ;;  %s1709_s28 = scalar_lea.vmem [#allocation13], %s1708_s26 }
  0x6a   :  { %168 = vmatprep.subr.mxu0 %v131_v13  ;;  %522 = vmatprep.subr.mxu1 %v389_v52  ;;  %v383_v55 = vld [vmem:[#allocation9 + $0x548] sm:$0xff]  ;;  %v390_v56 = vld [vmem:[#allocation9 + $0x5b0] sm:$0xff]  ;;  %v382_v57 = vld [vmem:[#allocation9 + $0x540] sm:$0xff]  ;;  %s4280_s29 = sshll.u32 %s1715_s4, 4  ;;  %s1728_s30 = sshra.s32 %s4899_s9, 3 }
  0x6b   :  { %169 = vmatpush1.msra.mxu0 %v130_v14  ;;  %523 = vmatpush1.msra.mxu1 %v388_v53  ;;  %v385_v58 = vld [vmem:[#allocation9 + $0x558] sm:$0xff]  ;;  %v377_v59 = vld [vmem:[#allocation9 + $0x4e8] sm:$0xff]  ;;  %v384_v60 = vld [vmem:[#allocation9 + $0x550] sm:$0xff]  ;;  %s1721_s0 = sadd.s32 %s4280_s29, %s1718_s27  ;;  %s1731_s10 = sand.u32 7, %s4899_s9 }
  0x6c   :  { %170 = vmatprep.subr.mxu0 %v129_v15  ;;  %524 = vmatprep.subr.mxu1 %v383_v55  ;;  %v376_v61 = vld [vmem:[#allocation9 + $0x4e0] sm:$0xff]  ;;  %v379_v62 = vld [vmem:[#allocation9 + $0x4f8] sm:$0xff]  ;;  %v371_v63 = vld [vmem:[#allocation9 + $0x488] sm:$0xff]  ;;  %s4281_s11 = sshll.u32 %s1728_s30, 4  ;;  %s1722_s1 = scalar_lea.vmem [#allocation13], %s1721_s0 }
  0x6d   :  { %171 = vmatpush1.msra.mxu0 %v128_v16  ;;  %525 = vmatpush1.msra.mxu1 %v382_v57  ;;  %v378_v1 = vld [vmem:[#allocation9 + $0x4f0] sm:$0xff]  ;;  %v373_v2 = vld [vmem:[#allocation9 + $0x498] sm:$0xff]  ;;  %v370_v3 = vld [vmem:[#allocation9 + $0x480] sm:$0xff]  ;;  %s1734_s12 = sadd.s32 %s4281_s11, %s1731_s10  ;;  %s1741_s13 = sshra.s32 %s4901_s17, 3 }
  0x6e   :  { %172 = vmatprep.subr.mxu0 %v127_v17  ;;  %526 = vmatprep.subr.mxu1 %v377_v59  ;;  %v372_v4 = vld [vmem:[#allocation9 + $0x490] sm:$0xff]  ;;  %v365_v5 = vld [vmem:[#allocation9 + $0x428] sm:$0xff]  ;;  %v367_v6 = vld [vmem:[#allocation9 + $0x438] sm:$0xff]  ;;  %s1744_s14 = sand.u32 7, %s4901_s17  ;;  %s1735_s15 = scalar_lea.vmem [#allocation13], %s1734_s12 }
  0x6f   :  { %173 = vmatpush1.msra.mxu0 %v126_v18  ;;  %527 = vmatpush1.msra.mxu1 %v376_v61  ;;  %v364_v7 = vld [vmem:[#allocation9 + $0x420] sm:$0xff]  ;;  %v366_v8 = vld [vmem:[#allocation9 + $0x430] sm:$0xff]  ;;  %v359_v9 = vld [vmem:[#allocation9 + $0x3c8] sm:$0xff]  ;;  %s4282_s3 = sshll.u32 %s1741_s13, 4  ;;  %s1754_s16 = sshra.s32 %s4903_s18, 3 }
  0x70   :  { %174 = vmatprep.subr.mxu0 %v125_v19  ;;  %528 = vmatprep.subr.mxu1 %v371_v63  ;;  %v361_v10 = vld [vmem:[#allocation9 + $0x3d8] sm:$0xff]  ;;  %v358_v11 = vld [vmem:[#allocation9 + $0x3c0] sm:$0xff]  ;;  %v360_v12 = vld [vmem:[#allocation9 + $0x3d0] sm:$0xff]  ;;  %s1747_s5 = sadd.s32 %s4282_s3, %s1744_s14  ;;  %s1757_s6 = sand.u32 7, %s4903_s18 }
  0x71   :  { %175 = vmatpush1.msra.mxu0 %v124_v20  ;;  %529 = vmatpush1.msra.mxu1 %v370_v3  ;;  %v353_v13 = vld [vmem:[#allocation9 + $0x368] sm:$0xff]  ;;  %v355_v14 = vld [vmem:[#allocation9 + $0x378] sm:$0xff]  ;;  %v352_v15 = vld [vmem:[#allocation9 + $0x360] sm:$0xff]  ;;  %s4283_s8 = sshll.u32 %s1754_s16, 4  ;;  %s1748_s9 = scalar_lea.vmem [#allocation13], %s1747_s5 }
  0x72   :  { %176 = vmatprep.subr.mxu0 %v123_v21  ;;  %530 = vmatprep.subr.mxu1 %v365_v5  ;;  %v354_v16 = vld [vmem:[#allocation9 + $0x370] sm:$0xff]  ;;  %v347_v17 = vld [vmem:[#allocation9 + $0x308] sm:$0xff]  ;;  %v349_v18 = vld [vmem:[#allocation9 + $0x318] sm:$0xff]  ;;  %s1760_s17 = sadd.s32 %s4283_s8, %s1757_s6  ;;  %s4260_s19 = sld [smem:[#allocation4 + $0x6]] }
  0x73   :  { %177 = vmatpush1.msra.mxu0 %v122_v22  ;;  %531 = vmatpush1.msra.mxu1 %v364_v7  ;;  %v346_v19 = vld [vmem:[#allocation9 + $0x300] sm:$0xff]  ;;  %v348_v20 = vld [vmem:[#allocation9 + $0x310] sm:$0xff]  ;;  %v341_v21 = vld [vmem:[#allocation9 + $0x2a8] sm:$0xff]  ;;  %s4930_s20 = sld [smem:[#allocation4 + $0x7]]  ;;  %s1761_s2 = scalar_lea.vmem [#allocation13], %s1760_s17 }
  0x74   :  { %178 = vmatprep.subr.mxu0 %v121_v23  ;;  %532 = vmatprep.subr.mxu1 %v359_v9  ;;  %v343_v22 = vld [vmem:[#allocation9 + $0x2b8] sm:$0xff]  ;;  %v340_v23 = vld [vmem:[#allocation9 + $0x2a0] sm:$0xff]  ;;  %v312_v52 = vld [vmem:[#allocation9 + $0xd0] sm:$0xff]  ;;  %s4270_s29 = sld [smem:[#allocation4 + $0x80]] }
  0x75   :  { %179 = vmatpush1.msra.mxu0 %v120_v24  ;;  %533 = vmatpush1.msra.mxu1 %v358_v11  ;;  %v342_v24 = vld [vmem:[#allocation9 + $0x2b0] sm:$0xff]  ;;  %v322_v39 = vld [vmem:[#allocation9 + $0x180] sm:$0xff]  ;;  %v305_v53 = vld [vmem:[#allocation9 + $0x68] sm:$0xff]  ;;  %s4272_s30 = sld [smem:[#allocation4 + $0x82]] }
  0x76   :  { %180 = vmatprep.subr.mxu0 %v119_v25  ;;  %534 = vmatprep.subr.mxu1 %v353_v13  ;;  %v335_v25 = vld [vmem:[#allocation9 + $0x248] sm:$0xff]  ;;  %v304_v55 = vld [vmem:[#allocation9 + $0x60] sm:$0xff]  ;;  %v481_v3 = vld [vmem:[#allocation9 + $0xb58] sm:$0xff]  ;;  %s4274_s0 = sld [smem:[#allocation4 + $0x84]] }
  0x77   :  { %181 = vmatpush1.msra.mxu0 %v118_v26  ;;  %535 = vmatpush1.msra.mxu1 %v352_v15  ;;  %v337_v26 = vld [vmem:[#allocation9 + $0x258] sm:$0xff]  ;;  %v299_v57 = vld [vmem:[#allocation9 + $0x8] sm:$0xff]  ;;  %v298_v59 = vld [vmem:[#allocation9] sm:$0xff]  ;;  %s4276_s10 = sld [smem:[#allocation4 + $0x86]] }
  0x78   :  { %182 = vmatprep.subr.mxu0 %v117_v27  ;;  %536 = vmatprep.subr.mxu1 %v347_v17  ;;  %v334_v27 = vld [vmem:[#allocation9 + $0x240] sm:$0xff]  ;;  %v485_v61 = vld [vmem:[#allocation9 + $0xba8] sm:$0xff]  ;;  %v480_v5 = vld [vmem:[#allocation9 + $0xb50] sm:$0xff]  ;;  %s1767_s18 = sshra.s32 %s4260_s19, 3  ;;  %s1770_s21 = sand.u32 7, %s4260_s19 }
  0x79   :  { %183 = vmatpush1.msra.mxu0 %v116_v28  ;;  %537 = vmatpush1.msra.mxu1 %v346_v19  ;;  %v336_v28 = vld [vmem:[#allocation9 + $0x250] sm:$0xff]  ;;  %v484_v63 = vld [vmem:[#allocation9 + $0xba0] sm:$0xff]  ;;  %v475_v7 = vld [vmem:[#allocation9 + $0xaf8] sm:$0xff]  ;;  %s4284_s22 = sshll.u32 %s1767_s18, 4  ;;  %s1780_s23 = sshra.s32 %s4930_s20, 3 }
  0x7a   :  { %184 = vmatprep.subr.mxu0 %v115_v29  ;;  %538 = vmatprep.subr.mxu1 %v341_v21  ;;  %v329_v29 = vld [vmem:[#allocation9 + $0x1e8] sm:$0xff]  ;;  %v474_v9 = vld [vmem:[#allocation9 + $0xaf0] sm:$0xff]  ;;  %v469_v11 = vld [vmem:[#allocation9 + $0xa98] sm:$0xff]  ;;  %s1773_s24 = sadd.s32 %s4284_s22, %s1770_s21  ;;  %s4285_s26 = sshll.u32 %s1780_s23, 4 }
  0x7b   :  { %185 = vmatpush1.msra.mxu0 %v114_v30  ;;  %539 = vmatpush1.msra.mxu1 %v340_v23  ;;  %v331_v30 = vld [vmem:[#allocation9 + $0x1f8] sm:$0xff]  ;;  %s1774_s4 = scalar_lea.vmem [#allocation13], %s1773_s24  ;;  %s4271_s12 = sld [smem:[#allocation4 + $0x81]] }
  0x7c   :  { %186 = vmatprep.subr.mxu0 %v113_v31  ;;  %540 = vmatprep.subr.mxu1 %v335_v25  ;;  %v328_v31 = vld [vmem:[#allocation9 + $0x1e0] sm:$0xff]  ;;  %s4273_s13 = sld [smem:[#allocation4 + $0x83]] }
  0x7d   :  { %187 = vmatpush1.msra.mxu0 %v112_v32  ;;  %v330_v32 = vld [vmem:[#allocation9 + $0x1f0] sm:$0xff]  ;;  %541 = vmatpush1.msra.mxu1 %v334_v27  ;;  %v461_v27 = vld [vmem:[#allocation9 + $0xa28] sm:$0xff]  ;;  %s4275_s14 = sld [smem:[#allocation4 + $0x85]] }
  0x7e   :  { %221 = vmatmul.mubr.f32.vlgmr.msra.gmra.mxu0 %v110_v33  ;;  %599 = vmatprep.subr.mxu0 %v391_v54  ;;  %v323_v33 = vld [vmem:[#allocation9 + $0x188] sm:$0xff]  ;;  %v307_v54 = vld [vmem:[#allocation9 + $0x78] sm:$0xff] }
  0x7f   :  { %226 = vmatprep.mubr.f32.mxu0 %v4672_v0  ;;  %600 = vmatpush1.msra.mxu0 %v390_v56  ;;  %v306_v56 = vld [vmem:[#allocation9 + $0x70] sm:$0xff] }
  0x80   :  { %601 = vmatprep.subr.mxu0 %v385_v58  ;;  %542 = vmatprep.subr.mxu1 %v329_v29  ;;  %v301_v58 = vld [vmem:[#allocation9 + $0x18] sm:$0xff]  ;;  %v460_v29 = vld [vmem:[#allocation9 + $0xa20] sm:$0xff] }
  0x81   :  { %602 = vmatpush1.msra.mxu0 %v384_v60  ;;  %543 = vmatpush1.msra.mxu1 %v328_v31  ;;  %v300_v60 = vld [vmem:[#allocation9 + $0x10] sm:$0xff]  ;;  %v455_v31 = vld [vmem:[#allocation9 + $0x9c8] sm:$0xff] }
  0x82   :  { %227 = vmatmul.mubr.f32.gmra.mxu0 %v111_v34  ;;  %603 = vmatprep.subr.mxu0 %v379_v62  ;;  %v325_v34 = vld [vmem:[#allocation9 + $0x198] sm:$0xff] }
  0x83   :  { %604 = vmatpush1.msra.mxu0 %v378_v1  ;;  %544 = vmatprep.subr.mxu1 %v323_v33  ;;  %v487_v62 = vld [vmem:[#allocation9 + $0xbb8] sm:$0xff]  ;;  %v486_v1 = vld [vmem:[#allocation9 + $0xbb0] sm:$0xff]  ;;  %v454_v33 = vld [vmem:[#allocation9 + $0x9c0] sm:$0xff] }
  0x84   :  { %605 = vmatprep.subr.mxu0 %v373_v2  ;;  %545 = vmatpush1.msra.mxu1 %v322_v39  ;;  %v479_v2 = vld [vmem:[#allocation9 + $0xb48] sm:$0xff] }
  0x85   :  { %606 = vmatpush1.msra.mxu0 %v372_v4  ;;  %v478_v4 = vld [vmem:[#allocation9 + $0xb40] sm:$0xff]  ;;  %v449_v39 = vld [vmem:[#allocation9 + $0x968] sm:$0xff] }
  0x86   :  { %607 = vmatprep.subr.mxu0 %v367_v6  ;;  %v473_v6 = vld [vmem:[#allocation9 + $0xae8] sm:$0xff] }
  0x87   :  { %608 = vmatpush1.msra.mxu0 %v366_v8  ;;  %v472_v8 = vld [vmem:[#allocation9 + $0xae0] sm:$0xff] }
  0x88   :  { %609 = vmatprep.subr.mxu0 %v361_v10  ;;  %v467_v10 = vld [vmem:[#allocation9 + $0xa88] sm:$0xff] }
  0x89   :  { %610 = vmatpush1.msra.mxu0 %v360_v12  ;;  %v466_v12 = vld [vmem:[#allocation9 + $0xa80] sm:$0xff] }
  0x8a   :  { %611 = vmatprep.subr.mxu0 %v355_v14 }
  0x8b   :  { %612 = vmatpush1.msra.mxu0 %v354_v16 }
  0x8c   :  { %613 = vmatprep.subr.mxu0 %v349_v18 }
  0x8d   :  { %614 = vmatpush1.msra.mxu0 %v348_v20 }
  0x8e   :  { %615 = vmatprep.subr.mxu0 %v343_v22 }
  0x8f   :  { %616 = vmatpush1.msra.mxu0 %v342_v24 }
  0x90   :  { %617 = vmatprep.subr.mxu0 %v337_v26 }
  0x91   :  { %618 = vmatpush1.msra.mxu0 %v336_v28  ;;  %v468_v28 = vld [vmem:[#allocation9 + $0xa90] sm:$0xff] }
  0x92   :  { %619 = vmatprep.subr.mxu0 %v331_v30  ;;  %v463_v30 = vld [vmem:[#allocation9 + $0xa38] sm:$0xff] }
  0x93   :  { %620 = vmatpush1.msra.mxu0 %v330_v32  ;;  %v462_v32 = vld [vmem:[#allocation9 + $0xa30] sm:$0xff] }
  0x94   :  { %621 = vmatprep.subr.mxu0 %v325_v34  ;;  %v457_v34 = vld [vmem:[#allocation9 + $0x9d8] sm:$0xff] }
 0x13e   :  { %v222_v42 = vpop.f32.mrf.mxu0 }
 0x13f   :  { %v4756_v44 = vadd.f32 %v222_v42, %v149_v40  ;;  %v319_v42 = vld [vmem:[#allocation9 + $0x138] sm:$0xff] }
 0x140   :  { %v224_v43 = vpop.f32.mrf.mxu0 }
 0x141   :  { %v4758_v45 = vadd.f32 %v224_v43, %v153_v41  ;;  %v316_v43 = vld [vmem:[#allocation9 + $0x120] sm:$0xff] }
 0x142   :  { %v228_v46 = vpop.f32.mrf.mxu0 }
 0x143   :  { %v235_v47 = vadd.f32 %v4758_v45, %v4756_v44  ;;  %v4762_v49 = vadd.f32 %v228_v46, %v149_v40  ;;  %v324_v40 = vld [vmem:[#allocation9 + $0x190] sm:$0xff] }
 0x144   :  { %v230_v48 = vpop.f32.mrf.mxu0  ;;  %v318_v46 = vld [vmem:[#allocation9 + $0x130] sm:$0xff]  ;;  %622 = vmatpush1.msra.mxu0 %v324_v40 }
 0x145   :  { %v4764_v50 = vadd.f32 %v230_v48, %v153_v41  ;;  %236 = vadd.xlane.f32.xlu0 %v235_v47  ;;  %v317_v41 = vld [vmem:[#allocation9 + $0x128] sm:$0xff]  ;;  %v313_v48 = vld [vmem:[#allocation9 + $0xd8] sm:$0xff]  ;;  %623 = vmatprep.subr.mxu0 %v319_v42  ;;  %v456_v40 = vld [vmem:[#allocation9 + $0x9d0] sm:$0xff] }
 0x146   :  { %v311_v47 = vld [vmem:[#allocation9 + $0xc8] sm:$0xff]  ;;  %546 = vmatprep.subr.mxu1 %v317_v41  ;;  %624 = vmatpush1.msra.mxu0 %v318_v46  ;;  %v448_v41 = vld [vmem:[#allocation9 + $0x960] sm:$0xff]  ;;  %v451_v42 = vld [vmem:[#allocation9 + $0x978] sm:$0xff] }
 0x147   :  { %v238_v51 = vadd.f32 %v4764_v50, %v4762_v49  ;;  %547 = vmatpush1.msra.mxu1 %v316_v43  ;;  %625 = vmatprep.subr.mxu0 %v313_v48  ;;  %v443_v43 = vld [vmem:[#allocation9 + $0x908] sm:$0xff]  ;;  %v450_v46 = vld [vmem:[#allocation9 + $0x970] sm:$0xff]  ;;  %v445_v48 = vld [vmem:[#allocation9 + $0x918] sm:$0xff] }
 0x148   :  { %548 = vmatprep.subr.mxu1 %v311_v47  ;;  %626 = vmatpush1.msra.mxu0 %v312_v52  ;;  %v442_v47 = vld [vmem:[#allocation9 + $0x900] sm:$0xff]  ;;  %v444_v52 = vld [vmem:[#allocation9 + $0x910] sm:$0xff] }
 0x149   :  { %239 = vadd.xlane.f32.xlu0 %v238_v51  ;;  %v310_v51 = vld [vmem:[#allocation9 + $0xc0] sm:$0xff]  ;;  %627 = vmatprep.subr.mxu0 %v307_v54  ;;  %v439_v54 = vld [vmem:[#allocation9 + $0x8b8] sm:$0xff] }
 0x14a   :  { %549 = vmatpush1.msra.mxu1 %v310_v51  ;;  %628 = vmatpush1.msra.mxu0 %v306_v56  ;;  %v437_v51 = vld [vmem:[#allocation9 + $0x8a8] sm:$0xff]  ;;  %v438_v56 = vld [vmem:[#allocation9 + $0x8b0] sm:$0xff] }
 0x14b   :  { %550 = vmatprep.subr.mxu1 %v305_v53  ;;  %629 = vmatprep.subr.mxu0 %v301_v58  ;;  %v436_v53 = vld [vmem:[#allocation9 + $0x8a0] sm:$0xff]  ;;  %v433_v58 = vld [vmem:[#allocation9 + $0x858] sm:$0xff] }
 0x14c   :  { %551 = vmatpush1.msra.mxu1 %v304_v55  ;;  %630 = vmatpush1.msra.mxu0 %v300_v60  ;;  %v431_v55 = vld [vmem:[#allocation9 + $0x848] sm:$0xff]  ;;  %v432_v60 = vld [vmem:[#allocation9 + $0x850] sm:$0xff] }
 0x14d   :  { %552 = vmatprep.subr.mxu1 %v299_v57  ;;  %631 = vmatprep.subr.mxu0 %v487_v62  ;;  %v430_v57 = vld [vmem:[#allocation9 + $0x840] sm:$0xff]  ;;  %v427_v62 = vld [vmem:[#allocation9 + $0x7f8] sm:$0xff] }
 0x14e   :  { %553 = vmatpush1.msra.mxu1 %v298_v59  ;;  %632 = vmatpush2.msra.mxu0 %v486_v1  ;;  %v425_v59 = vld [vmem:[#allocation9 + $0x7e8] sm:$0xff]  ;;  %v426_v1 = vld [vmem:[#allocation9 + $0x7f0] sm:$0xff] }
 0x14f   :  { %554 = vmatprep.subr.mxu1 %v485_v61  ;;  %633 = vmatprep.subr.mxu0 %v481_v3  ;;  %v424_v61 = vld [vmem:[#allocation9 + $0x7e0] sm:$0xff]  ;;  %v421_v3 = vld [vmem:[#allocation9 + $0x798] sm:$0xff] }
 0x150   :  { %555 = vmatpush2.msra.mxu1 %v484_v63  ;;  %634 = vmatpush2.msra.mxu0 %v480_v5  ;;  %v419_v63 = vld [vmem:[#allocation9 + $0x788] sm:$0xff]  ;;  %v420_v5 = vld [vmem:[#allocation9 + $0x790] sm:$0xff] }
 0x151   :  { %556 = vmatprep.subr.mxu1 %v479_v2  ;;  %635 = vmatprep.subr.mxu0 %v475_v7  ;;  %v418_v2 = vld [vmem:[#allocation9 + $0x780] sm:$0xff]  ;;  %v415_v7 = vld [vmem:[#allocation9 + $0x738] sm:$0xff] }
 0x152   :  { %557 = vmatpush2.msra.mxu1 %v478_v4  ;;  %636 = vmatpush2.msra.mxu0 %v474_v9  ;;  %v413_v4 = vld [vmem:[#allocation9 + $0x728] sm:$0xff]  ;;  %v414_v9 = vld [vmem:[#allocation9 + $0x730] sm:$0xff] }
 0x153   :  { %558 = vmatprep.subr.mxu1 %v473_v6  ;;  %637 = vmatprep.subr.mxu0 %v469_v11  ;;  %v412_v6 = vld [vmem:[#allocation9 + $0x720] sm:$0xff]  ;;  %v409_v11 = vld [vmem:[#allocation9 + $0x6d8] sm:$0xff] }
 0x154   :  { %559 = vmatpush2.msra.mxu1 %v472_v8  ;;  %638 = vmatpush2.msra.mxu0 %v468_v28  ;;  %v407_v8 = vld [vmem:[#allocation9 + $0x6c8] sm:$0xff] }
 0x155   :  { %560 = vmatprep.subr.mxu1 %v467_v10  ;;  %639 = vmatprep.subr.mxu0 %v463_v30  ;;  %v406_v10 = vld [vmem:[#allocation9 + $0x6c0] sm:$0xff] }
 0x156   :  { %561 = vmatpush2.msra.mxu1 %v466_v12  ;;  %640 = vmatpush2.msra.mxu0 %v462_v32  ;;  %v401_v12 = vld [vmem:[#allocation9 + $0x668] sm:$0xff]  ;;  %v233_v32 = vld [vmem:[#allocation12 + $0x2] sm:$0x3] }
 0x157   :  { %562 = vmatprep.subr.mxu1 %v461_v27  ;;  %641 = vmatprep.subr.mxu0 %v457_v34  ;;  %v276_v34 = vrot.slane %v233_v32, %v4752_v38 }
 0x158   :  { %563 = vmatpush2.msra.mxu1 %v460_v29  ;;  %642 = vmatpush2.msra.mxu0 %v456_v40 }
 0x159   :  { %564 = vmatprep.subr.mxu1 %v455_v31  ;;  %643 = vmatprep.subr.mxu0 %v451_v42 }
 0x15a   :  { %565 = vmatpush2.msra.mxu1 %v454_v33  ;;  %644 = vmatpush2.msra.mxu0 %v450_v46  ;;  %v234_v33 = vld [vmem:[#allocation12 + $0x4] sm:$0x3] }
 0x15b   :  { %566 = vmatprep.subr.mxu1 %v449_v39  ;;  %645 = vmatprep.subr.mxu0 %v445_v48  ;;  %v272_v39 = vrot.slane %v233_v32, %v4749_v37  ;;  %v291_v42 = vrot.slane %v234_v33, %v4752_v38  ;;  %v287_v46 = vrot.slane %v234_v33, %v4749_v37  ;;  %v477_v32 = vld [vmem:[#allocation9 + $0xb08] sm:$0xff]  ;;  %v476_v33 = vld [vmem:[#allocation9 + $0xb00] sm:$0xff] }
 0x15c   :  { %567 = vmatpush2.msra.mxu1 %v448_v41  ;;  %646 = vmatpush2.msra.mxu0 %v444_v52 }
 0x15d   :  { %568 = vmatprep.subr.mxu1 %v443_v43  ;;  %647 = vmatprep.subr.mxu0 %v439_v54 }
 0x15e   :  { %569 = vmatpush2.msra.mxu1 %v442_v47  ;;  %648 = vmatpush2.msra.mxu0 %v438_v56  ;;  %v392_v56 = vld [vmem:[#allocation9 + $0x5c0] sm:$0xff] }
 0x15f   :  { %570 = vmatprep.subr.mxu1 %v437_v51  ;;  %649 = vmatprep.subr.mxu0 %v433_v58 }
 0x160   :  { %571 = vmatpush2.msra.mxu1 %v436_v53  ;;  %650 = vmatpush2.msra.mxu0 %v432_v60  ;;  %v381_v60 = vld [vmem:[#allocation9 + $0x508] sm:$0xff] }
 0x161   :  { %572 = vmatprep.subr.mxu1 %v431_v55  ;;  %651 = vmatprep.subr.mxu0 %v427_v62  ;;  %v374_v62 = vld [vmem:[#allocation9 + $0x4a0] sm:$0xff] }
 0x162   :  { %573 = vmatpush2.msra.mxu1 %v430_v57  ;;  %652 = vmatpush2.msra.mxu0 %v426_v1  ;;  %v368_v1 = vld [vmem:[#allocation9 + $0x440] sm:$0xff] }
 0x163   :  { %574 = vmatprep.subr.mxu1 %v425_v59  ;;  %653 = vmatprep.subr.mxu0 %v421_v3  ;;  %v362_v3 = vld [vmem:[#allocation9 + $0x3e0] sm:$0xff] }
 0x164   :  { %575 = vmatpush2.msra.mxu1 %v424_v61  ;;  %654 = vmatpush2.msra.mxu0 %v420_v5  ;;  %v356_v5 = vld [vmem:[#allocation9 + $0x380] sm:$0xff] }
 0x165   :  { %576 = vmatprep.subr.mxu1 %v419_v63  ;;  %655 = vmatprep.subr.mxu0 %v415_v7  ;;  %v369_v63 = vld [vmem:[#allocation9 + $0x448] sm:$0xff]  ;;  %v350_v7 = vld [vmem:[#allocation9 + $0x320] sm:$0xff] }
 0x166   :  { %577 = vmatpush2.msra.mxu1 %v418_v2  ;;  %656 = vmatpush2.msra.mxu0 %v414_v9  ;;  %v363_v2 = vld [vmem:[#allocation9 + $0x3e8] sm:$0xff]  ;;  %v344_v9 = vld [vmem:[#allocation9 + $0x2c0] sm:$0xff] }
 0x167   :  { %578 = vmatprep.subr.mxu1 %v413_v4  ;;  %657 = vmatprep.subr.mxu0 %v409_v11  ;;  %v357_v4 = vld [vmem:[#allocation9 + $0x388] sm:$0xff]  ;;  %v338_v11 = vld [vmem:[#allocation9 + $0x260] sm:$0xff] }
 0x168   :  { %579 = vmatpush2.msra.mxu1 %v412_v6  ;;  %v351_v6 = vld [vmem:[#allocation9 + $0x328] sm:$0xff] }
 0x169   :  { %580 = vmatprep.subr.mxu1 %v407_v8  ;;  %v345_v8 = vld [vmem:[#allocation9 + $0x2c8] sm:$0xff] }
 0x16a   :  { %581 = vmatpush2.msra.mxu1 %v406_v10  ;;  %v339_v10 = vld [vmem:[#allocation9 + $0x268] sm:$0xff] }
 0x16b   :  { %582 = vmatprep.subr.mxu1 %v401_v12  ;;  %v333_v12 = vld [vmem:[#allocation9 + $0x208] sm:$0xff] }
 0x1ce   :  { %v237_v13 = vpop.xlane.xlu0 %236 }
 0x1cf   :  { %v242_v14 = vmul.f32 0.00390625, %v237_v13  ;;  %v408_v13 = vld [vmem:[#allocation9 + $0x6d0] sm:$0xff] }
 0x1d0   :  { %658 = vmatpush2.msra.mxu0 %v408_v13  ;;  %v332_v13 = vld [vmem:[#allocation9 + $0x200] sm:$0xff] }
 0x1d1   :  { %v4769_v15 = vsub.f32 %v4756_v44, %v242_v14  ;;  %v4772_v16 = vsub.f32 %v4758_v45, %v242_v14  ;;  %v400_v14 = vld [vmem:[#allocation9 + $0x660] sm:$0xff] }
 0x1d2   :  { %v240_v17 = vpop.xlane.xlu0 %239  ;;  %583 = vmatpush2.msra.mxu1 %v400_v14  ;;  %v327_v14 = vld [vmem:[#allocation9 + $0x1a8] sm:$0xff] }
 0x1d3   :  { %v243_v18 = vmul.f32 0.00390625, %v240_v17  ;;  %v248_v19 = vmul.f32 %v4769_v15, %v4769_v15  ;;  %v249_v20 = vmul.f32 %v4772_v16, %v4772_v16  ;;  %v403_v17 = vld [vmem:[#allocation9 + $0x678] sm:$0xff] }
 0x1d4   :  { %659 = vmatprep.subr.mxu0 %v403_v17  ;;  %v326_v17 = vld [vmem:[#allocation9 + $0x1a0] sm:$0xff] }
 0x1d5   :  { %v4779_v21 = vsub.f32 %v4762_v49, %v243_v18  ;;  %v4782_v22 = vsub.f32 %v4764_v50, %v243_v18  ;;  %v252_v23 = vadd.f32 %v249_v20, %v248_v19  ;;  %v395_v18 = vld [vmem:[#allocation9 + $0x608] sm:$0xff]  ;;  %v402_v19 = vld [vmem:[#allocation9 + $0x670] sm:$0xff]  ;;  %v394_v20 = vld [vmem:[#allocation9 + $0x600] sm:$0xff] }
 0x1d6   :  { %584 = vmatprep.subr.mxu1 %v395_v18  ;;  %660 = vmatpush2.msra.mxu0 %v402_v19  ;;  %v321_v18 = vld [vmem:[#allocation9 + $0x148] sm:$0xff]  ;;  %v320_v19 = vld [vmem:[#allocation9 + $0x140] sm:$0xff] }
 0x1d7   :  { %253 = vadd.xlane.f32.xlu1 %v252_v23  ;;  %v250_v24 = vmul.f32 %v4779_v21, %v4779_v21  ;;  %v251_v25 = vmul.f32 %v4782_v22, %v4782_v22  ;;  %v397_v23 = vld [vmem:[#allocation9 + $0x618] sm:$0xff]  ;;  %585 = vmatpush2.msra.mxu1 %v394_v20  ;;  %v315_v20 = vld [vmem:[#allocation9 + $0xe8] sm:$0xff] }
 0x1d8   :  { %661 = vmatprep.subr.mxu0 %v397_v23  ;;  %v314_v23 = vld [vmem:[#allocation9 + $0xe0] sm:$0xff] }
 0x1d9   :  { %v255_v26 = vadd.f32 %v251_v25, %v250_v24  ;;  %v396_v24 = vld [vmem:[#allocation9 + $0x610] sm:$0xff]  ;;  %v393_v25 = vld [vmem:[#allocation9 + $0x5c8] sm:$0xff] }
 0x1da   :  { %662 = vmatpush2.msra.mxu0 %v396_v24  ;;  %676 = vmatprep.subr.mxu1 %v393_v25  ;;  %v309_v24 = vld [vmem:[#allocation9 + $0x88] sm:$0xff]  ;;  %v308_v25 = vld [vmem:[#allocation9 + $0x80] sm:$0xff] }
 0x1db   :  { %256 = vadd.xlane.f32.xlu1 %v255_v26 }
 0x260   :  { %v254_v26 = vpop.xlane.xlu1 %253 }
 0x261   :  { %v258_v27 = vmul.f32 0.00390625, %v254_v26  ;;  %v303_v26 = vld [vmem:[#allocation9 + $0x28] sm:$0xff] }
 0x263   :  { %v260_v28 = vadd.f32 1e-05, %v258_v27  ;;  %v302_v27 = vld [vmem:[#allocation9 + $0x20] sm:$0xff] }
 0x264   :  { %v257_v29 = vpop.xlane.xlu1 %256 }
 0x265   :  { %4453 = vrsqrt.f32 %v260_v28  ;;  %v259_v30 = vmul.f32 0.00390625, %v257_v29  ;;  %v489_v28 = vld [vmem:[#allocation9 + $0xbc8] sm:$0xff]  ;;  %v488_v29 = vld [vmem:[#allocation9 + $0xbc0] sm:$0xff] }
 0x267   :  { %v261_v31 = vadd.f32 1e-05, %v259_v30  ;;  %v483_v30 = vld [vmem:[#allocation9 + $0xb68] sm:$0xff] }
 0x269   :  { %4455 = vrsqrt.f32 %v261_v31  ;;  %v482_v31 = vld [vmem:[#allocation9 + $0xb60] sm:$0xff] }
 0x272   :  { %v4454_v40 = vpop.eup %4453 }
 0x273   :  { %v265_v41 = vmul.f32 %v4454_v40, %v4772_v16  ;;  %v264_v43 = vmul.f32 %v4454_v40, %v4769_v15  ;;  %v387_v16 = vld [vmem:[#allocation9 + $0x568] sm:$0xff]  ;;  %v386_v15 = vld [vmem:[#allocation9 + $0x560] sm:$0xff] }
 0x274   :  { %v465_v40 = vld [vmem:[#allocation9 + $0xa48] sm:$0xff] }
 0x275   :  { %v280_v47 = vmul.f32 %v276_v34, %v265_v41  ;;  %v279_v48 = vmul.f32 %v272_v39, %v264_v43  ;;  %v464_v41 = vld [vmem:[#allocation9 + $0xa40] sm:$0xff] }
 0x276   :  { %v4456_v51 = vpop.eup %4455  ;;  %v458_v43 = vld [vmem:[#allocation9 + $0x9e0] sm:$0xff] }
 0x277   :  { %v295_v52 = vadd.f32 %v291_v42, %v280_v47  ;;  %v4794_v53 = vadd.f32 %v287_v46, %v279_v48  ;;  %v267_v54 = vmul.f32 %v4456_v51, %v4782_v22  ;;  %v266_v55 = vmul.f32 %v4456_v51, %v4779_v21  ;;  %v380_v21 = vld [vmem:[#allocation9 + $0x500] sm:$0xff]  ;;  %v375_v22 = vld [vmem:[#allocation9 + $0x4a8] sm:$0xff] }
 0x278   :  { %v452_v47 = vld [vmem:[#allocation9 + $0x980] sm:$0xff]  ;;  %v447_v48 = vld [vmem:[#allocation9 + $0x928] sm:$0xff] }
 0x279   :  { %586 = vmatprep.mubr.f32.mxu1 %v295_v52  ;;  %663 = vmatprep.mubr.f32.mxu0 %v295_v52  ;;  %v282_v57 = vmul.f32 %v276_v34, %v267_v54  ;;  %v281_v58 = vmul.f32 %v272_v39, %v266_v55  ;;  %v471_v34 = vld [vmem:[#allocation9 + $0xaa8] sm:$0xff]  ;;  %v470_v39 = vld [vmem:[#allocation9 + $0xaa0] sm:$0xff] }
 0x27a   :  { %587 = vmatmul.mubr.f32.vlgmr.msra.gmra.mxu1 %v4794_v53  ;;  %664 = vmatmul.mubr.f32.vlgmr.msra.gmra.mxu0 %v4794_v53  ;;  %v446_v51 = vld [vmem:[#allocation9 + $0x920] sm:$0xff]  ;;  %v435_v55 = vld [vmem:[#allocation9 + $0x868] sm:$0xff] }
 0x27b   :  { %677 = vmatpush1.msra.mxu1 %v392_v56  ;;  %v4800_v59 = vadd.f32 %v291_v42, %v282_v57  ;;  %v4802_v61 = vadd.f32 %v287_v46, %v281_v58  ;;  %v459_v42 = vld [vmem:[#allocation9 + $0x9e8] sm:$0xff]  ;;  %v440_v54 = vld [vmem:[#allocation9 + $0x8c0] sm:$0xff] }
 0x27c   :  { %678 = vmatprep.subr.mxu1 %v387_v16  ;;  %v453_v46 = vld [vmem:[#allocation9 + $0x988] sm:$0xff]  ;;  %v434_v56 = vld [vmem:[#allocation9 + $0x860] sm:$0xff] }
 0x27d   :  { %679 = vmatpush1.msra.mxu1 %v386_v15  ;;  %592 = vmatprep.mubr.f32.mxu1 %v4800_v59  ;;  %v429_v16 = vld [vmem:[#allocation9 + $0x808] sm:$0xff]  ;;  %v428_v57 = vld [vmem:[#allocation9 + $0x800] sm:$0xff] }
 0x27e   :  { %669 = vmatprep.mubr.f32.mxu0 %v4800_v59  ;;  %680 = vmatprep.subr.mxu1 %v381_v60  ;;  %v423_v58 = vld [vmem:[#allocation9 + $0x7a8] sm:$0xff]  ;;  %v422_v15 = vld [vmem:[#allocation9 + $0x7a0] sm:$0xff] }
 0x27f   :  { %593 = vmatmul.mubr.f32.gmra.mxu1 %v4802_v61  ;;  %670 = vmatmul.mubr.f32.gmra.mxu0 %v4802_v61  ;;  %v417_v60 = vld [vmem:[#allocation9 + $0x748] sm:$0xff] }
 0x280   :  { %681 = vmatpush1.msra.mxu1 %v380_v21  ;;  %740 = vmatprep.mubr.f32.mxu1 %v295_v52  ;;  %v441_v52 = vld [vmem:[#allocation9 + $0x8c8] sm:$0xff]  ;;  %v416_v21 = vld [vmem:[#allocation9 + $0x740] sm:$0xff] }
 0x281   :  { %682 = vmatprep.subr.mxu1 %v375_v22  ;;  %v411_v22 = vld [vmem:[#allocation9 + $0x6e8] sm:$0xff] }
 0x282   :  { %683 = vmatpush1.msra.mxu1 %v374_v62  ;;  %v410_v62 = vld [vmem:[#allocation9 + $0x6e0] sm:$0xff] }
 0x283   :  { %684 = vmatprep.subr.mxu1 %v369_v63  ;;  %v405_v63 = vld [vmem:[#allocation9 + $0x688] sm:$0xff] }
 0x284   :  { %685 = vmatpush1.msra.mxu1 %v368_v1  ;;  %v404_v1 = vld [vmem:[#allocation9 + $0x680] sm:$0xff] }
 0x285   :  { %686 = vmatprep.subr.mxu1 %v363_v2  ;;  %v399_v2 = vld [vmem:[#allocation9 + $0x628] sm:$0xff] }
 0x286   :  { %687 = vmatpush1.msra.mxu1 %v362_v3  ;;  %v398_v3 = vld [vmem:[#allocation9 + $0x620] sm:$0xff] }
 0x287   :  { %688 = vmatprep.subr.mxu1 %v357_v4  ;;  %v4811_v4 = vld [vmem:[#allocation12 + $0xa] sm:$0x3f] }
 0x288   :  { %689 = vmatpush1.msra.mxu1 %v356_v5  ;;  %v4814_v5 = vsub.s32 3, %v4746_v36 }
 0x289   :  { %690 = vmatprep.subr.mxu1 %v351_v6  ;;  %v495_v6 = vrot.slane %v4811_v4, %v4749_v37 }
 0x28a   :  { %691 = vmatpush1.msra.mxu1 %v350_v7  ;;  %v507_v7 = vrot.slane %v4811_v4, %v4814_v5 }
 0x28b   :  { %692 = vmatprep.subr.mxu1 %v345_v8 }
 0x28c   :  { %693 = vmatpush1.msra.mxu1 %v344_v9  ;;  %v4821_v9 = vsub.s32 2, %v4746_v36 }
 0x28d   :  { %694 = vmatprep.subr.mxu1 %v339_v10 }
 0x28e   :  { %695 = vmatpush1.msra.mxu1 %v338_v11 }
 0x28f   :  { %696 = vmatprep.subr.mxu1 %v333_v12 }
 0x290   :  { %697 = vmatpush1.msra.mxu1 %v332_v13 }
 0x291   :  { %698 = vmatprep.subr.mxu1 %v327_v14 }
 0x292   :  { %699 = vmatpush1.msra.mxu1 %v326_v17 }
 0x293   :  { %700 = vmatprep.subr.mxu1 %v321_v18 }
 0x294   :  { %701 = vmatpush1.msra.mxu1 %v320_v19 }
 0x295   :  { %702 = vmatprep.subr.mxu1 %v315_v20 }
 0x296   :  { %703 = vmatpush1.msra.mxu1 %v314_v23  ;;  %v510_v23 = vsub.s32 4, %v4746_v36 }
 0x297   :  { %704 = vmatprep.subr.mxu1 %v309_v24 }
 0x298   :  { %705 = vmatpush1.msra.mxu1 %v308_v25 }
 0x299   :  { %706 = vmatprep.subr.mxu1 %v303_v26  ;;  %v511_v26 = vrot.slane %v4811_v4, %v510_v23 }
 0x29a   :  { %707 = vmatpush1.msra.mxu1 %v302_v27 }
 0x29b   :  { %708 = vmatprep.subr.mxu1 %v489_v28 }
 0x29c   :  { %709 = vmatpush2.msra.mxu1 %v488_v29 }
 0x29d   :  { %710 = vmatprep.subr.mxu1 %v483_v30 }
 0x29e   :  { %711 = vmatpush2.msra.mxu1 %v482_v31 }
 0x29f   :  { %712 = vmatprep.subr.mxu1 %v477_v32 }
 0x2a0   :  { %713 = vmatpush2.msra.mxu1 %v476_v33 }
 0x2a1   :  { %714 = vmatprep.subr.mxu1 %v471_v34 }
 0x2a2   :  { %715 = vmatpush2.msra.mxu1 %v470_v39 }
 0x2a3   :  { %716 = vmatprep.subr.mxu1 %v465_v40 }
 0x2a4   :  { %717 = vmatpush2.msra.mxu1 %v464_v41 }
 0x2a5   :  { %718 = vmatprep.subr.mxu1 %v459_v42 }
 0x2a6   :  { %719 = vmatpush2.msra.mxu1 %v458_v43 }
 0x2a7   :  { %720 = vmatprep.subr.mxu1 %v453_v46 }
 0x2a8   :  { %721 = vmatpush2.msra.mxu1 %v452_v47 }
 0x2a9   :  { %722 = vmatprep.subr.mxu1 %v447_v48 }
 0x2aa   :  { %723 = vmatpush2.msra.mxu1 %v446_v51 }
 0x2ab   :  { %724 = vmatprep.subr.mxu1 %v441_v52 }
 0x2ac   :  { %725 = vmatpush2.msra.mxu1 %v440_v54 }
 0x2ad   :  { %726 = vmatprep.subr.mxu1 %v435_v55 }
 0x2ae   :  { %727 = vmatpush2.msra.mxu1 %v434_v56 }
 0x2af   :  { %728 = vmatprep.subr.mxu1 %v429_v16 }
 0x2b0   :  { %729 = vmatpush2.msra.mxu1 %v428_v57 }
 0x2b1   :  { %730 = vmatprep.subr.mxu1 %v423_v58 }
 0x2b2   :  { %731 = vmatpush2.msra.mxu1 %v422_v15  ;;  %v499_v15 = vrot.slane %v4811_v4, %v4752_v38 }
 0x2b3   :  { %732 = vmatprep.subr.mxu1 %v417_v60 }
 0x2b4   :  { %733 = vmatpush2.msra.mxu1 %v416_v21 }
 0x2b5   :  { %734 = vmatprep.subr.mxu1 %v411_v22  ;;  %v514_v22 = vsub.s32 5, %v4746_v36 }
 0x2b6   :  { %735 = vmatpush2.msra.mxu1 %v410_v62 }
 0x2b7   :  { %736 = vmatprep.subr.mxu1 %v405_v63 }
 0x2b8   :  { %737 = vmatpush2.msra.mxu1 %v404_v1 }
 0x2b9   :  { %738 = vmatprep.subr.mxu1 %v399_v2  ;;  %v515_v2 = vrot.slane %v4811_v4, %v514_v22 }
 0x2ba   :  { %739 = vmatpush2.msra.mxu1 %v398_v3 }
 0x2bb   :  { %741 = vmatmul.mubr.f32.vlgmr.msra.gmra.mxu1 %v4794_v53 }
 0x2bc   :  { %746 = vmatprep.mubr.f32.mxu1 %v4800_v59 }
 0x2bf   :  { %747 = vmatmul.mubr.f32.gmra.mxu1 %v4802_v61  ;;  %v503_v61 = vrot.slane %v4811_v4, %v4821_v9 }
 0x33a   :  { %v588_v8 = vpop.f32.mrf.mxu1  ;;  %v665_v53 = vpop.f32.mrf.mxu0 }
 0x33b   :  { %v589_v10 = vadd.f32 %v588_v8, %v495_v6  ;;  %v666_v17 = vadd.f32 %v665_v53, %v503_v61 }
 0x33c   :  { %v667_v59 = vpop.f32.mrf.mxu0  ;;  %v590_v14 = vpop.f32.mrf.mxu1 }
 0x33d   :  { %v4823_v11 = vadd.f32 %v667_v59, %v507_v7  ;;  %4361 = vmatprep.mubr.f32.mxu0 %v589_v10  ;;  %v591_v63 = vadd.f32 %v590_v14, %v499_v15 }
 0x33f   :  { %v671_v12 = vpop.f32.mrf.mxu0  ;;  %v594_v18 = vpop.f32.mrf.mxu1 }
 0x340   :  { %v672_v13 = vadd.f32 %v671_v12, %v503_v61  ;;  %v595_v19 = vadd.f32 %v594_v18, %v495_v6 }
 0x341   :  { %v596_v20 = vpop.f32.mrf.mxu1  ;;  %v673_v29 = vpop.f32.mrf.mxu0 }
 0x342   :  { %4357 = vmatprep.subr.mxu0 %v672_v13  ;;  %v674_v31 = vadd.f32 %v673_v29, %v507_v7  ;;  %v597_v6 = vadd.f32 %v596_v20, %v499_v15  ;;  %v767_v15 = vld [vmem:[#allocation9 + $0x2d0] sm:$0xff] }
 0x343   :  { %4358 = vmatpush3.xpose.msra.mxu0 %v672_v13 }
 0x344   :  { %4359 = vmatprep.subr.mxu0 %v666_v17 }
 0x347   :  { %4360 = vmatpush3.xpose.msra.mxu0 %v666_v17 }
 0x34a   :  { %4362 = vmatmul.mubr.f32.vlgmr.msra.gmra.mxu0 %v595_v19 }
 0x37b   :  { %v742_v24 = vpop.f32.mrf.mxu1 }
 0x37c   :  { %v743_v30 = vadd.f32 %v742_v24, %v511_v26 }
 0x37d   :  { %v744_v25 = vpop.f32.mrf.mxu1 }
 0x37e   :  { %v745_v7 = vadd.f32 %v744_v25, %v515_v2 }
 0x37f   :  { %v748_v27 = vpop.f32.mrf.mxu1 }
 0x380   :  { %v749_v28 = vadd.f32 %v748_v27, %v511_v26 }
 0x381   :  { %v750_v1 = vpop.f32.mrf.mxu1 }
 0x382   :  { %4364 = vmatprep.subr.mxu0 %v749_v28  ;;  %v751_v3 = vadd.f32 %v750_v1, %v515_v2  ;;  %v762_v1 = vld [vmem:[#allocation9 + $0x1b8] sm:$0xff]  ;;  %v761_v2 = vld [vmem:[#allocation9 + $0x1b0] sm:$0xff] }
 0x383   :  { %4365 = vmatpush3.msra.mxu0 %v749_v28  ;;  %v784_v28 = vld [vmem:[#allocation9 + $0x5d8] sm:$0xff] }
 0x384   :  { %4366 = vmatprep.subr.mxu0 %v743_v30 }
 0x385   :  { %4367 = vmatpush3.msra.mxu0 %v743_v30 }
 0x386   :  { %4371 = vmatprep.subr.mxu0 %v674_v31 }
 0x40a   :  { %v4363_v32 = vpop.f32.mrf.mxu0 }
 0x40b   :  { %v894_v33 = vmul.f32 0.088388346, %v4363_v32 }
 0x40c   :  { %v884_v34 = vpop.f32.mrf.mxu0 }
 0x40d   :  { %v893_v39 = vmul.f32 0.088388346, %v884_v34  ;;  %v899_v40 = vsel %vm895_vm0, %v894_v33, -inf }
 0x40e   :  { %900 = vmax.xlane.f32.xlu1 %v899_v40  ;;  %v782_v40 = vld [vmem:[#allocation9 + $0x578] sm:$0xff] }
 0x40f   :  { %v896_v41 = vsel %vm895_vm0, %v893_v39, -inf }
 0x410   :  { %897 = vmax.xlane.f32.xlu0 %v896_v41  ;;  %v781_v41 = vld [vmem:[#allocation9 + $0x570] sm:$0xff] }
 0x497   :  { %v901_v42 = vpop.xlane.xlu1 %900 }
 0x498   :  { %v903_v43 = vsub.f32 %v894_v33, %v901_v42  ;;  %v780_v42 = vld [vmem:[#allocation9 + $0x518] sm:$0xff] }
 0x499   :  { %v898_v46 = vpop.xlane.xlu0 %897 }
 0x49a   :  { %v906_v47 = vmul.f32 1.442695, %v903_v43  ;;  %v902_v48 = vsub.f32 %v893_v39, %v898_v46  ;;  %v783_v39 = vld [vmem:[#allocation9 + $0x5d0] sm:$0xff]  ;;  %v778_v46 = vld [vmem:[#allocation9 + $0x4b8] sm:$0xff] }
 0x49b   :  { %v779_v43 = vld [vmem:[#allocation9 + $0x510] sm:$0xff] }
 0x49c   :  { %4457 = vpow2.f32 %v906_v47  ;;  %v904_v51 = vmul.f32 1.442695, %v902_v48  ;;  %v777_v47 = vld [vmem:[#allocation9 + $0x4b0] sm:$0xff]  ;;  %v776_v48 = vld [vmem:[#allocation9 + $0x458] sm:$0xff] }
 0x49e   :  { %4459 = vpow2.f32 %v904_v51  ;;  %v775_v51 = vld [vmem:[#allocation9 + $0x450] sm:$0xff] }
 0x4a9   :  { %v4458_v52 = vpop.eup %4457 }
 0x4aa   :  { %v911_v54 = vsel %vm895_vm0, %v4458_v52, 0.0 }
 0x4ab   :  { %v4460_v55 = vpop.eup %4459  ;;  %912 = vadd.xlane.f32.xlu1 %v911_v54  ;;  %v773_v54 = vld [vmem:[#allocation9 + $0x3f0] sm:$0xff] }
 0x4ac   :  { %v908_v56 = vsel %vm895_vm0, %v4460_v55, 0.0 }
 0x4ad   :  { %909 = vadd.xlane.f32.xlu0 %v908_v56  ;;  %v771_v56 = vld [vmem:[#allocation9 + $0x390] sm:$0xff] }
 0x534   :  { %v913_v16 = vpop.xlane.xlu1 %912 }
 0x535   :  { %4461 = vrcp.f32 %v913_v16  ;;  %v770_v16 = vld [vmem:[#allocation9 + $0x338] sm:$0xff] }
 0x536   :  { %v910_v57 = vpop.xlane.xlu0 %909 }
 0x537   :  { %4463 = vrcp.f32 %v910_v57  ;;  %v769_v57 = vld [vmem:[#allocation9 + $0x330] sm:$0xff] }
 0x542   :  { %v4462_v58 = vpop.eup %4461 }
 0x543   :  { %v917_v62 = vmul.f32 %v4462_v58, %v4458_v52  ;;  %v774_v52 = vld [vmem:[#allocation9 + $0x3f8] sm:$0xff] }
 0x544   :  { %v4464_v60 = vpop.eup %4463  ;;  %v768_v58 = vld [vmem:[#allocation9 + $0x2d8] sm:$0xff] }
 0x545   :  { %v916_v21 = vmul.f32 %v4464_v60, %v4460_v55  ;;  %v772_v55 = vld [vmem:[#allocation9 + $0x398] sm:$0xff] }
 0x546   :  { %v766_v60 = vld [vmem:[#allocation9 + $0x278] sm:$0xff] }
 0x547   :  { %4368 = vmatprep.mubr.msk.f32.mxu0 %vm895_vm0, %v916_v21  ;;  %v765_v21 = vld [vmem:[#allocation9 + $0x270] sm:$0xff] }
 0x548   :  { %4369 = vmatmul.mubr.msk.f32.vlgmr.msra.gmra.mxu0 %vm895_vm0, %v917_v62  ;;  %v764_v62 = vld [vmem:[#allocation9 + $0x218] sm:$0xff] }
 0x549   :  { %4372 = vmatpush3.xpose.msra.mxu0 %v674_v31  ;;  %4375 = vmatprep.mubr.f32.mxu0 %v591_v63  ;;  %v763_v63 = vld [vmem:[#allocation9 + $0x210] sm:$0xff] }
 0x54a   :  { %4373 = vmatprep.subr.mxu0 %v4823_v11 }
 0x54d   :  { %4374 = vmatpush3.xpose.msra.mxu0 %v4823_v11 }
 0x54e   :  { %4378 = vmatprep.subr.mxu0 %v751_v3 }
 0x550   :  { %4376 = vmatmul.mubr.f32.vlgmr.msra.gmra.mxu0 %v597_v6  ;;  %v759_v6 = vld [vmem:[#allocation9 + $0x150] sm:$0xff] }
 0x551   :  { %4379 = vmatpush3.msra.mxu0 %v751_v3  ;;  %v760_v3 = vld [vmem:[#allocation9 + $0x158] sm:$0xff] }
 0x552   :  { %4380 = vmatprep.subr.mxu0 %v745_v7 }
 0x553   :  { %4381 = vmatpush3.msra.mxu0 %v745_v7  ;;  %v758_v7 = vld [vmem:[#allocation9 + $0xf8] sm:$0xff] }
 0x554   :  { %1190 = vmatprep.subr.mxu0 %v784_v28  ;;  %v805_v28 = vld [vmem:[#allocation9 + $0x9f0] sm:$0xff] }
 0x608   :  { %v4845_v8 = vpop.f32.mrf.mxu0 }
 0x60a   :  { %v4847_v53 = vpop.f32.mrf.mxu0 }
 0x610   :  { %v4377_v10 = vpop.f32.mrf.mxu0 }
 0x611   :  { %v1075_v59 = vmul.f32 0.088388346, %v4377_v10  ;;  %v757_v10 = vld [vmem:[#allocation9 + $0xf0] sm:$0xff] }
 0x612   :  { %v1065_v61 = vpop.f32.mrf.mxu0 }
 0x613   :  { %v1074_v4 = vmul.f32 0.088388346, %v1065_v61  ;;  %v1079_v12 = vsel %vm895_vm0, %v1075_v59, -inf  ;;  %v755_v61 = vld [vmem:[#allocation9 + $0x90] sm:$0xff] }
 0x614   :  { %1080 = vmax.xlane.f32.xlu1 %v1079_v12  ;;  %v753_v12 = vld [vmem:[#allocation9 + $0x30] sm:$0xff] }
 0x615   :  { %v1076_v11 = vsel %vm895_vm0, %v1074_v4, -inf }
 0x616   :  { %1077 = vmax.xlane.f32.xlu0 %v1076_v11  ;;  %v816_v11 = vld [vmem:[#allocation9 + $0xbd8] sm:$0xff] }
 0x69d   :  { %v1081_v13 = vpop.xlane.xlu1 %1080 }
 0x69e   :  { %v1083_v14 = vsub.f32 %v1075_v59, %v1081_v13  ;;  %v756_v59 = vld [vmem:[#allocation9 + $0x98] sm:$0xff]  ;;  %v815_v13 = vld [vmem:[#allocation9 + $0xbd0] sm:$0xff] }
 0x69f   :  { %v1078_v17 = vpop.xlane.xlu0 %1077 }
 0x6a0   :  { %v1086_v18 = vmul.f32 1.442695, %v1083_v14  ;;  %v1082_v19 = vsub.f32 %v1074_v4, %v1078_v17  ;;  %v754_v4 = vld [vmem:[#allocation9 + $0x38] sm:$0xff]  ;;  %v813_v17 = vld [vmem:[#allocation9 + $0xb70] sm:$0xff] }
 0x6a1   :  { %v814_v14 = vld [vmem:[#allocation9 + $0xb78] sm:$0xff] }
 0x6a2   :  { %4465 = vpow2.f32 %v1086_v18  ;;  %v1084_v20 = vmul.f32 1.442695, %v1082_v19  ;;  %v812_v18 = vld [vmem:[#allocation9 + $0xb18] sm:$0xff]  ;;  %v811_v19 = vld [vmem:[#allocation9 + $0xb10] sm:$0xff] }
 0x6a4   :  { %4467 = vpow2.f32 %v1084_v20  ;;  %v810_v20 = vld [vmem:[#allocation9 + $0xab8] sm:$0xff] }
 0x6af   :  { %v4466_v24 = vpop.eup %4465 }
 0x6b0   :  { %v1091_v25 = vsel %vm895_vm0, %v4466_v24, 0.0 }
 0x6b1   :  { %v4468_v26 = vpop.eup %4467  ;;  %1092 = vadd.xlane.f32.xlu1 %v1091_v25  ;;  %v808_v25 = vld [vmem:[#allocation9 + $0xa58] sm:$0xff] }
 0x6b2   :  { %v1088_v27 = vsel %vm895_vm0, %v4468_v26, 0.0 }
 0x6b3   :  { %1089 = vadd.xlane.f32.xlu0 %v1088_v27  ;;  %v806_v27 = vld [vmem:[#allocation9 + $0x9f8] sm:$0xff] }
 0x73a   :  { %v1093_v29 = vpop.xlane.xlu1 %1092 }
 0x73b   :  { %4469 = vrcp.f32 %v1093_v29  ;;  %v804_v29 = vld [vmem:[#allocation9 + $0x998] sm:$0xff] }
 0x73c   :  { %v1090_v30 = vpop.xlane.xlu0 %1089 }
 0x73d   :  { %4471 = vrcp.f32 %v1090_v30  ;;  %v803_v30 = vld [vmem:[#allocation9 + $0x990] sm:$0xff] }
 0x748   :  { %v4470_v31 = vpop.eup %4469 }
 0x749   :  { %v1097_v34 = vmul.f32 %v4470_v31, %v4466_v24  ;;  %v809_v24 = vld [vmem:[#allocation9 + $0xab0] sm:$0xff]  ;;  %v802_v31 = vld [vmem:[#allocation9 + $0x938] sm:$0xff] }
 0x74a   :  { %v4472_v32 = vpop.eup %4471 }
 0x74b   :  { %v1096_v33 = vmul.f32 %v4472_v32, %v4468_v26  ;;  %v807_v26 = vld [vmem:[#allocation9 + $0xa50] sm:$0xff] }
 0x74c   :  { %v801_v32 = vld [vmem:[#allocation9 + $0x930] sm:$0xff] }
 0x74d   :  { %4382 = vmatprep.mubr.msk.f32.mxu0 %vm895_vm0, %v1096_v33  ;;  %v800_v33 = vld [vmem:[#allocation9 + $0x8d8] sm:$0xff] }
 0x74e   :  { %4383 = vmatmul.mubr.msk.f32.vlgmr.msra.gmra.mxu0 %vm895_vm0, %v1097_v34  ;;  %v799_v34 = vld [vmem:[#allocation9 + $0x8d0] sm:$0xff] }
 0x74f   :  { %1191 = vmatpush1.msra.mxu0 %v783_v39  ;;  %v798_v39 = vld [vmem:[#allocation9 + $0x878] sm:$0xff] }
 0x750   :  { %1192 = vmatprep.subr.mxu0 %v782_v40  ;;  %v797_v40 = vld [vmem:[#allocation9 + $0x870] sm:$0xff] }
 0x751   :  { %1193 = vmatpush1.msra.mxu0 %v781_v41  ;;  %v796_v41 = vld [vmem:[#allocation9 + $0x818] sm:$0xff] }
 0x752   :  { %1194 = vmatprep.subr.mxu0 %v780_v42  ;;  %v795_v42 = vld [vmem:[#allocation9 + $0x810] sm:$0xff] }
 0x753   :  { %1195 = vmatpush1.msra.mxu0 %v779_v43  ;;  %v794_v43 = vld [vmem:[#allocation9 + $0x7b8] sm:$0xff] }
 0x754   :  { %1196 = vmatprep.subr.mxu0 %v778_v46  ;;  %v793_v46 = vld [vmem:[#allocation9 + $0x7b0] sm:$0xff] }
 0x755   :  { %1197 = vmatpush1.msra.mxu0 %v777_v47  ;;  %v792_v47 = vld [vmem:[#allocation9 + $0x758] sm:$0xff] }
 0x756   :  { %1198 = vmatprep.subr.mxu0 %v776_v48  ;;  %v791_v48 = vld [vmem:[#allocation9 + $0x750] sm:$0xff] }
 0x757   :  { %1199 = vmatpush1.msra.mxu0 %v775_v51  ;;  %v790_v51 = vld [vmem:[#allocation9 + $0x6f8] sm:$0xff] }
 0x758   :  { %1200 = vmatprep.subr.mxu0 %v774_v52  ;;  %v789_v52 = vld [vmem:[#allocation9 + $0x6f0] sm:$0xff] }
 0x759   :  { %1201 = vmatpush1.msra.mxu0 %v773_v54  ;;  %v788_v54 = vld [vmem:[#allocation9 + $0x698] sm:$0xff] }
 0x75a   :  { %1202 = vmatprep.subr.mxu0 %v772_v55  ;;  %v787_v55 = vld [vmem:[#allocation9 + $0x690] sm:$0xff] }
 0x75b   :  { %1203 = vmatpush1.msra.mxu0 %v771_v56  ;;  %v786_v56 = vld [vmem:[#allocation9 + $0x638] sm:$0xff] }
 0x75c   :  { %1204 = vmatprep.subr.mxu0 %v770_v16  ;;  %v785_v16 = vld [vmem:[#allocation9 + $0x630] sm:$0xff] }
 0x75d   :  { %1205 = vmatpush1.msra.mxu0 %v769_v57 }
 0x75e   :  { %1206 = vmatprep.subr.mxu0 %v768_v58 }
 0x75f   :  { %1207 = vmatpush1.msra.mxu0 %v767_v15  ;;  %v817_v15 = vld [vmem:[#allocation12 + $0x10] sm:$0x3] }
 0x760   :  { %1208 = vmatprep.subr.mxu0 %v766_v60  ;;  %v1183_v60 = vrot.slane %v817_v15, %v4749_v37 }
 0x761   :  { %1209 = vmatpush1.msra.mxu0 %v765_v21  ;;  %v1187_v21 = vrot.slane %v817_v15, %v4752_v38  ;;  %v1392_v15 = vld [vmem:[#allocation9 + $0xac8] sm:$0xff] }
 0x762   :  { %1210 = vmatprep.subr.mxu0 %v764_v62 }
 0x763   :  { %1211 = vmatpush1.msra.mxu0 %v763_v63 }
 0x764   :  { %1212 = vmatprep.subr.mxu0 %v762_v1 }
 0x765   :  { %1213 = vmatpush1.msra.mxu0 %v761_v2 }
 0x766   :  { %1214 = vmatprep.subr.mxu0 %v760_v3 }
 0x767   :  { %1215 = vmatpush1.msra.mxu0 %v759_v6 }
 0x768   :  { %1216 = vmatprep.subr.mxu0 %v758_v7 }
 0x769   :  { %1217 = vmatpush1.msra.mxu0 %v757_v10 }
 0x76a   :  { %1218 = vmatprep.subr.mxu0 %v756_v59 }
 0x76b   :  { %1219 = vmatpush1.msra.mxu0 %v755_v61 }
 0x76c   :  { %1220 = vmatprep.subr.mxu0 %v754_v4 }
 0x76d   :  { %1221 = vmatpush1.msra.mxu0 %v753_v12  ;;  %v1366_v12 = vld [vmem:[#allocation9 + $0x5e8] sm:$0xff] }
 0x76e   :  { %1222 = vmatprep.subr.mxu0 %v816_v11  ;;  %v1364_v11 = vld [vmem:[#allocation9 + $0x588] sm:$0xff]  ;;  %1411 = vmatprep.subr.mxu1 %v1366_v12 }
 0x76f   :  { %1223 = vmatpush2.msra.mxu0 %v815_v13  ;;  %v1363_v13 = vld [vmem:[#allocation9 + $0x580] sm:$0xff] }
 0x770   :  { %1224 = vmatprep.subr.mxu0 %v814_v14  ;;  %v1362_v14 = vld [vmem:[#allocation9 + $0x528] sm:$0xff] }
 0x771   :  { %1225 = vmatpush2.msra.mxu0 %v813_v17  ;;  %v1361_v17 = vld [vmem:[#allocation9 + $0x520] sm:$0xff] }
 0x772   :  { %1226 = vmatprep.subr.mxu0 %v812_v18  ;;  %v1359_v18 = vld [vmem:[#allocation9 + $0x4c0] sm:$0xff] }
 0x773   :  { %1227 = vmatpush2.msra.mxu0 %v811_v19  ;;  %v1357_v19 = vld [vmem:[#allocation9 + $0x460] sm:$0xff] }
 0x774   :  { %1228 = vmatprep.subr.mxu0 %v810_v20  ;;  %v1356_v20 = vld [vmem:[#allocation9 + $0x408] sm:$0xff] }
 0x775   :  { %1229 = vmatpush2.msra.mxu0 %v809_v24  ;;  %v1355_v24 = vld [vmem:[#allocation9 + $0x400] sm:$0xff] }
 0x776   :  { %1230 = vmatprep.subr.mxu0 %v808_v25  ;;  %v1354_v25 = vld [vmem:[#allocation9 + $0x3a8] sm:$0xff] }
 0x777   :  { %1231 = vmatpush2.msra.mxu0 %v807_v26  ;;  %v1353_v26 = vld [vmem:[#allocation9 + $0x3a0] sm:$0xff] }
 0x778   :  { %1232 = vmatprep.subr.mxu0 %v806_v27  ;;  %v1352_v27 = vld [vmem:[#allocation9 + $0x348] sm:$0xff] }
 0x779   :  { %1233 = vmatpush2.msra.mxu0 %v805_v28  ;;  %v1351_v28 = vld [vmem:[#allocation9 + $0x340] sm:$0xff] }
 0x77a   :  { %1234 = vmatprep.subr.mxu0 %v804_v29  ;;  %v1350_v29 = vld [vmem:[#allocation9 + $0x2e8] sm:$0xff] }
 0x77b   :  { %1235 = vmatpush2.msra.mxu0 %v803_v30  ;;  %v1349_v30 = vld [vmem:[#allocation9 + $0x2e0] sm:$0xff] }
 0x77c   :  { %1236 = vmatprep.subr.mxu0 %v802_v31  ;;  %v1348_v31 = vld [vmem:[#allocation9 + $0x288] sm:$0xff] }
 0x77d   :  { %1237 = vmatpush2.msra.mxu0 %v801_v32  ;;  %v1347_v32 = vld [vmem:[#allocation9 + $0x280] sm:$0xff] }
 0x77e   :  { %1238 = vmatprep.subr.mxu0 %v800_v33  ;;  %v1346_v33 = vld [vmem:[#allocation9 + $0x228] sm:$0xff] }
 0x77f   :  { %1239 = vmatpush2.msra.mxu0 %v799_v34  ;;  %v1345_v34 = vld [vmem:[#allocation9 + $0x220] sm:$0xff] }
 0x780   :  { %1240 = vmatprep.subr.mxu0 %v798_v39  ;;  %v1344_v39 = vld [vmem:[#allocation9 + $0x1c8] sm:$0xff] }
 0x781   :  { %1241 = vmatpush2.msra.mxu0 %v797_v40  ;;  %v1343_v40 = vld [vmem:[#allocation9 + $0x1c0] sm:$0xff] }
 0x782   :  { %1242 = vmatprep.subr.mxu0 %v796_v41  ;;  %v1342_v41 = vld [vmem:[#allocation9 + $0x168] sm:$0xff] }
 0x783   :  { %1243 = vmatpush2.msra.mxu0 %v795_v42  ;;  %v1341_v42 = vld [vmem:[#allocation9 + $0x160] sm:$0xff] }
 0x784   :  { %1244 = vmatprep.subr.mxu0 %v794_v43  ;;  %v1340_v43 = vld [vmem:[#allocation9 + $0x108] sm:$0xff] }
 0x785   :  { %1245 = vmatpush2.msra.mxu0 %v793_v46  ;;  %v1339_v46 = vld [vmem:[#allocation9 + $0x100] sm:$0xff] }
 0x786   :  { %1246 = vmatprep.subr.mxu0 %v792_v47  ;;  %v1338_v47 = vld [vmem:[#allocation9 + $0xa8] sm:$0xff] }
 0x787   :  { %1247 = vmatpush2.msra.mxu0 %v791_v48  ;;  %v1337_v48 = vld [vmem:[#allocation9 + $0xa0] sm:$0xff] }
 0x788   :  { %1248 = vmatprep.subr.mxu0 %v790_v51  ;;  %v1336_v51 = vld [vmem:[#allocation9 + $0x48] sm:$0xff] }
 0x789   :  { %1249 = vmatpush2.msra.mxu0 %v789_v52  ;;  %v1335_v52 = vld [vmem:[#allocation9 + $0x40] sm:$0xff] }
 0x78a   :  { %1250 = vmatprep.subr.mxu0 %v788_v54  ;;  %v1398_v54 = vld [vmem:[#allocation9 + $0xbe8] sm:$0xff] }
 0x78b   :  { %1251 = vmatpush2.msra.mxu0 %v787_v55  ;;  %v1397_v55 = vld [vmem:[#allocation9 + $0xbe0] sm:$0xff] }
 0x78c   :  { %1252 = vmatprep.subr.mxu0 %v786_v56  ;;  %v1396_v56 = vld [vmem:[#allocation9 + $0xb88] sm:$0xff] }
 0x78d   :  { %1253 = vmatpush2.msra.mxu0 %v785_v16  ;;  %v1395_v16 = vld [vmem:[#allocation9 + $0xb80] sm:$0xff] }
 0x80e   :  { %v4384_v57 = vpop.f32.mrf.mxu0 }
 0x810   :  { %v1170_v58 = vpop.f32.mrf.mxu0 }
 0x811   :  { %1254 = vmatprep.mubr.f32.mxu0 %v1170_v58  ;;  %v1393_v58 = vld [vmem:[#allocation9 + $0xb20] sm:$0xff] }
 0x812   :  { %1255 = vmatmul.mubr.f32.vlgmr.msra.gmra.mxu0 %v4847_v53 }
 0x813   :  { %1260 = vmatprep.mubr.f32.mxu0 %v4384_v57  ;;  %v1394_v57 = vld [vmem:[#allocation9 + $0xb28] sm:$0xff] }
 0x816   :  { %1261 = vmatmul.mubr.f32.gmra.mxu0 %v4845_v8 }
 0x8d2   :  { %v1256_v62 = vpop.f32.mrf.mxu0 }
 0x8d3   :  { %v1257_v63 = vadd.f32 %v1256_v62, %v1183_v60 }
 0x8d4   :  { %v1258_v1 = vpop.f32.mrf.mxu0 }
 0x8d5   :  { %v1259_v2 = vadd.f32 %v1258_v1, %v1187_v21  ;;  %v4860_v6 = vadd.f32 %v1257_v63, %v4756_v44 }
 0x8d6   :  { %v1262_v3 = vpop.f32.mrf.mxu0 }
 0x8d7   :  { %v4863_v7 = vadd.f32 %v1259_v2, %v4758_v45  ;;  %v1263_v53 = vadd.f32 %v1262_v3, %v1183_v60  ;;  %v1365_v45 = vld [vmem:[#allocation9 + $0x5e0] sm:$0xff] }
 0x8d8   :  { %v1264_v10 = vpop.f32.mrf.mxu0  ;;  %1412 = vmatpush1.msra.mxu1 %v1365_v45 }
 0x8d9   :  { %v1265_v59 = vadd.f32 %v1264_v10, %v1187_v21  ;;  %v1273_v8 = vadd.f32 %v4863_v7, %v4860_v6  ;;  %v4868_v61 = vadd.f32 %v1263_v53, %v4762_v49  ;;  %1413 = vmatprep.subr.mxu1 %v1364_v11  ;;  %v1360_v49 = vld [vmem:[#allocation9 + $0x4c8] sm:$0xff]  ;;  %v1391_v11 = vld [vmem:[#allocation9 + $0xac0] sm:$0xff] }
 0x8da   :  { %1414 = vmatpush1.msra.mxu1 %v1363_v13  ;;  %v1390_v13 = vld [vmem:[#allocation9 + $0xa68] sm:$0xff] }
 0x8db   :  { %v4871_v4 = vadd.f32 %v1265_v59, %v4764_v50  ;;  %1274 = vadd.xlane.f32.xlu0 %v1273_v8  ;;  %1415 = vmatprep.subr.mxu1 %v1362_v14  ;;  %v1358_v50 = vld [vmem:[#allocation9 + $0x468] sm:$0xff]  ;;  %v1389_v14 = vld [vmem:[#allocation9 + $0xa60] sm:$0xff] }
 0x8dc   :  { %1416 = vmatpush1.msra.mxu1 %v1361_v17  ;;  %v1388_v17 = vld [vmem:[#allocation9 + $0xa08] sm:$0xff] }
 0x8dd   :  { %v1276_v44 = vadd.f32 %v4871_v4, %v4868_v61  ;;  %1417 = vmatprep.subr.mxu1 %v1360_v49  ;;  %v1387_v49 = vld [vmem:[#allocation9 + $0xa00] sm:$0xff] }
 0x8de   :  { %1418 = vmatpush1.msra.mxu1 %v1359_v18  ;;  %v1386_v18 = vld [vmem:[#allocation9 + $0x9a8] sm:$0xff] }
 0x8df   :  { %1277 = vadd.xlane.f32.xlu1 %v1276_v44  ;;  %1419 = vmatprep.subr.mxu1 %v1358_v50  ;;  %v1385_v50 = vld [vmem:[#allocation9 + $0x9a0] sm:$0xff] }
 0x8e0   :  { %1420 = vmatpush1.msra.mxu1 %v1357_v19  ;;  %v1384_v19 = vld [vmem:[#allocation9 + $0x948] sm:$0xff] }
 0x8e1   :  { %1421 = vmatprep.subr.mxu1 %v1356_v20  ;;  %v1383_v20 = vld [vmem:[#allocation9 + $0x940] sm:$0xff] }
 0x8e2   :  { %1422 = vmatpush1.msra.mxu1 %v1355_v24  ;;  %v1382_v24 = vld [vmem:[#allocation9 + $0x8e8] sm:$0xff] }
 0x8e3   :  { %1423 = vmatprep.subr.mxu1 %v1354_v25  ;;  %v1381_v25 = vld [vmem:[#allocation9 + $0x8e0] sm:$0xff] }
 0x8e4   :  { %1424 = vmatpush1.msra.mxu1 %v1353_v26  ;;  %v1380_v26 = vld [vmem:[#allocation9 + $0x888] sm:$0xff] }
 0x8e5   :  { %1425 = vmatprep.subr.mxu1 %v1352_v27  ;;  %v1379_v27 = vld [vmem:[#allocation9 + $0x880] sm:$0xff] }
 0x8e6   :  { %1426 = vmatpush1.msra.mxu1 %v1351_v28  ;;  %v1378_v28 = vld [vmem:[#allocation9 + $0x828] sm:$0xff] }
 0x8e7   :  { %1427 = vmatprep.subr.mxu1 %v1350_v29  ;;  %v1377_v29 = vld [vmem:[#allocation9 + $0x820] sm:$0xff] }
 0x8e8   :  { %1428 = vmatpush1.msra.mxu1 %v1349_v30  ;;  %v1376_v30 = vld [vmem:[#allocation9 + $0x7c8] sm:$0xff] }
 0x8e9   :  { %1429 = vmatprep.subr.mxu1 %v1348_v31  ;;  %v1375_v31 = vld [vmem:[#allocation9 + $0x7c0] sm:$0xff] }
 0x8ea   :  { %1430 = vmatpush1.msra.mxu1 %v1347_v32  ;;  %v1374_v32 = vld [vmem:[#allocation9 + $0x768] sm:$0xff] }
 0x8eb   :  { %1431 = vmatprep.subr.mxu1 %v1346_v33  ;;  %v1373_v33 = vld [vmem:[#allocation9 + $0x760] sm:$0xff] }
 0x8ec   :  { %1432 = vmatpush1.msra.mxu1 %v1345_v34  ;;  %v1372_v34 = vld [vmem:[#allocation9 + $0x708] sm:$0xff] }
 0x8ed   :  { %1433 = vmatprep.subr.mxu1 %v1344_v39  ;;  %v1371_v39 = vld [vmem:[#allocation9 + $0x700] sm:$0xff] }
 0x8ee   :  { %1434 = vmatpush1.msra.mxu1 %v1343_v40  ;;  %v1370_v40 = vld [vmem:[#allocation9 + $0x6a8] sm:$0xff] }
 0x8ef   :  { %1435 = vmatprep.subr.mxu1 %v1342_v41  ;;  %v1369_v41 = vld [vmem:[#allocation9 + $0x6a0] sm:$0xff] }
 0x8f0   :  { %1436 = vmatpush1.msra.mxu1 %v1341_v42  ;;  %v1368_v42 = vld [vmem:[#allocation9 + $0x648] sm:$0xff] }
 0x8f1   :  { %1437 = vmatprep.subr.mxu1 %v1340_v43  ;;  %v1367_v43 = vld [vmem:[#allocation9 + $0x640] sm:$0xff] }
 0x8f2   :  { %1438 = vmatpush1.msra.mxu1 %v1339_v46  ;;  %v1909_v46 = vld [vmem:[#allocation10 + $0x9e0] sm:$0xff] }
 0x8f3   :  { %1439 = vmatprep.subr.mxu1 %v1338_v47  ;;  %v1555_v47 = vld [vmem:[#allocation9 + $0x5f8] sm:$0xff] }
 0x8f4   :  { %1440 = vmatpush1.msra.mxu1 %v1337_v48  ;;  %v1554_v48 = vld [vmem:[#allocation9 + $0x5f0] sm:$0xff]  ;;  %1588 = vmatprep.subr.mxu0 %v1555_v47 }
 0x8f5   :  { %1441 = vmatprep.subr.mxu1 %v1336_v51  ;;  %v1553_v51 = vld [vmem:[#allocation9 + $0x598] sm:$0xff]  ;;  %1589 = vmatpush1.msra.mxu0 %v1554_v48 }
 0x8f6   :  { %1442 = vmatpush1.msra.mxu1 %v1335_v52  ;;  %v1552_v52 = vld [vmem:[#allocation9 + $0x590] sm:$0xff]  ;;  %1590 = vmatprep.subr.mxu0 %v1553_v51  ;;  %v1271_v51 = vld [vmem:[#allocation12 + $0x6] sm:$0x3] }
 0x8f7   :  { %1443 = vmatprep.subr.mxu1 %v1398_v54  ;;  %v1551_v54 = vld [vmem:[#allocation9 + $0x538] sm:$0xff]  ;;  %1591 = vmatpush1.msra.mxu0 %v1552_v52  ;;  %v1272_v52 = vld [vmem:[#allocation12 + $0x8] sm:$0x3] }
 0x8f8   :  { %1444 = vmatpush2.msra.mxu1 %v1397_v55  ;;  %v1550_v55 = vld [vmem:[#allocation9 + $0x530] sm:$0xff]  ;;  %1592 = vmatprep.subr.mxu0 %v1551_v54  ;;  %v1309_v54 = vrot.slane %v1271_v51, %v4749_v37 }
 0x8f9   :  { %1445 = vmatprep.subr.mxu1 %v1396_v56  ;;  %v1549_v56 = vld [vmem:[#allocation9 + $0x4d8] sm:$0xff]  ;;  %1593 = vmatpush1.msra.mxu0 %v1550_v55  ;;  %v1313_v55 = vrot.slane %v1271_v51, %v4752_v38  ;;  %v1819_v51 = vld [vmem:[#allocation10 + $0x8] sm:$0xff] }
 0x8fa   :  { %1446 = vmatpush2.msra.mxu1 %v1395_v16  ;;  %v1548_v16 = vld [vmem:[#allocation9 + $0x4d0] sm:$0xff]  ;;  %1594 = vmatprep.subr.mxu0 %v1549_v56 }
 0x8fb   :  { %1447 = vmatprep.subr.mxu1 %v1394_v57  ;;  %v1547_v57 = vld [vmem:[#allocation9 + $0x478] sm:$0xff]  ;;  %1595 = vmatpush1.msra.mxu0 %v1548_v16 }
 0x8fc   :  { %1448 = vmatpush2.msra.mxu1 %v1393_v58  ;;  %1596 = vmatprep.subr.mxu0 %v1547_v57  ;;  %v1324_v58 = vrot.slane %v1272_v52, %v4749_v37 }
 0x8fd   :  { %1449 = vmatprep.subr.mxu1 %v1392_v15  ;;  %v1546_v15 = vld [vmem:[#allocation9 + $0x470] sm:$0xff] }
 0x8fe   :  { %1450 = vmatpush2.msra.mxu1 %v1391_v11  ;;  %1597 = vmatpush1.msra.mxu0 %v1546_v15  ;;  %v1538_v11 = vld [vmem:[#allocation9 + $0x2f0] sm:$0xff]  ;;  %v1328_v15 = vrot.slane %v1272_v52, %v4752_v38  ;;  %v1818_v52 = vld [vmem:[#allocation10] sm:$0xff] }
 0x8ff   :  { %1451 = vmatprep.subr.mxu1 %v1390_v13  ;;  %v1736_v13 = vld [vmem:[%s1735_s15] ss:$8 sm:$0x3]  ;;  %s4277_s15 = sld [smem:[#allocation4 + $0x87]] }
 0x900   :  { %1452 = vmatpush2.msra.mxu1 %v1389_v14  ;;  %v1537_v14 = vld [vmem:[#allocation9 + $0x298] sm:$0xff]  ;;  %1738 = vst.msk [vmem:[#allocation2 + $0x3] ss:$8 sm:$0x3] %vm4907_vm1, %v1736_v13 }
 0x901   :  { %1453 = vmatprep.subr.mxu1 %v1388_v17  ;;  %v1536_v17 = vld [vmem:[#allocation9 + $0x290] sm:$0xff] }
 0x902   :  { %1454 = vmatpush2.msra.mxu1 %v1387_v49  ;;  %v1535_v49 = vld [vmem:[#allocation9 + $0x238] sm:$0xff] }
 0x903   :  { %1455 = vmatprep.subr.mxu1 %v1386_v18  ;;  %v1749_v18 = vld [vmem:[%s1748_s9] ss:$8 sm:$0x3] }
 0x904   :  { %1456 = vmatpush2.msra.mxu1 %v1385_v50  ;;  %v1534_v50 = vld [vmem:[#allocation9 + $0x230] sm:$0xff]  ;;  %1751 = vst.msk [vmem:[#allocation2 + $0x4] ss:$8 sm:$0x3] %vm4907_vm1, %v1749_v18  ;;  %v1884_v18 = vld [vmem:[#allocation10 + $0x738] sm:$0xff] }
 0x905   :  { %1457 = vmatprep.subr.mxu1 %v1384_v19  ;;  %v1533_v19 = vld [vmem:[#allocation9 + $0x1d8] sm:$0xff] }
 0x906   :  { %1458 = vmatpush2.msra.mxu1 %v1383_v20  ;;  %v1762_v20 = vld [vmem:[%s1761_s2] ss:$8 sm:$0x3] }
 0x907   :  { %1459 = vmatprep.subr.mxu1 %v1382_v24  ;;  %v1532_v24 = vld [vmem:[#allocation9 + $0x1d0] sm:$0xff]  ;;  %1764 = vst.msk [vmem:[#allocation2 + $0x5] ss:$8 sm:$0x3] %vm4907_vm1, %v1762_v20 }
 0x908   :  { %1460 = vmatpush2.msra.mxu1 %v1381_v25  ;;  %v1531_v25 = vld [vmem:[#allocation9 + $0x178] sm:$0xff]  ;;  %v1873_v20 = vld [vmem:[#allocation10 + $0x5f0] sm:$0xff] }
 0x909   :  { %1461 = vmatprep.subr.mxu1 %v1380_v26  ;;  %v1530_v26 = vld [vmem:[#allocation9 + $0x170] sm:$0xff] }
 0x90a   :  { %1462 = vmatpush2.msra.mxu1 %v1379_v27  ;;  %v1529_v27 = vld [vmem:[#allocation9 + $0x118] sm:$0xff] }
 0x90b   :  { %1463 = vmatprep.subr.mxu1 %v1378_v28  ;;  %v1528_v28 = vld [vmem:[#allocation9 + $0x110] sm:$0xff] }
 0x90c   :  { %1464 = vmatpush2.msra.mxu1 %v1377_v29  ;;  %v1527_v29 = vld [vmem:[#allocation9 + $0xb8] sm:$0xff] }
 0x90d   :  { %1465 = vmatprep.subr.mxu1 %v1376_v30  ;;  %v1775_v30 = vld [vmem:[%s1774_s4] ss:$8 sm:$0x3] }
 0x90e   :  { %1466 = vmatpush2.msra.mxu1 %v1375_v31  ;;  %1777 = vst.msk [vmem:[#allocation2 + $0x6] ss:$8 sm:$0x3] %vm4907_vm1, %v1775_v30  ;;  %v1854_v30 = vld [vmem:[#allocation10 + $0x3f0] sm:$0xff] }
 0x90f   :  { %1467 = vmatprep.subr.mxu1 %v1374_v32 }
 0x910   :  { %1468 = vmatpush2.msra.mxu1 %v1373_v33 }
 0x911   :  { %1469 = vmatprep.subr.mxu1 %v1372_v34 }
 0x912   :  { %1470 = vmatpush2.msra.mxu1 %v1371_v39 }
 0x913   :  { %1471 = vmatprep.subr.mxu1 %v1370_v40 }
 0x914   :  { %1472 = vmatpush2.msra.mxu1 %v1369_v41 }
 0x915   :  { %1473 = vmatprep.subr.mxu1 %v1368_v42 }
 0x916   :  { %1474 = vmatpush2.msra.mxu1 %v1367_v43 }
 0x917   :  { %2042 = vmatprep.subr.mxu1 %v1909_v46 }
 0x964   :  { %v1275_v60 = vpop.xlane.xlu0 %1274 }
 0x965   :  { %v1279_v21 = vmul.f32 0.00390625, %v1275_v60  ;;  %v1545_v60 = vld [vmem:[#allocation9 + $0x418] sm:$0xff] }
 0x966   :  { %1598 = vmatprep.subr.mxu0 %v1545_v60 }
 0x967   :  { %v4876_v62 = vsub.f32 %v4860_v6, %v1279_v21  ;;  %v4879_v63 = vsub.f32 %v4863_v7, %v1279_v21  ;;  %v1694_v21 = vld [vmem:[%s1693_s25] ss:$8 sm:$0x3]  ;;  %s1783_s25 = sand.u32 7, %s4930_s20 }
 0x968   :  { %v1278_v1 = vpop.xlane.xlu1 %1277  ;;  %1699 = vst.msk [vmem:[#allocation2] ss:$8 sm:$0x3] %vm4907_vm1, %v1694_v21  ;;  %s1786_s27 = sadd.s32 %s4285_s26, %s1783_s25 }
 0x969   :  { %v1280_v2 = vmul.f32 0.00390625, %v1278_v1  ;;  %v1285_v3 = vmul.f32 %v4876_v62, %v4876_v62  ;;  %v1286_v53 = vmul.f32 %v4879_v63, %v4879_v63  ;;  %v1544_v1 = vld [vmem:[#allocation9 + $0x410] sm:$0xff] }
 0x96a   :  { %1599 = vmatpush1.msra.mxu0 %v1544_v1 }
 0x96b   :  { %v4886_v10 = vsub.f32 %v4868_v61, %v1280_v2  ;;  %v4889_v59 = vsub.f32 %v4871_v4, %v1280_v2  ;;  %v1289_v8 = vadd.f32 %v1286_v53, %v1285_v3  ;;  %v1543_v2 = vld [vmem:[#allocation9 + $0x3b8] sm:$0xff]  ;;  %v1710_v3 = vld [vmem:[%s1709_s28] ss:$8 sm:$0x3]  ;;  %v1542_v53 = vld [vmem:[#allocation9 + $0x3b0] sm:$0xff]  ;;  %s1787_s28 = scalar_lea.vmem [#allocation13], %s1786_s27 }
 0x96c   :  { %1712 = vst.msk [vmem:[#allocation2 + $0x1] ss:$8 sm:$0x3] %vm4907_vm1, %v1710_v3  ;;  %1600 = vmatprep.subr.mxu0 %v1543_v2  ;;  %v1788_v31 = vld [vmem:[%s1787_s28] ss:$8 sm:$0x3] }
 0x96d   :  { %1290 = vadd.xlane.f32.xlu0 %v1289_v8  ;;  %v1287_v44 = vmul.f32 %v4886_v10, %v4886_v10  ;;  %v1288_v12 = vmul.f32 %v4889_v59, %v4889_v59  ;;  %v1541_v8 = vld [vmem:[#allocation9 + $0x358] sm:$0xff]  ;;  %1601 = vmatpush1.msra.mxu0 %v1542_v53  ;;  %1790 = vst.msk [vmem:[#allocation2 + $0x7] ss:$8 sm:$0x3] %vm4907_vm1, %v1788_v31  ;;  %v1849_v31 = vld [vmem:[#allocation10 + $0x350] sm:$0xff] }
 0x96e   :  { %1602 = vmatprep.subr.mxu0 %v1541_v8 }
 0x96f   :  { %v1292_v45 = vadd.f32 %v1288_v12, %v1287_v44  ;;  %v1540_v44 = vld [vmem:[#allocation9 + $0x350] sm:$0xff]  ;;  %v1723_v12 = vld [vmem:[%s1722_s1] ss:$8 sm:$0x3] }
 0x970   :  { %1725 = vst.msk [vmem:[#allocation2 + $0x2] ss:$8 sm:$0x3] %vm4907_vm1, %v1723_v12  ;;  %1603 = vmatpush1.msra.mxu0 %v1540_v44  ;;  %v1908_v44 = vld [vmem:[#allocation10 + $0x9d8] sm:$0xff] }
 0x971   :  { %1293 = vadd.xlane.f32.xlu1 %v1292_v45  ;;  %v1539_v45 = vld [vmem:[#allocation9 + $0x2f8] sm:$0xff] }
 0x972   :  { %1604 = vmatprep.subr.mxu0 %v1539_v45 }
 0x973   :  { %1605 = vmatpush1.msra.mxu0 %v1538_v11 }
 0x974   :  { %1606 = vmatprep.subr.mxu0 %v1537_v14  ;;  %v1897_v14 = vld [vmem:[#allocation10 + $0x890] sm:$0xff] }
 0x975   :  { %1607 = vmatpush1.msra.mxu0 %v1536_v17  ;;  %v1896_v17 = vld [vmem:[#allocation10 + $0x888] sm:$0xff] }
 0x976   :  { %1608 = vmatprep.subr.mxu0 %v1535_v49  ;;  %v1891_v49 = vld [vmem:[#allocation10 + $0x7e8] sm:$0xff] }
 0x977   :  { %1609 = vmatpush1.msra.mxu0 %v1534_v50  ;;  %v4940_v32 = vld [vmem:[#allocation2] sm:$0xff]  ;;  %v4942_v33 = vld [vmem:[#allocation2 + $0x8] sm:$0xff]  ;;  %v1879_v50 = vld [vmem:[#allocation10 + $0x698] sm:$0xff] }
 0x978   :  { %1610 = vmatprep.subr.mxu0 %v1533_v19  ;;  %v1795_v34 = vmul.f32 %v4940_v32, %v4940_v32  ;;  %v1796_v39 = vmul.f32 %v4942_v33, %v4942_v33  ;;  %v1878_v19 = vld [vmem:[#allocation10 + $0x690] sm:$0xff] }
 0x979   :  { %1611 = vmatpush1.msra.mxu0 %v1532_v24  ;;  %v1872_v24 = vld [vmem:[#allocation10 + $0x5e8] sm:$0xff] }
 0x97a   :  { %1612 = vmatprep.subr.mxu0 %v1531_v25  ;;  %v1797_v40 = vadd.f32 %v1796_v39, %v1795_v34  ;;  %v1867_v25 = vld [vmem:[#allocation10 + $0x548] sm:$0xff] }
 0x97b   :  { %1613 = vmatpush1.msra.mxu0 %v1530_v26  ;;  %v1866_v26 = vld [vmem:[#allocation10 + $0x540] sm:$0xff]  ;;  %v1848_v34 = vld [vmem:[#allocation10 + $0x348] sm:$0xff] }
 0x97c   :  { %1614 = vmatprep.subr.mxu0 %v1529_v27  ;;  %1798 = vadd.xlane.f32.xlu0 %v1797_v40  ;;  %v1861_v27 = vld [vmem:[#allocation10 + $0x4a0] sm:$0xff]  ;;  %v1843_v39 = vld [vmem:[#allocation10 + $0x2a8] sm:$0xff] }
 0x97d   :  { %1615 = vmatpush1.msra.mxu0 %v1528_v28  ;;  %v1860_v28 = vld [vmem:[#allocation10 + $0x498] sm:$0xff]  ;;  %v1842_v40 = vld [vmem:[#allocation10 + $0x2a0] sm:$0xff] }
 0x97e   :  { %1616 = vmatprep.subr.mxu0 %v1527_v29  ;;  %v1855_v29 = vld [vmem:[#allocation10 + $0x3f8] sm:$0xff] }
 0x9f6   :  { %v1291_v41 = vpop.xlane.xlu0 %1290 }
 0x9f7   :  { %v1295_v42 = vmul.f32 0.00390625, %v1291_v41  ;;  %v1837_v41 = vld [vmem:[#allocation10 + $0x200] sm:$0xff] }
 0x9f9   :  { %v1297_v43 = vadd.f32 1e-05, %v1295_v42  ;;  %v1836_v42 = vld [vmem:[#allocation10 + $0x1f8] sm:$0xff] }
 0x9fa   :  { %v1294_v46 = vpop.xlane.xlu1 %1293 }
 0x9fb   :  { %4473 = vrsqrt.f32 %v1297_v43  ;;  %v1296_v47 = vmul.f32 0.00390625, %v1294_v46  ;;  %v1831_v43 = vld [vmem:[#allocation10 + $0x158] sm:$0xff]  ;;  %v1830_v46 = vld [vmem:[#allocation10 + $0x150] sm:$0xff] }
 0x9fd   :  { %v1298_v48 = vadd.f32 1e-05, %v1296_v47  ;;  %v1825_v47 = vld [vmem:[#allocation10 + $0xb0] sm:$0xff] }
 0x9ff   :  { %4475 = vrsqrt.f32 %v1298_v48  ;;  %v1824_v48 = vld [vmem:[#allocation10 + $0xa8] sm:$0xff] }
 0xa08   :  { %v4474_v56 = vpop.eup %4473 }
 0xa09   :  { %v1301_v16 = vmul.f32 %v4474_v56, %v4876_v62  ;;  %v1302_v57 = vmul.f32 %v4474_v56, %v4879_v63  ;;  %v1903_v62 = vld [vmem:[#allocation10 + $0x938] sm:$0xff]  ;;  %v1902_v63 = vld [vmem:[#allocation10 + $0x930] sm:$0xff] }
 0xa0a   :  { %v1525_v56 = vld [vmem:[#allocation9 + $0x58] sm:$0xff] }
 0xa0b   :  { %v1316_v60 = vmul.f32 %v1309_v54, %v1301_v16  ;;  %v1317_v21 = vmul.f32 %v1313_v55, %v1302_v57  ;;  %v2004_v16 = vld [vmem:[#allocation10 + $0x1458] sm:$0xff]  ;;  %v1524_v57 = vld [vmem:[#allocation9 + $0x50] sm:$0xff] }
 0xa0c   :  { %v4476_v1 = vpop.eup %4475 }
 0xa0d   :  { %v1331_v2 = vadd.f32 %v1324_v58, %v1316_v60  ;;  %v1332_v3 = vadd.f32 %v1328_v15, %v1317_v21  ;;  %v1304_v53 = vmul.f32 %v4476_v1, %v4889_v59  ;;  %v1303_v8 = vmul.f32 %v4476_v1, %v4886_v10  ;;  %v1890_v59 = vld [vmem:[#allocation10 + $0x7e0] sm:$0xff]  ;;  %v1998_v60 = vld [vmem:[#allocation10 + $0x13b0] sm:$0xff] }
 0xa0e   :  { %v1885_v10 = vld [vmem:[#allocation10 + $0x740] sm:$0xff]  ;;  %v1586_v21 = vld [vmem:[#allocation9 + $0xbf0] sm:$0xff] }
 0xa0f   :  { %1475 = vmatprep.mubr.f32.mxu1 %v1332_v3  ;;  %v1319_v12 = vmul.f32 %v1313_v55, %v1304_v53  ;;  %v1318_v45 = vmul.f32 %v1309_v54, %v1303_v8  ;;  %v1526_v54 = vld [vmem:[#allocation9 + $0xb0] sm:$0xff]  ;;  %v2005_v55 = vld [vmem:[#allocation10 + $0x1460] sm:$0xff]  ;;  %v1992_v3 = vld [vmem:[#allocation10 + $0x1308] sm:$0xff] }
 0xa10   :  { %1476 = vmatmul.mubr.f32.vlgmr.msra.gmra.mxu1 %v1331_v2  ;;  %1617 = vmatpush1.msra.mxu0 %v1526_v54  ;;  %v1993_v1 = vld [vmem:[#allocation10 + $0x1310] sm:$0xff]  ;;  %v1585_v2 = vld [vmem:[#allocation9 + $0xb98] sm:$0xff]  ;;  %v1987_v8 = vld [vmem:[#allocation10 + $0x1268] sm:$0xff] }
 0xa11   :  { %v1334_v11 = vadd.f32 %v1328_v15, %v1319_v12  ;;  %v1333_v13 = vadd.f32 %v1324_v58, %v1318_v45  ;;  %2043 = vmatpush1.msra.mxu1 %v1908_v44  ;;  %1618 = vmatprep.subr.mxu0 %v1525_v56  ;;  %v1999_v58 = vld [vmem:[#allocation10 + $0x13b8] sm:$0xff]  ;;  %v1584_v53 = vld [vmem:[#allocation9 + $0xb90] sm:$0xff]  ;;  %v1986_v12 = vld [vmem:[#allocation10 + $0x1260] sm:$0xff] }
 0xa12   :  { %2044 = vmatprep.subr.mxu1 %v1903_v62  ;;  %1619 = vmatpush1.msra.mxu0 %v1524_v57  ;;  %v1587_v15 = vld [vmem:[#allocation9 + $0xbf8] sm:$0xff]  ;;  %v1582_v45 = vld [vmem:[#allocation9 + $0xb30] sm:$0xff]  ;;  %v1981_v62 = vld [vmem:[#allocation10 + $0x11c0] sm:$0xff] }
 0xa13   :  { %1481 = vmatprep.mubr.f32.mxu1 %v1334_v11  ;;  %2045 = vmatpush1.msra.mxu1 %v1902_v63  ;;  %v1583_v44 = vld [vmem:[#allocation9 + $0xb38] sm:$0xff]  ;;  %v1566_v56 = vld [vmem:[#allocation9 + $0x830] sm:$0xff] }
 0xa14   :  { %1482 = vmatmul.mubr.f32.gmra.mxu1 %v1333_v13  ;;  %2046 = vmatprep.subr.mxu1 %v1897_v14  ;;  %v1581_v63 = vld [vmem:[#allocation9 + $0xad8] sm:$0xff]  ;;  %v1799_v13 = vpop.xlane.xlu0 %1798  ;;  %v1580_v14 = vld [vmem:[#allocation9 + $0xad0] sm:$0xff] }
 0xa15   :  { %2047 = vmatpush1.msra.mxu1 %v1896_v17  ;;  %1620 = vmatprep.subr.mxu0 %v1587_v15  ;;  %v1980_v11 = vld [vmem:[#allocation10 + $0x11b8] sm:$0xff]  ;;  %v1564_v15 = vld [vmem:[#allocation9 + $0x7d0] sm:$0xff] }
 0xa16   :  { %2048 = vmatprep.subr.mxu1 %v1891_v49  ;;  %1621 = vmatpush2.msra.mxu0 %v1586_v21  ;;  %v1975_v17 = vld [vmem:[#allocation10 + $0x1118] sm:$0xff]  ;;  %v1800_v49 = vmul.f32 0.00390625, %v1799_v13 }
 0xa17   :  { %2049 = vmatpush1.msra.mxu1 %v1890_v59  ;;  %1622 = vmatprep.subr.mxu0 %v1585_v2  ;;  %v1579_v59 = vld [vmem:[#allocation9 + $0xa78] sm:$0xff] }
 0xa18   :  { %2050 = vmatprep.subr.mxu1 %v1885_v10  ;;  %1623 = vmatpush2.msra.mxu0 %v1584_v53  ;;  %v1974_v10 = vld [vmem:[#allocation10 + $0x1110] sm:$0xff]  ;;  %v1567_v54 = vld [vmem:[#allocation9 + $0x838] sm:$0xff] }
 0xa19   :  { %2051 = vmatpush1.msra.mxu1 %v1884_v18  ;;  %1624 = vmatprep.subr.mxu0 %v1583_v44  ;;  %v1578_v18 = vld [vmem:[#allocation9 + $0xa70] sm:$0xff]  ;;  %v1565_v57 = vld [vmem:[#allocation9 + $0x7d8] sm:$0xff] }
 0xa1a   :  { %2052 = vmatprep.subr.mxu1 %v1879_v50  ;;  %1625 = vmatpush2.msra.mxu0 %v1582_v45  ;;  %v1969_v50 = vld [vmem:[#allocation10 + $0x1070] sm:$0xff]  ;;  %v1563_v21 = vld [vmem:[#allocation9 + $0x778] sm:$0xff] }
 0xa1b   :  { %2053 = vmatpush1.msra.mxu1 %v1878_v19  ;;  %1626 = vmatprep.subr.mxu0 %v1581_v63  ;;  %v1801_v19 = vadd.f32 1e-06, %v1800_v49  ;;  %v1921_v53 = vld [vmem:[#allocation10 + $0xb30] sm:$0xff]  ;;  %v1561_v44 = vld [vmem:[#allocation9 + $0x718] sm:$0xff]  ;;  %v1914_v49 = vld [vmem:[#allocation10 + $0xa80] sm:$0xff] }
 0xa1c   :  { %2054 = vmatprep.subr.mxu1 %v1873_v20  ;;  %1627 = vmatpush2.msra.mxu0 %v1580_v14  ;;  %v1577_v20 = vld [vmem:[#allocation9 + $0xa18] sm:$0xff]  ;;  %v1560_v63 = vld [vmem:[#allocation9 + $0x710] sm:$0xff] }
 0xa1d   :  { %2055 = vmatpush1.msra.mxu1 %v1872_v24  ;;  %1628 = vmatprep.subr.mxu0 %v1579_v59  ;;  %v1968_v24 = vld [vmem:[#allocation10 + $0x1068] sm:$0xff]  ;;  %4477 = vrsqrt.f32 %v1801_v19  ;;  %v1912_v19 = vld [vmem:[#allocation10 + $0x9f8] sm:$0xff] }
 0xa1e   :  { %2056 = vmatprep.subr.mxu1 %v1867_v25  ;;  %1629 = vmatpush2.msra.mxu0 %v1578_v18  ;;  %v1576_v25 = vld [vmem:[#allocation9 + $0xa10] sm:$0xff]  ;;  %v1913_v18 = vld [vmem:[#allocation10 + $0xa00] sm:$0xff] }
 0xa1f   :  { %2057 = vmatpush1.msra.mxu1 %v1866_v26  ;;  %1630 = vmatprep.subr.mxu0 %v1577_v20  ;;  %v1963_v26 = vld [vmem:[#allocation10 + $0xfc8] sm:$0xff]  ;;  %v1907_v20 = vld [vmem:[#allocation10 + $0x958] sm:$0xff] }
 0xa20   :  { %2058 = vmatprep.subr.mxu1 %v1861_v27  ;;  %1631 = vmatpush2.msra.mxu0 %v1576_v25  ;;  %v1575_v27 = vld [vmem:[#allocation9 + $0x9b8] sm:$0xff]  ;;  %v1906_v25 = vld [vmem:[#allocation10 + $0x950] sm:$0xff] }
 0xa21   :  { %2059 = vmatpush1.msra.mxu1 %v1860_v28  ;;  %v1962_v28 = vld [vmem:[#allocation10 + $0xfc0] sm:$0xff]  ;;  %1632 = vmatprep.subr.mxu0 %v1575_v27  ;;  %v1900_v27 = vld [vmem:[#allocation10 + $0x8a8] sm:$0xff] }
 0xa22   :  { %2060 = vmatprep.subr.mxu1 %v1855_v29  ;;  %v1574_v29 = vld [vmem:[#allocation9 + $0x9b0] sm:$0xff] }
 0xa23   :  { %2061 = vmatpush1.msra.mxu1 %v1854_v30  ;;  %v1957_v30 = vld [vmem:[#allocation10 + $0xf20] sm:$0xff]  ;;  %1633 = vmatpush2.msra.mxu0 %v1574_v29 }
 0xa24   :  { %2062 = vmatprep.subr.mxu1 %v1849_v31  ;;  %v1573_v31 = vld [vmem:[#allocation9 + $0x958] sm:$0xff]  ;;  %v1894_v29 = vld [vmem:[#allocation10 + $0x800] sm:$0xff] }
 0xa25   :  { %2063 = vmatpush1.msra.mxu1 %v1848_v34  ;;  %v1956_v34 = vld [vmem:[#allocation10 + $0xf18] sm:$0xff]  ;;  %1634 = vmatprep.subr.mxu0 %v1573_v31 }
 0xa26   :  { %2064 = vmatprep.subr.mxu1 %v1843_v39  ;;  %v1572_v39 = vld [vmem:[#allocation9 + $0x950] sm:$0xff]  ;;  %v1888_v31 = vld [vmem:[#allocation10 + $0x758] sm:$0xff] }
 0xa27   :  { %2065 = vmatpush1.msra.mxu1 %v1842_v40  ;;  %v1951_v40 = vld [vmem:[#allocation10 + $0xe78] sm:$0xff]  ;;  %1635 = vmatpush2.msra.mxu0 %v1572_v39  ;;  %v1882_v39 = vld [vmem:[#allocation10 + $0x6b0] sm:$0xff] }
 0xa28   :  { %2066 = vmatprep.subr.mxu1 %v1837_v41  ;;  %v1571_v41 = vld [vmem:[#allocation9 + $0x8f8] sm:$0xff] }
 0xa29   :  { %2067 = vmatpush1.msra.mxu1 %v1836_v42  ;;  %v1950_v42 = vld [vmem:[#allocation10 + $0xe70] sm:$0xff]  ;;  %1636 = vmatprep.subr.mxu0 %v1571_v41  ;;  %v1876_v41 = vld [vmem:[#allocation10 + $0x608] sm:$0xff] }
 0xa2a   :  { %2068 = vmatprep.subr.mxu1 %v1831_v43  ;;  %v1570_v43 = vld [vmem:[#allocation9 + $0x8f0] sm:$0xff]  ;;  %v4478_v2 = vpop.eup %4477 }
 0xa2b   :  { %2069 = vmatpush1.msra.mxu1 %v1830_v46  ;;  %v1945_v46 = vld [vmem:[#allocation10 + $0xdd0] sm:$0xff]  ;;  %1637 = vmatpush2.msra.mxu0 %v1570_v43  ;;  %v1804_v45 = vmul.f32 %v4478_v2, %v4942_v33  ;;  %v1803_v13 = vmul.f32 %v4478_v2, %v4940_v32  ;;  %v1870_v43 = vld [vmem:[#allocation10 + $0x560] sm:$0xff] }
 0xa2c   :  { %2070 = vmatprep.subr.mxu1 %v1825_v47  ;;  %v1569_v47 = vld [vmem:[#allocation9 + $0x898] sm:$0xff]  ;;  %v1556_v32 = vld [vmem:[#allocation9 + $0x650] sm:$0xff]  ;;  %v1822_v2 = vld [vmem:[#allocation10 + $0x20] sm:$0xff] }
 0xa2d   :  { %2071 = vmatpush1.msra.mxu1 %v1824_v48  ;;  %v1944_v48 = vld [vmem:[#allocation10 + $0xdc8] sm:$0xff]  ;;  %1638 = vmatprep.subr.mxu0 %v1569_v47  ;;  %v1864_v47 = vld [vmem:[#allocation10 + $0x4b8] sm:$0xff] }
 0xa2e   :  { %2072 = vmatprep.subr.mxu1 %v1819_v51  ;;  %v1568_v51 = vld [vmem:[#allocation9 + $0x890] sm:$0xff] }
 0xa2f   :  { %2073 = vmatpush1.msra.mxu1 %v1818_v52  ;;  %v1939_v52 = vld [vmem:[#allocation10 + $0xd28] sm:$0xff]  ;;  %1639 = vmatpush2.msra.mxu0 %v1568_v51  ;;  %v1858_v51 = vld [vmem:[#allocation10 + $0x410] sm:$0xff] }
 0xa30   :  { %2074 = vmatprep.subr.mxu1 %v2005_v55  ;;  %v1938_v55 = vld [vmem:[#allocation10 + $0xd20] sm:$0xff]  ;;  %1640 = vmatprep.subr.mxu0 %v1567_v54  ;;  %v1852_v54 = vld [vmem:[#allocation10 + $0x368] sm:$0xff] }
 0xa31   :  { %2075 = vmatpush2.msra.mxu1 %v2004_v16  ;;  %v1933_v16 = vld [vmem:[#allocation10 + $0xc80] sm:$0xff]  ;;  %1641 = vmatpush2.msra.mxu0 %v1566_v56 }
 0xa32   :  { %2076 = vmatprep.subr.mxu1 %v1999_v58  ;;  %v1932_v58 = vld [vmem:[#allocation10 + $0xc78] sm:$0xff]  ;;  %1642 = vmatprep.subr.mxu0 %v1565_v57  ;;  %v1846_v56 = vld [vmem:[#allocation10 + $0x2c0] sm:$0xff] }
 0xa33   :  { %2077 = vmatpush2.msra.mxu1 %v1998_v60  ;;  %v1927_v60 = vld [vmem:[#allocation10 + $0xbd8] sm:$0xff]  ;;  %1643 = vmatpush2.msra.mxu0 %v1564_v15  ;;  %v1834_v15 = vld [vmem:[#allocation10 + $0x170] sm:$0xff] }
 0xa34   :  { %2078 = vmatprep.subr.mxu1 %v1993_v1  ;;  %v1926_v1 = vld [vmem:[#allocation10 + $0xbd0] sm:$0xff]  ;;  %1644 = vmatprep.subr.mxu0 %v1563_v21  ;;  %v1840_v57 = vld [vmem:[#allocation10 + $0x218] sm:$0xff]  ;;  %v1828_v21 = vld [vmem:[#allocation10 + $0xc8] sm:$0xff] }
 0xa35   :  { %2079 = vmatpush2.msra.mxu1 %v1992_v3  ;;  %v1562_v3 = vld [vmem:[#allocation9 + $0x770] sm:$0xff] }
 0xa36   :  { %2080 = vmatprep.subr.mxu1 %v1987_v8  ;;  %v1794_v8 = vld [vmem:[#allocation12 + $0x16] sm:$0x3]  ;;  %1645 = vmatpush2.msra.mxu0 %v1562_v3  ;;  %v2009_v3 = vld [vmem:[#allocation10 + $0x1480] sm:$0xff] }
 0xa37   :  { %2081 = vmatpush2.msra.mxu1 %v1986_v12  ;;  %v1920_v12 = vld [vmem:[#allocation10 + $0xb28] sm:$0xff]  ;;  %1646 = vmatprep.subr.mxu0 %v1561_v44  ;;  %v1809_v14 = vrot.slane %v1794_v8, %v4749_v37  ;;  %v2002_v44 = vld [vmem:[#allocation10 + $0x13d0] sm:$0xff] }
 0xa38   :  { %2082 = vmatprep.subr.mxu1 %v1981_v62  ;;  %v1813_v62 = vrot.slane %v1794_v8, %v4752_v38  ;;  %1647 = vmatpush2.msra.mxu0 %v1560_v63  ;;  %v2003_v8 = vld [vmem:[#allocation10 + $0x13d8] sm:$0xff]  ;;  %v1990_v63 = vld [vmem:[#allocation10 + $0x1280] sm:$0xff] }
 0xa39   :  { %2083 = vmatpush2.msra.mxu1 %v1980_v11  ;;  %v1915_v11 = vld [vmem:[#allocation10 + $0xa88] sm:$0xff]  ;;  %v4962_v33 = vmul.f32 %v1809_v14, %v1803_v13  ;;  %v1984_v13 = vld [vmem:[#allocation10 + $0x11d8] sm:$0xff] }
 0xa3a   :  { %2084 = vmatprep.subr.mxu1 %v1975_v17  ;;  %v1559_v17 = vld [vmem:[#allocation9 + $0x6b8] sm:$0xff]  ;;  %v4960_v59 = vmul.f32 %v1813_v62, %v1804_v45  ;;  %v1996_v45 = vld [vmem:[#allocation10 + $0x1328] sm:$0xff] }
 0xa3b   :  { %2085 = vmatpush2.msra.mxu1 %v1974_v10  ;;  %1648 = vmatprep.subr.mxu0 %v1559_v17  ;;  %v1558_v10 = vld [vmem:[#allocation9 + $0x6b0] sm:$0xff]  ;;  %v1991_v62 = vld [vmem:[#allocation10 + $0x1288] sm:$0xff]  ;;  %v1979_v14 = vld [vmem:[#allocation10 + $0x1138] sm:$0xff] }
 0xa3c   :  { %2086 = vmatprep.subr.mxu1 %v1969_v50  ;;  %v1557_v50 = vld [vmem:[#allocation9 + $0x658] sm:$0xff]  ;;  %1649 = vmatpush2.msra.mxu0 %v1558_v10  ;;  %v1978_v17 = vld [vmem:[#allocation10 + $0x1130] sm:$0xff]  ;;  %v1972_v10 = vld [vmem:[#allocation10 + $0x1088] sm:$0xff] }
 0xa3d   :  { %2087 = vmatpush2.msra.mxu1 %v1968_v24  ;;  %2106 = vmatprep.mubr.f32.mxu1 %v4960_v59  ;;  %v1911_v24 = vld [vmem:[#allocation10 + $0x9f0] sm:$0xff] }
 0xa3e   :  { %2088 = vmatprep.subr.mxu1 %v1963_v26  ;;  %1650 = vmatprep.subr.mxu0 %v1557_v50  ;;  %v1901_v26 = vld [vmem:[#allocation10 + $0x8b0] sm:$0xff]  ;;  %v1966_v50 = vld [vmem:[#allocation10 + $0xfe0] sm:$0xff] }
 0xa3f   :  { %2089 = vmatpush2.msra.mxu1 %v1962_v28  ;;  %1651 = vmatpush2.msra.mxu0 %v1556_v32  ;;  %v1895_v28 = vld [vmem:[#allocation10 + $0x808] sm:$0xff]  ;;  %v1960_v32 = vld [vmem:[#allocation10 + $0xf38] sm:$0xff] }
 0xa40   :  { %2090 = vmatprep.subr.mxu1 %v1957_v30  ;;  %2113 = vmatprep.subr.mxu0 %v1911_v24  ;;  %v1889_v30 = vld [vmem:[#allocation10 + $0x760] sm:$0xff]  ;;  %v1954_v24 = vld [vmem:[#allocation10 + $0xe90] sm:$0xff] }
 0xa41   :  { %2091 = vmatpush2.msra.mxu1 %v1956_v34  ;;  %v1883_v34 = vld [vmem:[#allocation10 + $0x6b8] sm:$0xff] }
 0xa42   :  { %2092 = vmatprep.subr.mxu1 %v1951_v40  ;;  %v1877_v40 = vld [vmem:[#allocation10 + $0x610] sm:$0xff] }
 0xa43   :  { %2093 = vmatpush2.msra.mxu1 %v1950_v42  ;;  %v1871_v42 = vld [vmem:[#allocation10 + $0x568] sm:$0xff] }
 0xa44   :  { %2094 = vmatprep.subr.mxu1 %v1945_v46  ;;  %v1865_v46 = vld [vmem:[#allocation10 + $0x4c0] sm:$0xff] }
 0xa45   :  { %2095 = vmatpush2.msra.mxu1 %v1944_v48  ;;  %v1859_v48 = vld [vmem:[#allocation10 + $0x418] sm:$0xff] }
 0xa46   :  { %2096 = vmatprep.subr.mxu1 %v1939_v52  ;;  %v1853_v52 = vld [vmem:[#allocation10 + $0x370] sm:$0xff] }
 0xa47   :  { %2097 = vmatpush2.msra.mxu1 %v1938_v55  ;;  %v1847_v55 = vld [vmem:[#allocation10 + $0x2c8] sm:$0xff] }
 0xa48   :  { %2098 = vmatprep.subr.mxu1 %v1933_v16  ;;  %v1841_v16 = vld [vmem:[#allocation10 + $0x220] sm:$0xff] }
 0xa49   :  { %2099 = vmatpush2.msra.mxu1 %v1932_v58  ;;  %v1835_v58 = vld [vmem:[#allocation10 + $0x178] sm:$0xff] }
 0xa4a   :  { %2100 = vmatprep.subr.mxu1 %v1927_v60  ;;  %v1829_v60 = vld [vmem:[#allocation10 + $0xd0] sm:$0xff] }
 0xa4b   :  { %2101 = vmatpush2.msra.mxu1 %v1926_v1  ;;  %v1823_v1 = vld [vmem:[#allocation10 + $0x28] sm:$0xff] }
 0xa4c   :  { %2102 = vmatprep.subr.mxu1 %v1921_v53  ;;  %v2008_v53 = vld [vmem:[#allocation10 + $0x1478] sm:$0xff] }
 0xa4d   :  { %2103 = vmatpush2.msra.mxu1 %v1920_v12  ;;  %v1997_v12 = vld [vmem:[#allocation10 + $0x1330] sm:$0xff] }
 0xa4e   :  { %2104 = vmatprep.subr.mxu1 %v1915_v11  ;;  %v1985_v11 = vld [vmem:[#allocation10 + $0x11e0] sm:$0xff] }
 0xa4f   :  { %2105 = vmatpush2.msra.mxu1 %v1914_v49  ;;  %v1973_v49 = vld [vmem:[#allocation10 + $0x1090] sm:$0xff] }
 0xa50   :  { %2184 = vmatprep.subr.mxu1 %v1913_v18  ;;  %2107 = vmatmul.mubr.f32.vlgmr.msra.gmra.mxu1 %v4962_v33  ;;  %v1967_v18 = vld [vmem:[#allocation10 + $0xfe8] sm:$0xff] }
 0xa51   :  { %2185 = vmatpush1.msra.mxu1 %v1912_v19  ;;  %2248 = vmatprep.mubr.f32.mxu1 %v4960_v59  ;;  %v1961_v19 = vld [vmem:[#allocation10 + $0xf40] sm:$0xff] }
 0xa52   :  { %2186 = vmatprep.subr.mxu1 %v1907_v20  ;;  %v1955_v20 = vld [vmem:[#allocation10 + $0xe98] sm:$0xff] }
 0xa53   :  { %2187 = vmatpush1.msra.mxu1 %v1906_v25  ;;  %v1949_v25 = vld [vmem:[#allocation10 + $0xdf0] sm:$0xff] }
 0xa54   :  { %2188 = vmatprep.subr.mxu1 %v1901_v26  ;;  %v1948_v26 = vld [vmem:[#allocation10 + $0xde8] sm:$0xff] }
 0xa55   :  { %2189 = vmatpush1.msra.mxu1 %v1900_v27  ;;  %v1943_v27 = vld [vmem:[#allocation10 + $0xd48] sm:$0xff] }
 0xa56   :  { %2190 = vmatprep.subr.mxu1 %v1895_v28  ;;  %v1942_v28 = vld [vmem:[#allocation10 + $0xd40] sm:$0xff] }
 0xa57   :  { %2191 = vmatpush1.msra.mxu1 %v1894_v29  ;;  %v1937_v29 = vld [vmem:[#allocation10 + $0xca0] sm:$0xff] }
 0xa58   :  { %2192 = vmatprep.subr.mxu1 %v1889_v30  ;;  %v1936_v30 = vld [vmem:[#allocation10 + $0xc98] sm:$0xff] }
 0xa59   :  { %2193 = vmatpush1.msra.mxu1 %v1888_v31  ;;  %v1931_v31 = vld [vmem:[#allocation10 + $0xbf8] sm:$0xff] }
 0xa5a   :  { %2194 = vmatprep.subr.mxu1 %v1883_v34  ;;  %v1930_v34 = vld [vmem:[#allocation10 + $0xbf0] sm:$0xff] }
 0xa5b   :  { %2195 = vmatpush1.msra.mxu1 %v1882_v39  ;;  %v1925_v39 = vld [vmem:[#allocation10 + $0xb50] sm:$0xff] }
 0xa5c   :  { %2196 = vmatprep.subr.mxu1 %v1877_v40  ;;  %v1924_v40 = vld [vmem:[#allocation10 + $0xb48] sm:$0xff] }
 0xa5d   :  { %2197 = vmatpush1.msra.mxu1 %v1876_v41  ;;  %v1919_v41 = vld [vmem:[#allocation10 + $0xaa8] sm:$0xff] }
 0xa5e   :  { %2198 = vmatprep.subr.mxu1 %v1871_v42  ;;  %v1918_v42 = vld [vmem:[#allocation10 + $0xaa0] sm:$0xff] }
 0xa5f   :  { %2199 = vmatpush1.msra.mxu1 %v1870_v43  ;;  %v1399_v43 = vld [vmem:[#allocation12 + $0x12] sm:$0x3] }
 0xa60   :  { %2200 = vmatprep.subr.mxu1 %v1865_v46  ;;  %v1404_v46 = vrot.slane %v1399_v43, %v4749_v37 }
 0xa61   :  { %2201 = vmatpush1.msra.mxu1 %v1864_v47  ;;  %v1408_v47 = vrot.slane %v1399_v43, %v4752_v38  ;;  %v1899_v43 = vld [vmem:[#allocation10 + $0x8a0] sm:$0xff] }
 0xa62   :  { %2202 = vmatprep.subr.mxu1 %v1859_v48 }
 0xa63   :  { %2203 = vmatpush1.msra.mxu1 %v1858_v51 }
 0xa64   :  { %2204 = vmatprep.subr.mxu1 %v1853_v52 }
 0xa65   :  { %2205 = vmatpush1.msra.mxu1 %v1852_v54 }
 0xa66   :  { %2206 = vmatprep.subr.mxu1 %v1847_v55 }
 0xa67   :  { %2207 = vmatpush1.msra.mxu1 %v1846_v56 }
 0xa68   :  { %2208 = vmatprep.subr.mxu1 %v1841_v16 }
 0xa69   :  { %2209 = vmatpush1.msra.mxu1 %v1840_v57 }
 0xa6a   :  { %2210 = vmatprep.subr.mxu1 %v1835_v58 }
 0xa6b   :  { %2211 = vmatpush1.msra.mxu1 %v1834_v15 }
 0xa6c   :  { %2212 = vmatprep.subr.mxu1 %v1829_v60 }
 0xa6d   :  { %2213 = vmatpush1.msra.mxu1 %v1828_v21 }
 0xa6e   :  { %2214 = vmatprep.subr.mxu1 %v1823_v1 }
 0xa6f   :  { %2215 = vmatpush1.msra.mxu1 %v1822_v2 }
 0xa70   :  { %2216 = vmatprep.subr.mxu1 %v2009_v3 }
 0xa71   :  { %2217 = vmatpush2.msra.mxu1 %v2008_v53 }
 0xa72   :  { %2218 = vmatprep.subr.mxu1 %v2003_v8 }
 0xa73   :  { %2219 = vmatpush2.msra.mxu1 %v2002_v44 }
 0xa74   :  { %2220 = vmatprep.subr.mxu1 %v1997_v12 }
 0xa75   :  { %2221 = vmatpush2.msra.mxu1 %v1996_v45 }
 0xa76   :  { %2222 = vmatprep.subr.mxu1 %v1991_v62 }
 0xa77   :  { %2223 = vmatpush2.msra.mxu1 %v1990_v63 }
 0xa78   :  { %2224 = vmatprep.subr.mxu1 %v1985_v11 }
 0xa79   :  { %2225 = vmatpush2.msra.mxu1 %v1984_v13 }
 0xa7a   :  { %2226 = vmatprep.subr.mxu1 %v1979_v14 }
 0xa7b   :  { %2227 = vmatpush2.msra.mxu1 %v1978_v17 }
 0xa7c   :  { %2228 = vmatprep.subr.mxu1 %v1973_v49 }
 0xa7d   :  { %2229 = vmatpush2.msra.mxu1 %v1972_v10 }
 0xa7e   :  { %2230 = vmatprep.subr.mxu1 %v1967_v18 }
 0xa7f   :  { %2231 = vmatpush2.msra.mxu1 %v1966_v50 }
 0xa80   :  { %2232 = vmatprep.subr.mxu1 %v1961_v19 }
 0xa81   :  { %2233 = vmatpush2.msra.mxu1 %v1960_v32 }
 0xa82   :  { %2234 = vmatprep.subr.mxu1 %v1955_v20 }
 0xa83   :  { %2235 = vmatpush2.msra.mxu1 %v1954_v24 }
 0xa84   :  { %2236 = vmatprep.subr.mxu1 %v1949_v25 }
 0xa85   :  { %2237 = vmatpush2.msra.mxu1 %v1948_v26 }
 0xa86   :  { %2238 = vmatprep.subr.mxu1 %v1943_v27 }
 0xa87   :  { %2239 = vmatpush2.msra.mxu1 %v1942_v28 }
 0xa88   :  { %2240 = vmatprep.subr.mxu1 %v1937_v29 }
 0xa89   :  { %2241 = vmatpush2.msra.mxu1 %v1936_v30 }
 0xa8a   :  { %2242 = vmatprep.subr.mxu1 %v1931_v31  ;;  %v1910_v31 = vld [vmem:[#allocation10 + $0x9e8] sm:$0xff] }
 0xa8b   :  { %2243 = vmatpush2.msra.mxu1 %v1930_v34 }
 0xa8c   :  { %2244 = vmatprep.subr.mxu1 %v1925_v39  ;;  %v1905_v39 = vld [vmem:[#allocation10 + $0x948] sm:$0xff] }
 0xa8d   :  { %2245 = vmatpush2.msra.mxu1 %v1924_v40 }
 0xa8e   :  { %2246 = vmatprep.subr.mxu1 %v1919_v41  ;;  %v1904_v41 = vld [vmem:[#allocation10 + $0x940] sm:$0xff] }
 0xa8f   :  { %2247 = vmatpush2.msra.mxu1 %v1918_v42 }
 0xa90   :  { %2249 = vmatmul.mubr.f32.vlgmr.msra.gmra.mxu1 %v4962_v33 }
 0xad0   :  { %v1477_v48 = vpop.f32.mrf.mxu1 }
 0xad1   :  { %v1478_v51 = vadd.f32 %v1477_v48, %v1404_v46  ;;  %v1893_v48 = vld [vmem:[#allocation10 + $0x7f8] sm:$0xff] }
 0xad2   :  { %v1479_v52 = vpop.f32.mrf.mxu1 }
 0xad3   :  { %v1488_v54 = vmul.f32 %v1478_v51, %v1478_v51  ;;  %v1480_v55 = vadd.f32 %v1479_v52, %v1408_v47  ;;  %v1892_v52 = vld [vmem:[#allocation10 + $0x7f0] sm:$0xff] }
 0xad4   :  { %v1483_v56 = vpop.f32.mrf.mxu1 }
 0xad5   :  { %v1492_v16 = vmul.f32 %v1488_v54, %v1478_v51  ;;  %v1489_v57 = vmul.f32 %v1480_v55, %v1480_v55  ;;  %v1484_v58 = vadd.f32 %v1483_v56, %v1404_v46  ;;  %v1886_v54 = vld [vmem:[#allocation10 + $0x748] sm:$0xff]  ;;  %v1880_v56 = vld [vmem:[#allocation10 + $0x6a0] sm:$0xff] }
 0xad6   :  { %v1485_v15 = vpop.f32.mrf.mxu1 }
 0xad7   :  { %v1496_v60 = vmul.f32 0.044715, %v1492_v16  ;;  %v1493_v21 = vmul.f32 %v1489_v57, %v1480_v55  ;;  %v1490_v1 = vmul.f32 %v1484_v58, %v1484_v58  ;;  %v1486_v2 = vadd.f32 %v1485_v15, %v1408_v47  ;;  %v1898_v47 = vld [vmem:[#allocation10 + $0x898] sm:$0xff]  ;;  %v1875_v16 = vld [vmem:[#allocation10 + $0x600] sm:$0xff]  ;;  %v1868_v15 = vld [vmem:[#allocation10 + $0x550] sm:$0xff] }
 0xad8   :  { %v1874_v57 = vld [vmem:[#allocation10 + $0x5f8] sm:$0xff] }
 0xad9   :  { %v1500_v3 = vadd.f32 %v1496_v60, %v1478_v51  ;;  %v1497_v53 = vmul.f32 0.044715, %v1493_v21  ;;  %v1494_v8 = vmul.f32 %v1490_v1, %v1484_v58  ;;  %v1491_v44 = vmul.f32 %v1486_v2, %v1486_v2  ;;  %v1863_v60 = vld [vmem:[#allocation10 + $0x4b0] sm:$0xff]  ;;  %v1862_v21 = vld [vmem:[#allocation10 + $0x4a8] sm:$0xff]  ;;  %v1856_v1 = vld [vmem:[#allocation10 + $0x400] sm:$0xff] }
 0xadb   :  { %v1504_v12 = vmul.f32 0.7978846, %v1500_v3  ;;  %v1501_v45 = vadd.f32 %v1497_v53, %v1480_v55  ;;  %v1498_v62 = vmul.f32 0.044715, %v1494_v8  ;;  %v1495_v63 = vmul.f32 %v1491_v44, %v1486_v2  ;;  %v1850_v3 = vld [vmem:[#allocation10 + $0x358] sm:$0xff]  ;;  %v1844_v8 = vld [vmem:[#allocation10 + $0x2b0] sm:$0xff] }
 0xadc   :  { %v1845_v53 = vld [vmem:[#allocation10 + $0x2b8] sm:$0xff]  ;;  %v1839_v44 = vld [vmem:[#allocation10 + $0x210] sm:$0xff] }
 0xadd   :  { %4479 = vtanh.f32 %v1504_v12  ;;  %v1505_v11 = vmul.f32 0.7978846, %v1501_v45  ;;  %v1502_v13 = vadd.f32 %v1498_v62, %v1484_v58  ;;  %v1499_v14 = vmul.f32 0.044715, %v1495_v63  ;;  %v1838_v12 = vld [vmem:[#allocation10 + $0x208] sm:$0xff]  ;;  %v1832_v62 = vld [vmem:[#allocation10 + $0x160] sm:$0xff] }
 0xade   :  { %v1833_v45 = vld [vmem:[#allocation10 + $0x168] sm:$0xff]  ;;  %v1827_v63 = vld [vmem:[#allocation10 + $0xc0] sm:$0xff] }
 0xadf   :  { %4481 = vtanh.f32 %v1505_v11  ;;  %v1506_v17 = vmul.f32 0.7978846, %v1502_v13  ;;  %v1503_v49 = vadd.f32 %v1499_v14, %v1486_v2  ;;  %v1826_v11 = vld [vmem:[#allocation10 + $0xb8] sm:$0xff]  ;;  %v1820_v14 = vld [vmem:[#allocation10 + $0x10] sm:$0xff] }
 0xae0   :  { %v1821_v13 = vld [vmem:[#allocation10 + $0x18] sm:$0xff] }
 0xae1   :  { %4483 = vtanh.f32 %v1506_v17  ;;  %v1507_v10 = vmul.f32 0.7978846, %v1503_v49  ;;  %v2007_v17 = vld [vmem:[#allocation10 + $0x1470] sm:$0xff]  ;;  %v2006_v49 = vld [vmem:[#allocation10 + $0x1468] sm:$0xff] }
 0xae3   :  { %4485 = vtanh.f32 %v1507_v10  ;;  %v2001_v10 = vld [vmem:[#allocation10 + $0x13c8] sm:$0xff] }
 0xaea   :  { %v4480_v18 = vpop.eup %4479 }
 0xaeb   :  { %v1512_v50 = vadd.f32 1.0, %v4480_v18  ;;  %v2000_v18 = vld [vmem:[#allocation10 + $0x13c0] sm:$0xff] }
 0xaec   :  { %v4482_v19 = vpop.eup %4481 }
 0xaed   :  { %v1513_v32 = vadd.f32 1.0, %v4482_v19  ;;  %v1516_v24 = vmul.f32 0.5, %v1512_v50  ;;  %v1995_v50 = vld [vmem:[#allocation10 + $0x1320] sm:$0xff]  ;;  %v1994_v19 = vld [vmem:[#allocation10 + $0x1318] sm:$0xff] }
 0xaee   :  { %v4484_v20 = vpop.eup %4483 }
 0xaef   :  { %v1517_v25 = vmul.f32 0.5, %v1513_v32  ;;  %v1514_v26 = vadd.f32 1.0, %v4484_v20  ;;  %v1520_v30 = vmul.f32 %v1516_v24, %v1478_v51  ;;  %v1887_v51 = vld [vmem:[#allocation10 + $0x750] sm:$0xff]  ;;  %v1989_v32 = vld [vmem:[#allocation10 + $0x1278] sm:$0xff] }
 0xaf0   :  { %v4486_v27 = vpop.eup %4485  ;;  %v1988_v20 = vld [vmem:[#allocation10 + $0x1270] sm:$0xff] }
 0xaf1   :  { %v1521_v28 = vmul.f32 %v1517_v25, %v1480_v55  ;;  %v1515_v29 = vadd.f32 1.0, %v4486_v27  ;;  %v1518_v34 = vmul.f32 0.5, %v1514_v26  ;;  %v1881_v55 = vld [vmem:[#allocation10 + $0x6a8] sm:$0xff]  ;;  %v1983_v24 = vld [vmem:[#allocation10 + $0x11d0] sm:$0xff]  ;;  %v1976_v27 = vld [vmem:[#allocation10 + $0x1120] sm:$0xff] }
 0xaf2   :  { %v1982_v25 = vld [vmem:[#allocation10 + $0x11c8] sm:$0xff] }
 0xaf3   :  { %1652 = vmatprep.mubr.f32.mxu0 %v1521_v28  ;;  %v1519_v40 = vmul.f32 0.5, %v1515_v29  ;;  %v1522_v46 = vmul.f32 %v1518_v34, %v1484_v58  ;;  %v1869_v58 = vld [vmem:[#allocation10 + $0x558] sm:$0xff]  ;;  %v1977_v26 = vld [vmem:[#allocation10 + $0x1128] sm:$0xff]  ;;  %v1971_v28 = vld [vmem:[#allocation10 + $0x1080] sm:$0xff] }
 0xaf4   :  { %1653 = vmatmul.mubr.f32.vlgmr.msra.gmra.mxu0 %v1520_v30  ;;  %v1970_v29 = vld [vmem:[#allocation10 + $0x1078] sm:$0xff]  ;;  %v1959_v34 = vld [vmem:[#allocation10 + $0xf30] sm:$0xff] }
 0xaf5   :  { %2114 = vmatpush1.msra.mxu0 %v1910_v31  ;;  %v1523_v42 = vmul.f32 %v1519_v40, %v1486_v2  ;;  %v1851_v2 = vld [vmem:[#allocation10 + $0x360] sm:$0xff]  ;;  %v1965_v30 = vld [vmem:[#allocation10 + $0xfd8] sm:$0xff]  ;;  %v1964_v31 = vld [vmem:[#allocation10 + $0xfd0] sm:$0xff] }
 0xaf6   :  { %2115 = vmatprep.subr.mxu0 %v1905_v39  ;;  %v1958_v39 = vld [vmem:[#allocation10 + $0xf28] sm:$0xff] }
 0xaf7   :  { %2116 = vmatpush1.msra.mxu0 %v1904_v41  ;;  %1658 = vmatprep.mubr.f32.mxu0 %v1523_v42  ;;  %v1953_v40 = vld [vmem:[#allocation10 + $0xe88] sm:$0xff]  ;;  %v1952_v41 = vld [vmem:[#allocation10 + $0xe80] sm:$0xff] }
 0xaf8   :  { %2117 = vmatprep.subr.mxu0 %v1899_v43  ;;  %1659 = vmatmul.mubr.f32.gmra.mxu0 %v1522_v46  ;;  %v1947_v42 = vld [vmem:[#allocation10 + $0xde0] sm:$0xff]  ;;  %v1946_v43 = vld [vmem:[#allocation10 + $0xdd8] sm:$0xff] }
 0xaf9   :  { %2118 = vmatpush1.msra.mxu0 %v1898_v47  ;;  %2177 = vmatprep.mubr.f32.mxu0 %v4960_v59  ;;  %v1857_v59 = vld [vmem:[#allocation10 + $0x408] sm:$0xff]  ;;  %v1941_v46 = vld [vmem:[#allocation10 + $0xd38] sm:$0xff]  ;;  %v1940_v47 = vld [vmem:[#allocation10 + $0xd30] sm:$0xff] }
 0xafa   :  { %2119 = vmatprep.subr.mxu0 %v1893_v48  ;;  %v1935_v48 = vld [vmem:[#allocation10 + $0xc90] sm:$0xff] }
 0xafb   :  { %2120 = vmatpush1.msra.mxu0 %v1892_v52  ;;  %v1934_v52 = vld [vmem:[#allocation10 + $0xc88] sm:$0xff] }
 0xafc   :  { %2121 = vmatprep.subr.mxu0 %v1887_v51  ;;  %v1929_v51 = vld [vmem:[#allocation10 + $0xbe8] sm:$0xff] }
 0xafd   :  { %2122 = vmatpush1.msra.mxu0 %v1886_v54  ;;  %v1928_v54 = vld [vmem:[#allocation10 + $0xbe0] sm:$0xff] }
 0xafe   :  { %2123 = vmatprep.subr.mxu0 %v1881_v55  ;;  %v1923_v55 = vld [vmem:[#allocation10 + $0xb40] sm:$0xff] }
 0xaff   :  { %2124 = vmatpush1.msra.mxu0 %v1880_v56  ;;  %v1922_v56 = vld [vmem:[#allocation10 + $0xb38] sm:$0xff] }
 0xb00   :  { %2125 = vmatprep.subr.mxu0 %v1875_v16  ;;  %v1917_v16 = vld [vmem:[#allocation10 + $0xa98] sm:$0xff] }
 0xb01   :  { %2126 = vmatpush1.msra.mxu0 %v1874_v57  ;;  %v1916_v57 = vld [vmem:[#allocation10 + $0xa90] sm:$0xff] }
 0xb02   :  { %2127 = vmatprep.subr.mxu0 %v1869_v58  ;;  %v2010_v58 = vld [vmem:[#allocation12 + $0x1e] sm:$0x3f] }
 0xb03   :  { %2128 = vmatpush1.msra.mxu0 %v1868_v15 }
 0xb04   :  { %2129 = vmatprep.subr.mxu0 %v1863_v60  ;;  %v2019_v60 = vrot.slane %v2010_v58, %v4752_v38 }
 0xb05   :  { %2130 = vmatpush1.msra.mxu0 %v1862_v21 }
 0xb06   :  { %2131 = vmatprep.subr.mxu0 %v1857_v59 }
 0xb07   :  { %2132 = vmatpush1.msra.mxu0 %v1856_v1 }
 0xb08   :  { %2133 = vmatprep.subr.mxu0 %v1851_v2 }
 0xb09   :  { %2134 = vmatpush1.msra.mxu0 %v1850_v3 }
 0xb0a   :  { %2135 = vmatprep.subr.mxu0 %v1845_v53  ;;  %v4982_v53 = vld [vmem:[#allocation12 + $0x14] sm:$0x3] }
 0xb0b   :  { %2136 = vmatpush1.msra.mxu0 %v1844_v8  ;;  %v4986_v8 = vrot.slane %v4982_v53, %v4752_v38 }
 0xb0c   :  { %2137 = vmatprep.subr.mxu0 %v1839_v44 }
 0xb0d   :  { %2138 = vmatpush1.msra.mxu0 %v1838_v12 }
 0xb0e   :  { %2139 = vmatprep.subr.mxu0 %v1833_v45  ;;  %v2023_v45 = vrot.slane %v2010_v58, %v4821_v9 }
 0xb0f   :  { %2140 = vmatpush1.msra.mxu0 %v1832_v62  ;;  %v2015_v62 = vrot.slane %v2010_v58, %v4749_v37 }
 0xb10   :  { %2141 = vmatprep.subr.mxu0 %v1827_v63  ;;  %v2108_v15 = vpop.f32.mrf.mxu1 }
 0xb11   :  { %2142 = vmatpush1.msra.mxu0 %v1826_v11  ;;  %v2031_v11 = vrot.slane %v2010_v58, %v510_v23 }
 0xb12   :  { %2143 = vmatprep.subr.mxu0 %v1821_v13  ;;  %v2110_v21 = vpop.f32.mrf.mxu1 }
 0xb13   :  { %2144 = vmatpush1.msra.mxu0 %v1820_v14  ;;  %v2111_v59 = vadd.f32 %v2110_v21, %v2019_v60  ;;  %v2109_v14 = vadd.f32 %v2108_v15, %v2015_v62  ;;  %v2285_v15 = vld [vmem:[#allocation10 + $0xa08] sm:$0xff]  ;;  %v2283_v21 = vld [vmem:[#allocation10 + $0x960] sm:$0xff]  ;;  %v2278_v62 = vld [vmem:[#allocation10 + $0x770] sm:$0xff] }
 0xb14   :  { %2145 = vmatprep.subr.mxu0 %v2007_v17  ;;  %v2284_v60 = vld [vmem:[#allocation10 + $0x968] sm:$0xff] }
 0xb15   :  { %2146 = vmatpush2.msra.mxu0 %v2006_v49 }
 0xb16   :  { %2147 = vmatprep.subr.mxu0 %v2001_v10  ;;  %v4674_v10 = vmov -1e+30  }
 0xb17   :  { %2148 = vmatpush2.msra.mxu0 %v2000_v18 }
 0xb18   :  { %2149 = vmatprep.subr.mxu0 %v1995_v50 }
 0xb19   :  { %2150 = vmatpush2.msra.mxu0 %v1994_v19 }
 0xb1a   :  { %2151 = vmatprep.subr.mxu0 %v1989_v32 }
 0xb1b   :  { %2152 = vmatpush2.msra.mxu0 %v1988_v20 }
 0xb1c   :  { %2153 = vmatprep.subr.mxu0 %v1983_v24 }
 0xb1d   :  { %2154 = vmatpush2.msra.mxu0 %v1982_v25 }
 0xb1e   :  { %2155 = vmatprep.subr.mxu0 %v1977_v26 }
 0xb1f   :  { %2156 = vmatpush2.msra.mxu0 %v1976_v27 }
 0xb20   :  { %2157 = vmatprep.subr.mxu0 %v1971_v28 }
 0xb21   :  { %2158 = vmatpush2.msra.mxu0 %v1970_v29  ;;  %v2027_v29 = vrot.slane %v2010_v58, %v4814_v5 }
 0xb22   :  { %2159 = vmatprep.subr.mxu0 %v1965_v30 }
 0xb23   :  { %2160 = vmatpush2.msra.mxu0 %v1964_v31 }
 0xb24   :  { %2161 = vmatprep.subr.mxu0 %v1959_v34  ;;  %v2035_v34 = vrot.slane %v2010_v58, %v514_v22 }
 0xb25   :  { %2162 = vmatpush2.msra.mxu0 %v1958_v39 }
 0xb26   :  { %2163 = vmatprep.subr.mxu0 %v1953_v40 }
 0xb27   :  { %2164 = vmatpush2.msra.mxu0 %v1952_v41 }
 0xb28   :  { %2165 = vmatprep.subr.mxu0 %v1947_v42 }
 0xb29   :  { %2166 = vmatpush2.msra.mxu0 %v1946_v43 }
 0xb2a   :  { %2167 = vmatprep.subr.mxu0 %v1941_v46 }
 0xb2b   :  { %2168 = vmatpush2.msra.mxu0 %v1940_v47 }
 0xb2c   :  { %2169 = vmatprep.subr.mxu0 %v1935_v48 }
 0xb2d   :  { %2170 = vmatpush2.msra.mxu0 %v1934_v52 }
 0xb2e   :  { %2171 = vmatprep.subr.mxu0 %v1929_v51 }
 0xb2f   :  { %2172 = vmatpush2.msra.mxu0 %v1928_v54 }
 0xb30   :  { %2173 = vmatprep.subr.mxu0 %v1923_v55 }
 0xb31   :  { %2174 = vmatpush2.msra.mxu0 %v1922_v56  ;;  %v2286_v56 = vld [vmem:[#allocation10 + $0xa10] sm:$0xff] }
 0xb32   :  { %2175 = vmatprep.subr.mxu0 %v1917_v16 }
 0xb33   :  { %2176 = vmatpush2.msra.mxu0 %v1916_v57 }
 0xb34   :  { %2178 = vmatmul.mubr.f32.vlgmr.msra.gmra.mxu0 %v4962_v33  ;;  %4385 = vmatprep.subr.mxu0 %v4672_v0 }
 0xb35   :  { %4387 = vmatprep.mubr.msk.f32.mxu0 %vm4673_vm2, %v4672_v0 }
 0xb50   :  { %v2250_v17 = vpop.f32.mrf.mxu1 }
 0xb51   :  { %v2251_v49 = vadd.f32 %v2250_v17, %v2031_v11  ;;  %v2276_v11 = vld [vmem:[#allocation10 + $0x6c8] sm:$0xff]  ;;  %v2273_v17 = vld [vmem:[#allocation10 + $0x618] sm:$0xff] }
 0xb52   :  { %v2252_v40 = vpop.f32.mrf.mxu1 }
 0xb53   :  { %v2253_v41 = vadd.f32 %v2252_v40, %v2035_v34  ;;  %v2255_v34 = vld [vmem:[#allocation10 + $0x30] sm:$0xff]  ;;  %v2317_v40 = vld [vmem:[#allocation10 + $0x1488] sm:$0xff] }
 0xbb4   :  { %v4976_v1 = vpop.f32.mrf.mxu0 }
 0xbb6   :  { %v4978_v2 = vpop.f32.mrf.mxu0 }
 0xbb8   :  { %v4980_v3 = vpop.f32.mrf.mxu0 }
 0xbba   :  { %v1662_v33 = vpop.f32.mrf.mxu0 }
 0xbbb   :  { %v1668_v44 = vadd.f32 %v1662_v33, %v4871_v4  ;;  %v5001_v4 = vand.u32 127, %v146_v35  ;;  %v2281_v33 = vld [vmem:[#allocation10 + $0x8b8] sm:$0xff] }
 0xbbd   :  { %v4990_v12 = vadd.f32 %v4986_v8, %v1668_v44  ;;  %vm2324_vm3 = vcmp.le.s32.totalorder %v5001_v4, %v4746_v36  ;;  %v2280_v44 = vld [vmem:[#allocation10 + $0x818] sm:$0xff] }
 0xbbe   :  { %v2325_v18 = vsel %vm2324_vm3, 0.0, %v4674_v10  ;;  %v2270_v10 = vld [vmem:[#allocation10 + $0x4d0] sm:$0xff] }
 0xbf4   :  { %v2179_v63 = vpop.f32.mrf.mxu0 }
 0xbf5   :  { %v2180_v13 = vadd.f32 %v2179_v63, %v2023_v45  ;;  %v2279_v45 = vld [vmem:[#allocation10 + $0x810] sm:$0xff]  ;;  %v2277_v63 = vld [vmem:[#allocation10 + $0x768] sm:$0xff] }
 0xbf6   :  { %v2181_v23 = vpop.f32.mrf.mxu0 }
 0xbf7   :  { %4386 = vmatpush3.xpose.msra.mxu0 %v2180_v13  ;;  %v2182_v39 = vadd.f32 %v2181_v23, %v2027_v29  ;;  %v2275_v13 = vld [vmem:[#allocation10 + $0x6c0] sm:$0xff]  ;;  %v2271_v23 = vld [vmem:[#allocation10 + $0x570] sm:$0xff] }
 0xbf8   :  { %4390 = vmatprep.subr.mxu0 %v4672_v0  ;;  %v2258_v29 = vld [vmem:[#allocation10 + $0xe0] sm:$0xff] }
 0xbfa   :  { %4388 = vmatmul.mubr.f32.vlgmr.msra.gmra.mxu0 %v2109_v14  ;;  %v2274_v14 = vld [vmem:[#allocation10 + $0x620] sm:$0xff] }
 0xbfb   :  { %4391 = vmatpush3.msra.mxu0 %v2251_v49  ;;  %4392 = vmatprep.mubr.msk.f32.mxu0 %vm4673_vm2, %v4672_v0  ;;  %v2272_v49 = vld [vmem:[#allocation10 + $0x578] sm:$0xff] }
 0xbfc   :  { %4395 = vmatprep.subr.mxu0 %v4672_v0 }
 0xcba   :  { %v2392_v50 = vpop.f32.mrf.mxu0 }
 0xcbb   :  { %v2393_v19 = vadd.f32 %v2392_v50, %v2325_v18  ;;  %v2268_v50 = vld [vmem:[#allocation10 + $0x428] sm:$0xff] }
 0xcbc   :  { %v4389_v32 = vpop.f32.mrf.mxu0 }
 0xcbd   :  { %v2397_v20 = vsel %vm2396_vm4, %v2393_v19, -inf  ;;  %v2266_v32 = vld [vmem:[#allocation10 + $0x380] sm:$0xff] }
 0xcbe   :  { %2398 = vmax.xlane.f32.xlu1 %v2397_v20  ;;  %v2265_v20 = vld [vmem:[#allocation10 + $0x378] sm:$0xff] }
 0xd47   :  { %v2399_v24 = vpop.xlane.xlu1 %2398 }
 0xd48   :  { %v2400_v25 = vsub.f32 %v2393_v19, %v2399_v24  ;;  %v2267_v19 = vld [vmem:[#allocation10 + $0x420] sm:$0xff]  ;;  %v2264_v24 = vld [vmem:[#allocation10 + $0x2d8] sm:$0xff] }
 0xd4a   :  { %v2401_v26 = vmul.f32 1.442695, %v2400_v25  ;;  %v2263_v25 = vld [vmem:[#allocation10 + $0x2d0] sm:$0xff] }
 0xd4c   :  { %4487 = vpow2.f32 %v2401_v26  ;;  %v2262_v26 = vld [vmem:[#allocation10 + $0x230] sm:$0xff] }
 0xd59   :  { %v4488_v27 = vpop.eup %4487 }
 0xd5a   :  { %v2403_v35 = vsel %vm2396_vm4, %v4488_v27, 0.0 }
 0xd5b   :  { %2404 = vadd.xlane.f32.xlu0 %v2403_v35  ;;  %v2260_v35 = vld [vmem:[#allocation10 + $0x188] sm:$0xff] }
 0xde4   :  { %v2405_v28 = vpop.xlane.xlu0 %2404 }
 0xde5   :  { %4489 = vrcp.f32 %v2405_v28  ;;  %v2259_v28 = vld [vmem:[#allocation10 + $0x180] sm:$0xff] }
 0xdf2   :  { %v4490_v30 = vpop.eup %4489 }
 0xdf3   :  { %v2407_v31 = vmul.f32 %v4490_v30, %v4488_v27  ;;  %v2261_v27 = vld [vmem:[#allocation10 + $0x228] sm:$0xff]  ;;  %v2257_v30 = vld [vmem:[#allocation10 + $0xd8] sm:$0xff] }
 0xdf5   :  { %4393 = vmatmul.mubr.msk.f32.vlgmr.msra.gmra.mxu0 %vm2396_vm4, %v2407_v31  ;;  %v2256_v31 = vld [vmem:[#allocation10 + $0x38] sm:$0xff] }
 0xdf6   :  { %4396 = vmatpush3.xpose.msra.mxu0 %v2182_v39  ;;  %4397 = vmatprep.mubr.msk.f32.mxu0 %vm4673_vm2, %v4672_v0  ;;  %v2318_v39 = vld [vmem:[#allocation10 + $0x1490] sm:$0xff] }
 0xdf7   :  { %4400 = vmatprep.subr.mxu0 %v4672_v0 }
 0xdf9   :  { %4398 = vmatmul.mubr.f32.vlgmr.msra.gmra.mxu0 %v2111_v59  ;;  %v2282_v59 = vld [vmem:[#allocation10 + $0x8c0] sm:$0xff] }
 0xdfa   :  { %4401 = vmatpush3.msra.mxu0 %v2253_v41  ;;  %4402 = vmatprep.mubr.msk.f32.mxu0 %vm4673_vm2, %v4672_v0  ;;  %v2316_v41 = vld [vmem:[#allocation10 + $0x13e8] sm:$0xff] }
 0xdfb   :  { %2646 = vmatprep.subr.mxu0 %v2286_v56  ;;  %v2305_v56 = vld [vmem:[#allocation10 + $0x1098] sm:$0xff] }
 0xeb5   :  { %v5016_v42 = vpop.f32.mrf.mxu0 }
 0xeb7   :  { %v4394_v36 = vpop.f32.mrf.mxu0 }
 0xeb8   :  { %v2315_v36 = vld [vmem:[#allocation10 + $0x13e0] sm:$0xff] }
 0xeb9   :  { %v2547_v22 = vpop.f32.mrf.mxu0 }
 0xeba   :  { %v2548_v43 = vadd.f32 %v2547_v22, %v2325_v18  ;;  %v2269_v18 = vld [vmem:[#allocation10 + $0x4c8] sm:$0xff]  ;;  %v2314_v22 = vld [vmem:[#allocation10 + $0x1340] sm:$0xff] }
 0xebb   :  { %v4399_v46 = vpop.f32.mrf.mxu0 }
 0xebc   :  { %v2551_v47 = vsel %vm2396_vm4, %v2548_v43, -inf  ;;  %v2312_v46 = vld [vmem:[#allocation10 + $0x1298] sm:$0xff] }
 0xebd   :  { %2552 = vmax.xlane.f32.xlu1 %v2551_v47  ;;  %v2311_v47 = vld [vmem:[#allocation10 + $0x1290] sm:$0xff] }
 0xf46   :  { %v2553_v48 = vpop.xlane.xlu1 %2552 }
 0xf47   :  { %v2554_v52 = vsub.f32 %v2548_v43, %v2553_v48  ;;  %v2313_v43 = vld [vmem:[#allocation10 + $0x1338] sm:$0xff]  ;;  %v2310_v48 = vld [vmem:[#allocation10 + $0x11f0] sm:$0xff] }
 0xf49   :  { %v2555_v51 = vmul.f32 1.442695, %v2554_v52  ;;  %v2309_v52 = vld [vmem:[#allocation10 + $0x11e8] sm:$0xff] }
 0xf4b   :  { %4491 = vpow2.f32 %v2555_v51  ;;  %v2308_v51 = vld [vmem:[#allocation10 + $0x1148] sm:$0xff] }
 0xf58   :  { %v4492_v54 = vpop.eup %4491 }
 0xf59   :  { %v2557_v55 = vsel %vm2396_vm4, %v4492_v54, 0.0 }
 0xf5a   :  { %2558 = vadd.xlane.f32.xlu0 %v2557_v55  ;;  %v2306_v55 = vld [vmem:[#allocation10 + $0x10a0] sm:$0xff] }
 0xfe3   :  { %v2559_v16 = vpop.xlane.xlu0 %2558 }
 0xfe4   :  { %4493 = vrcp.f32 %v2559_v16  ;;  %v2304_v16 = vld [vmem:[#allocation10 + $0xff8] sm:$0xff] }
 0xff1   :  { %v4494_v57 = vpop.eup %4493 }
 0xff2   :  { %v2561_v58 = vmul.f32 %v4494_v57, %v4492_v54  ;;  %v2307_v54 = vld [vmem:[#allocation10 + $0x1140] sm:$0xff]  ;;  %v2303_v57 = vld [vmem:[#allocation10 + $0xff0] sm:$0xff] }
 0xff4   :  { %4403 = vmatmul.mubr.msk.f32.vlgmr.msra.gmra.mxu0 %vm2396_vm4, %v2561_v58  ;;  %v2302_v58 = vld [vmem:[#allocation10 + $0xf50] sm:$0xff]  ;;  %vm4173_vm4 = vcmask 1047559  }
 0xff5   :  { %2647 = vmatpush1.msra.mxu0 %v2285_v15  ;;  %v2301_v15 = vld [vmem:[#allocation10 + $0xf48] sm:$0xff] }
 0xff6   :  { %2648 = vmatprep.subr.mxu0 %v2284_v60  ;;  %v2300_v60 = vld [vmem:[#allocation10 + $0xea8] sm:$0xff] }
 0xff7   :  { %2649 = vmatpush1.msra.mxu0 %v2283_v21  ;;  %v2299_v21 = vld [vmem:[#allocation10 + $0xea0] sm:$0xff] }
 0xff8   :  { %2650 = vmatprep.subr.mxu0 %v2282_v59  ;;  %v2298_v59 = vld [vmem:[#allocation10 + $0xe00] sm:$0xff] }
 0xff9   :  { %2651 = vmatpush1.msra.mxu0 %v2281_v33  ;;  %v2297_v33 = vld [vmem:[#allocation10 + $0xdf8] sm:$0xff] }
 0xffa   :  { %2652 = vmatprep.subr.mxu0 %v2280_v44  ;;  %v2296_v44 = vld [vmem:[#allocation10 + $0xd58] sm:$0xff] }
 0xffb   :  { %2653 = vmatpush1.msra.mxu0 %v2279_v45  ;;  %v2295_v45 = vld [vmem:[#allocation10 + $0xd50] sm:$0xff] }
 0xffc   :  { %2654 = vmatprep.subr.mxu0 %v2278_v62  ;;  %v2294_v62 = vld [vmem:[#allocation10 + $0xcb0] sm:$0xff] }
 0xffd   :  { %2655 = vmatpush1.msra.mxu0 %v2277_v63  ;;  %v2293_v63 = vld [vmem:[#allocation10 + $0xca8] sm:$0xff] }
 0xffe   :  { %2656 = vmatprep.subr.mxu0 %v2276_v11  ;;  %v2292_v11 = vld [vmem:[#allocation10 + $0xc08] sm:$0xff] }
 0xfff   :  { %2657 = vmatpush1.msra.mxu0 %v2275_v13  ;;  %v2291_v13 = vld [vmem:[#allocation10 + $0xc00] sm:$0xff] }
0x1000   :  { %2658 = vmatprep.subr.mxu0 %v2274_v14  ;;  %v2290_v14 = vld [vmem:[#allocation10 + $0xb60] sm:$0xff] }
0x1001   :  { %2659 = vmatpush1.msra.mxu0 %v2273_v17  ;;  %v2289_v17 = vld [vmem:[#allocation10 + $0xb58] sm:$0xff] }
0x1002   :  { %2660 = vmatprep.subr.mxu0 %v2272_v49  ;;  %v2288_v49 = vld [vmem:[#allocation10 + $0xab8] sm:$0xff] }
0x1003   :  { %2661 = vmatpush1.msra.mxu0 %v2271_v23  ;;  %v2287_v23 = vld [vmem:[#allocation10 + $0xab0] sm:$0xff] }
0x1004   :  { %2662 = vmatprep.subr.mxu0 %v2270_v10  ;;  %v2951_v10 = vld [vmem:[#allocation10 + $0xa30] sm:$0xff] }
0x1005   :  { %2663 = vmatpush1.msra.mxu0 %v2269_v18  ;;  %v1666_v18 = vadd.f32 %v4978_v2, %v4863_v7  ;;  %v2938_v7 = vld [vmem:[#allocation10 + $0x830] sm:$0xff] }
0x1006   :  { %2664 = vmatprep.subr.mxu0 %v2268_v50  ;;  %v2935_v2 = vld [vmem:[#allocation10 + $0x790] sm:$0xff] }
0x1007   :  { %2665 = vmatpush1.msra.mxu0 %v2267_v19  ;;  %v2950_v19 = vld [vmem:[#allocation10 + $0xa28] sm:$0xff] }
0x1008   :  { %2666 = vmatprep.subr.mxu0 %v2266_v32  ;;  %v5024_v32 = vadd.f32 %v4986_v8, %v1666_v18  ;;  %v2934_v8 = vld [vmem:[#allocation10 + $0x788] sm:$0xff] }
0x1009   :  { %2667 = vmatpush1.msra.mxu0 %v2265_v20  ;;  %v2947_v20 = vld [vmem:[#allocation10 + $0x988] sm:$0xff] }
0x100a   :  { %2668 = vmatprep.subr.mxu0 %v2264_v24  ;;  %v2982_v18 = vld [vmem:[#allocation10 + $0xf68] sm:$0xff] }
0x100b   :  { %2669 = vmatpush1.msra.mxu0 %v2263_v25  ;;  %v2946_v25 = vld [vmem:[#allocation10 + $0x980] sm:$0xff] }
0x100c   :  { %2670 = vmatprep.subr.mxu0 %v2262_v26  ;;  %v2943_v26 = vld [vmem:[#allocation10 + $0x8e0] sm:$0xff] }
0x100d   :  { %2671 = vmatpush1.msra.mxu0 %v2261_v27  ;;  %v2942_v27 = vld [vmem:[#allocation10 + $0x8d8] sm:$0xff] }
0x100e   :  { %2672 = vmatprep.subr.mxu0 %v2260_v35  ;;  %v2939_v35 = vld [vmem:[#allocation10 + $0x838] sm:$0xff] }
0x100f   :  { %2673 = vmatpush1.msra.mxu0 %v2259_v28  ;;  %v2931_v28 = vld [vmem:[#allocation10 + $0x6e8] sm:$0xff] }
0x1010   :  { %2674 = vmatprep.subr.mxu0 %v2258_v29  ;;  %v2930_v29 = vld [vmem:[#allocation10 + $0x6e0] sm:$0xff] }
0x1011   :  { %2675 = vmatpush1.msra.mxu0 %v2257_v30  ;;  %v2926_v30 = vld [vmem:[#allocation10 + $0x638] sm:$0xff] }
0x1012   :  { %2676 = vmatprep.subr.mxu0 %v2256_v31  ;;  %v2923_v31 = vld [vmem:[#allocation10 + $0x598] sm:$0xff] }
0x1013   :  { %2677 = vmatpush1.msra.mxu0 %v2255_v34  ;;  %v2922_v34 = vld [vmem:[#allocation10 + $0x590] sm:$0xff] }
0x1014   :  { %2678 = vmatprep.subr.mxu0 %v2318_v39  ;;  %v2919_v39 = vld [vmem:[#allocation10 + $0x4f0] sm:$0xff] }
0x1015   :  { %2679 = vmatpush2.msra.mxu0 %v2317_v40  ;;  %v2918_v40 = vld [vmem:[#allocation10 + $0x4e8] sm:$0xff] }
0x1016   :  { %2680 = vmatprep.subr.mxu0 %v2316_v41  ;;  %v2915_v41 = vld [vmem:[#allocation10 + $0x448] sm:$0xff] }
0x1017   :  { %2681 = vmatpush2.msra.mxu0 %v2315_v36  ;;  %v2914_v36 = vld [vmem:[#allocation10 + $0x440] sm:$0xff] }
0x1018   :  { %2682 = vmatprep.subr.mxu0 %v2314_v22  ;;  %v2911_v22 = vld [vmem:[#allocation10 + $0x3a0] sm:$0xff] }
0x1019   :  { %2683 = vmatpush2.msra.mxu0 %v2313_v43  ;;  %v2910_v43 = vld [vmem:[#allocation10 + $0x398] sm:$0xff] }
0x101a   :  { %2684 = vmatprep.subr.mxu0 %v2312_v46  ;;  %v2907_v46 = vld [vmem:[#allocation10 + $0x2f8] sm:$0xff] }
0x101b   :  { %2685 = vmatpush2.msra.mxu0 %v2311_v47  ;;  %v2906_v47 = vld [vmem:[#allocation10 + $0x2f0] sm:$0xff] }
0x101c   :  { %2686 = vmatprep.subr.mxu0 %v2310_v48  ;;  %v2903_v48 = vld [vmem:[#allocation10 + $0x250] sm:$0xff] }
0x101d   :  { %2687 = vmatpush2.msra.mxu0 %v2309_v52  ;;  %v2902_v52 = vld [vmem:[#allocation10 + $0x248] sm:$0xff] }
0x101e   :  { %2688 = vmatprep.subr.mxu0 %v2308_v51  ;;  %v2899_v51 = vld [vmem:[#allocation10 + $0x1a8] sm:$0xff] }
0x101f   :  { %2689 = vmatpush2.msra.mxu0 %v2307_v54  ;;  %v2898_v54 = vld [vmem:[#allocation10 + $0x1a0] sm:$0xff] }
0x1020   :  { %2690 = vmatprep.subr.mxu0 %v2306_v55  ;;  %v2895_v55 = vld [vmem:[#allocation10 + $0x100] sm:$0xff] }
0x1021   :  { %2691 = vmatpush2.msra.mxu0 %v2305_v56  ;;  %v2894_v56 = vld [vmem:[#allocation10 + $0xf8] sm:$0xff] }
0x1022   :  { %2692 = vmatprep.subr.mxu0 %v2304_v16  ;;  %v2891_v16 = vld [vmem:[#allocation10 + $0x58] sm:$0xff] }
0x1023   :  { %2693 = vmatpush2.msra.mxu0 %v2303_v57  ;;  %v2890_v57 = vld [vmem:[#allocation10 + $0x50] sm:$0xff] }
0x1024   :  { %2694 = vmatprep.subr.mxu0 %v2302_v58  ;;  %v3015_v58 = vld [vmem:[#allocation10 + $0x14b0] sm:$0xff] }
0x1025   :  { %2695 = vmatpush2.msra.mxu0 %v2301_v15  ;;  %v3014_v15 = vld [vmem:[#allocation10 + $0x14a8] sm:$0xff] }
0x1026   :  { %2696 = vmatprep.subr.mxu0 %v2300_v60  ;;  %v3011_v60 = vld [vmem:[#allocation10 + $0x1408] sm:$0xff] }
0x1027   :  { %2697 = vmatpush2.msra.mxu0 %v2299_v21  ;;  %v3010_v21 = vld [vmem:[#allocation10 + $0x1400] sm:$0xff] }
0x1028   :  { %2698 = vmatprep.subr.mxu0 %v2298_v59  ;;  %v3007_v59 = vld [vmem:[#allocation10 + $0x1360] sm:$0xff] }
0x1029   :  { %2699 = vmatpush2.msra.mxu0 %v2297_v33  ;;  %v3006_v33 = vld [vmem:[#allocation10 + $0x1358] sm:$0xff] }
0x102a   :  { %2700 = vmatprep.subr.mxu0 %v2296_v44  ;;  %v3003_v44 = vld [vmem:[#allocation10 + $0x12b8] sm:$0xff] }
0x102b   :  { %2701 = vmatpush2.msra.mxu0 %v2295_v45  ;;  %v3002_v45 = vld [vmem:[#allocation10 + $0x12b0] sm:$0xff] }
0x102c   :  { %2702 = vmatprep.subr.mxu0 %v2294_v62  ;;  %v2999_v62 = vld [vmem:[#allocation10 + $0x1210] sm:$0xff] }
0x102d   :  { %2703 = vmatpush2.msra.mxu0 %v2293_v63  ;;  %v2998_v63 = vld [vmem:[#allocation10 + $0x1208] sm:$0xff] }
0x102e   :  { %2704 = vmatprep.subr.mxu0 %v2292_v11  ;;  %v2995_v11 = vld [vmem:[#allocation10 + $0x1168] sm:$0xff] }
0x102f   :  { %2705 = vmatpush2.msra.mxu0 %v2291_v13  ;;  %v2994_v13 = vld [vmem:[#allocation10 + $0x1160] sm:$0xff] }
0x1030   :  { %2706 = vmatprep.subr.mxu0 %v2290_v14  ;;  %v2991_v14 = vld [vmem:[#allocation10 + $0x10c0] sm:$0xff] }
0x1031   :  { %2707 = vmatpush2.msra.mxu0 %v2289_v17  ;;  %v2990_v17 = vld [vmem:[#allocation10 + $0x10b8] sm:$0xff] }
0x1032   :  { %2708 = vmatprep.subr.mxu0 %v2288_v49  ;;  %v2987_v49 = vld [vmem:[#allocation10 + $0x1018] sm:$0xff] }
0x1033   :  { %2709 = vmatpush2.msra.mxu0 %v2287_v23  ;;  %v2986_v23 = vld [vmem:[#allocation10 + $0x1010] sm:$0xff] }
0x1034   :  { %3040 = vmatprep.subr.mxu0 %v2951_v10  ;;  %v2983_v10 = vld [vmem:[#allocation10 + $0xf70] sm:$0xff] }
0x10b4   :  { %v2631_v50 = vpop.f32.mrf.mxu0 }
0x10b5   :  { %2710 = vmatprep.mubr.f32.mxu0 %v2631_v50  ;;  %v2979_v50 = vld [vmem:[#allocation10 + $0xec8] sm:$0xff] }
0x10b6   :  { %v4404_v24 = vpop.f32.mrf.mxu0  ;;  %2711 = vmatmul.mubr.f32.vlgmr.msra.gmra.mxu0 %v5016_v42  ;;  %v2927_v42 = vld [vmem:[#allocation10 + $0x640] sm:$0xff] }
0x10b7   :  { %3041 = vmatpush1.msra.mxu0 %v2950_v19  ;;  %3104 = vmatprep.mubr.f32.mxu0 %v5024_v32  ;;  %v2978_v19 = vld [vmem:[#allocation10 + $0xec0] sm:$0xff]  ;;  %v2974_v24 = vld [vmem:[#allocation10 + $0xe18] sm:$0xff] }
0x10b8   :  { %3042 = vmatprep.subr.mxu0 %v2947_v20  ;;  %v2975_v20 = vld [vmem:[#allocation10 + $0xe20] sm:$0xff] }
0x10b9   :  { %3043 = vmatpush1.msra.mxu0 %v2946_v25  ;;  %v2971_v25 = vld [vmem:[#allocation10 + $0xd78] sm:$0xff] }
0x10ba   :  { %3044 = vmatprep.subr.mxu0 %v2943_v26  ;;  %v2970_v26 = vld [vmem:[#allocation10 + $0xd70] sm:$0xff] }
0x10bb   :  { %3045 = vmatpush1.msra.mxu0 %v2942_v27  ;;  %v2967_v27 = vld [vmem:[#allocation10 + $0xcd0] sm:$0xff] }
0x10bc   :  { %3046 = vmatprep.subr.mxu0 %v2939_v35  ;;  %v2966_v35 = vld [vmem:[#allocation10 + $0xcc8] sm:$0xff] }
0x10bd   :  { %3047 = vmatpush1.msra.mxu0 %v2938_v7  ;;  %v2963_v7 = vld [vmem:[#allocation10 + $0xc28] sm:$0xff] }
0x10be   :  { %3048 = vmatprep.subr.mxu0 %v2935_v2  ;;  %v2962_v2 = vld [vmem:[#allocation10 + $0xc20] sm:$0xff] }
0x10bf   :  { %3049 = vmatpush1.msra.mxu0 %v2934_v8  ;;  %v2959_v8 = vld [vmem:[#allocation10 + $0xb80] sm:$0xff] }
0x10c0   :  { %3050 = vmatprep.subr.mxu0 %v2931_v28  ;;  %v1665_v28 = vadd.f32 %v4976_v1, %v4860_v6  ;;  %v2774_v1 = vld [vmem:[#allocation10 + $0xa20] sm:$0xff] }
0x10c1   :  { %3051 = vmatpush1.msra.mxu0 %v2930_v29  ;;  %v1674_v29 = vrot.slane %v4982_v53, %v4749_v37  ;;  %v2773_v53 = vld [vmem:[#allocation10 + $0xa18] sm:$0xff]  ;;  %2819 = vmatprep.subr.mxu1 %v2774_v1 }
0x10c2   :  { %3052 = vmatprep.subr.mxu0 %v2927_v42  ;;  %v2958_v42 = vld [vmem:[#allocation10 + $0xb78] sm:$0xff]  ;;  %2820 = vmatpush1.msra.mxu1 %v2773_v53 }
0x10c3   :  { %3053 = vmatpush1.msra.mxu0 %v2926_v30  ;;  %v2955_v30 = vld [vmem:[#allocation10 + $0xad8] sm:$0xff] }
0x10c4   :  { %3054 = vmatprep.subr.mxu0 %v2923_v31  ;;  %v2954_v31 = vld [vmem:[#allocation10 + $0xad0] sm:$0xff] }
0x10c5   :  { %3055 = vmatpush1.msra.mxu0 %v2922_v34  ;;  %v5032_v34 = vadd.f32 %v1674_v29, %v1665_v28  ;;  %v4513_v28 = vld [vmem:[#allocation2] sm:$0xff] }
0x10c6   :  { %3056 = vmatprep.subr.mxu0 %v2919_v39  ;;  %v1667_v39 = vadd.f32 %v4980_v3, %v4868_v61  ;;  %v2771_v61 = vld [vmem:[#allocation10 + $0x970] sm:$0xff] }
0x10c7   :  { %3057 = vmatpush1.msra.mxu0 %v2918_v40  ;;  %v2772_v40 = vld [vmem:[#allocation10 + $0x978] sm:$0xff]  ;;  %v2770_v3 = vld [vmem:[#allocation10 + $0x8d0] sm:$0xff] }
0x10c8   :  { %3058 = vmatprep.subr.mxu0 %v2915_v41  ;;  %v5039_v6 = vadd.f32 %v1674_v29, %v1667_v39  ;;  %2821 = vmatprep.subr.mxu1 %v2772_v40  ;;  %v2769_v41 = vld [vmem:[#allocation10 + $0x8c8] sm:$0xff]  ;;  %v2796_v40 = vld [vmem:[#allocation10 + $0x1158] sm:$0xff] }
0x10c9   :  { %3059 = vmatpush1.msra.mxu0 %v2914_v36  ;;  %2822 = vmatpush1.msra.mxu1 %v2771_v61  ;;  %v2768_v36 = vld [vmem:[#allocation10 + $0x828] sm:$0xff]  ;;  %v2795_v61 = vld [vmem:[#allocation10 + $0x1150] sm:$0xff] }
0x10ca   :  { %3060 = vmatprep.subr.mxu0 %v2911_v22  ;;  %2823 = vmatprep.subr.mxu1 %v2770_v3  ;;  %v2767_v22 = vld [vmem:[#allocation10 + $0x820] sm:$0xff]  ;;  %v2794_v3 = vld [vmem:[#allocation10 + $0x10b0] sm:$0xff] }
0x10cb   :  { %3061 = vmatpush1.msra.mxu0 %v2910_v43  ;;  %2824 = vmatpush1.msra.mxu1 %v2769_v41  ;;  %v2766_v43 = vld [vmem:[#allocation10 + $0x780] sm:$0xff]  ;;  %v2793_v41 = vld [vmem:[#allocation10 + $0x10a8] sm:$0xff] }
0x10cc   :  { %3062 = vmatprep.subr.mxu0 %v2907_v46  ;;  %2825 = vmatprep.subr.mxu1 %v2768_v36  ;;  %v2765_v46 = vld [vmem:[#allocation10 + $0x778] sm:$0xff]  ;;  %v2792_v36 = vld [vmem:[#allocation10 + $0x1008] sm:$0xff] }
0x10cd   :  { %3063 = vmatpush1.msra.mxu0 %v2906_v47  ;;  %2826 = vmatpush1.msra.mxu1 %v2767_v22  ;;  %v2764_v47 = vld [vmem:[#allocation10 + $0x6d8] sm:$0xff]  ;;  %v2791_v22 = vld [vmem:[#allocation10 + $0x1000] sm:$0xff] }
0x10ce   :  { %3064 = vmatprep.subr.mxu0 %v2903_v48  ;;  %2827 = vmatprep.subr.mxu1 %v2766_v43  ;;  %v2763_v48 = vld [vmem:[#allocation10 + $0x6d0] sm:$0xff]  ;;  %v2790_v43 = vld [vmem:[#allocation10 + $0xf60] sm:$0xff] }
0x10cf   :  { %3065 = vmatpush1.msra.mxu0 %v2902_v52  ;;  %2828 = vmatpush1.msra.mxu1 %v2765_v46  ;;  %v2762_v52 = vld [vmem:[#allocation10 + $0x630] sm:$0xff]  ;;  %v2789_v46 = vld [vmem:[#allocation10 + $0xf58] sm:$0xff] }
0x10d0   :  { %3066 = vmatprep.subr.mxu0 %v2899_v51  ;;  %2829 = vmatprep.subr.mxu1 %v2764_v47  ;;  %v2761_v51 = vld [vmem:[#allocation10 + $0x628] sm:$0xff]  ;;  %v2788_v47 = vld [vmem:[#allocation10 + $0xeb8] sm:$0xff] }
0x10d1   :  { %3067 = vmatpush1.msra.mxu0 %v2898_v54  ;;  %2830 = vmatpush1.msra.mxu1 %v2763_v48  ;;  %v2760_v54 = vld [vmem:[#allocation10 + $0x588] sm:$0xff]  ;;  %v2787_v48 = vld [vmem:[#allocation10 + $0xeb0] sm:$0xff] }
0x10d2   :  { %3068 = vmatprep.subr.mxu0 %v2895_v55  ;;  %2831 = vmatprep.subr.mxu1 %v2762_v52  ;;  %v2759_v55 = vld [vmem:[#allocation10 + $0x580] sm:$0xff]  ;;  %v2786_v52 = vld [vmem:[#allocation10 + $0xe10] sm:$0xff] }
0x10d3   :  { %3069 = vmatpush1.msra.mxu0 %v2894_v56  ;;  %2832 = vmatpush1.msra.mxu1 %v2761_v51  ;;  %v2758_v56 = vld [vmem:[#allocation10 + $0x4e0] sm:$0xff]  ;;  %v2785_v51 = vld [vmem:[#allocation10 + $0xe08] sm:$0xff] }
0x10d4   :  { %3070 = vmatprep.subr.mxu0 %v2891_v16  ;;  %2833 = vmatprep.subr.mxu1 %v2760_v54  ;;  %v2757_v16 = vld [vmem:[#allocation10 + $0x4d8] sm:$0xff]  ;;  %v2784_v54 = vld [vmem:[#allocation10 + $0xd68] sm:$0xff] }
0x10d5   :  { %3071 = vmatpush1.msra.mxu0 %v2890_v57  ;;  %2834 = vmatpush1.msra.mxu1 %v2759_v55  ;;  %v2756_v57 = vld [vmem:[#allocation10 + $0x438] sm:$0xff]  ;;  %v2783_v55 = vld [vmem:[#allocation10 + $0xd60] sm:$0xff] }
0x10d6   :  { %3072 = vmatprep.subr.mxu0 %v3015_v58  ;;  %2835 = vmatprep.subr.mxu1 %v2758_v56  ;;  %v2755_v58 = vld [vmem:[#allocation10 + $0x430] sm:$0xff]  ;;  %v2782_v56 = vld [vmem:[#allocation10 + $0xcc0] sm:$0xff] }
0x10d7   :  { %3073 = vmatpush2.msra.mxu0 %v3014_v15  ;;  %2836 = vmatpush1.msra.mxu1 %v2757_v16  ;;  %v2754_v15 = vld [vmem:[#allocation10 + $0x390] sm:$0xff]  ;;  %v2781_v16 = vld [vmem:[#allocation10 + $0xcb8] sm:$0xff] }
0x10d8   :  { %3074 = vmatprep.subr.mxu0 %v3011_v60  ;;  %2837 = vmatprep.subr.mxu1 %v2756_v57  ;;  %v2753_v60 = vld [vmem:[#allocation10 + $0x388] sm:$0xff]  ;;  %v2780_v57 = vld [vmem:[#allocation10 + $0xc18] sm:$0xff] }
0x10d9   :  { %3075 = vmatpush2.msra.mxu0 %v3010_v21  ;;  %2838 = vmatpush1.msra.mxu1 %v2755_v58  ;;  %v2752_v21 = vld [vmem:[#allocation10 + $0x2e8] sm:$0xff]  ;;  %v2779_v58 = vld [vmem:[#allocation10 + $0xc10] sm:$0xff] }
0x10da   :  { %3076 = vmatprep.subr.mxu0 %v3007_v59  ;;  %2839 = vmatprep.subr.mxu1 %v2754_v15  ;;  %v2751_v59 = vld [vmem:[#allocation10 + $0x2e0] sm:$0xff]  ;;  %v2778_v15 = vld [vmem:[#allocation10 + $0xb70] sm:$0xff] }
0x10db   :  { %3077 = vmatpush2.msra.mxu0 %v3006_v33  ;;  %2840 = vmatpush1.msra.mxu1 %v2753_v60  ;;  %v2750_v33 = vld [vmem:[#allocation10 + $0x240] sm:$0xff]  ;;  %v2777_v60 = vld [vmem:[#allocation10 + $0xb68] sm:$0xff] }
0x10dc   :  { %3078 = vmatprep.subr.mxu0 %v3003_v44  ;;  %2841 = vmatprep.subr.mxu1 %v2752_v21  ;;  %v2749_v44 = vld [vmem:[#allocation10 + $0x238] sm:$0xff]  ;;  %v2776_v21 = vld [vmem:[#allocation10 + $0xac8] sm:$0xff] }
0x10dd   :  { %3079 = vmatpush2.msra.mxu0 %v3002_v45  ;;  %2842 = vmatpush1.msra.mxu1 %v2751_v59  ;;  %v2748_v45 = vld [vmem:[#allocation10 + $0x198] sm:$0xff]  ;;  %v2775_v59 = vld [vmem:[#allocation10 + $0xac0] sm:$0xff] }
0x10de   :  { %3080 = vmatprep.subr.mxu0 %v2999_v62  ;;  %2843 = vmatprep.subr.mxu1 %v2750_v33  ;;  %v2747_v62 = vld [vmem:[#allocation10 + $0x190] sm:$0xff]  ;;  %v2953_v33 = vld [vmem:[#allocation10 + $0xa40] sm:$0xff] }
0x10df   :  { %3081 = vmatpush2.msra.mxu0 %v2998_v63  ;;  %2844 = vmatpush1.msra.mxu1 %v2749_v44  ;;  %v2746_v63 = vld [vmem:[#allocation10 + $0xf0] sm:$0xff]  ;;  %v5054_v44 = vld [vmem:[#allocation12 + $0x28] sm:$0xf] }
0x10e0   :  { %3082 = vmatprep.subr.mxu0 %v2995_v11  ;;  %2845 = vmatprep.subr.mxu1 %v2748_v45  ;;  %v2745_v11 = vld [vmem:[#allocation10 + $0xe8] sm:$0xff] }
0x10e1   :  { %3083 = vmatpush2.msra.mxu0 %v2994_v13  ;;  %2846 = vmatpush1.msra.mxu1 %v2747_v62  ;;  %v2744_v13 = vld [vmem:[#allocation10 + $0x48] sm:$0xff] }
0x10e2   :  { %3084 = vmatprep.subr.mxu0 %v2991_v14  ;;  %2847 = vmatprep.subr.mxu1 %v2746_v63  ;;  %v2743_v14 = vld [vmem:[#allocation10 + $0x40] sm:$0xff]  ;;  %v3023_v63 = vrot.slane %v5054_v44, %v4749_v37 }
0x10e3   :  { %3085 = vmatpush2.msra.mxu0 %v2990_v17  ;;  %2848 = vmatpush1.msra.mxu1 %v2745_v11  ;;  %v2806_v17 = vld [vmem:[#allocation10 + $0x14a0] sm:$0xff] }
0x10e4   :  { %3086 = vmatprep.subr.mxu0 %v2987_v49  ;;  %2849 = vmatprep.subr.mxu1 %v2744_v13  ;;  %v2805_v49 = vld [vmem:[#allocation10 + $0x1498] sm:$0xff] }
0x10e5   :  { %3087 = vmatpush2.msra.mxu0 %v2986_v23  ;;  %2850 = vmatpush1.msra.mxu1 %v2743_v14  ;;  %v2804_v23 = vld [vmem:[#allocation10 + $0x13f8] sm:$0xff] }
0x10e6   :  { %3088 = vmatprep.subr.mxu0 %v2983_v10  ;;  %2851 = vmatprep.subr.mxu1 %v2806_v17  ;;  %v2803_v10 = vld [vmem:[#allocation10 + $0x13f0] sm:$0xff] }
0x10e7   :  { %3089 = vmatpush2.msra.mxu0 %v2982_v18  ;;  %2852 = vmatpush2.msra.mxu1 %v2805_v49  ;;  %v2802_v18 = vld [vmem:[#allocation10 + $0x1350] sm:$0xff] }
0x10e8   :  { %3090 = vmatprep.subr.mxu0 %v2979_v50  ;;  %2853 = vmatprep.subr.mxu1 %v2804_v23  ;;  %v2801_v50 = vld [vmem:[#allocation10 + $0x1348] sm:$0xff] }
0x10e9   :  { %3091 = vmatpush2.msra.mxu0 %v2978_v19  ;;  %2854 = vmatpush2.msra.mxu1 %v2803_v10  ;;  %v2800_v19 = vld [vmem:[#allocation10 + $0x12a8] sm:$0xff]  ;;  %v2719_v10 = vld [vmem:[#allocation12 + $0x18] sm:$0x3] }
0x10ea   :  { %3092 = vmatprep.subr.mxu0 %v2975_v20  ;;  %2855 = vmatprep.subr.mxu1 %v2802_v18  ;;  %v2799_v20 = vld [vmem:[#allocation10 + $0x12a0] sm:$0xff]  ;;  %v2734_v18 = vrot.slane %v2719_v10, %v4749_v37 }
0x10eb   :  { %3093 = vmatpush2.msra.mxu0 %v2974_v24  ;;  %2856 = vmatpush2.msra.mxu1 %v2801_v50  ;;  %v2798_v24 = vld [vmem:[#allocation10 + $0x1200] sm:$0xff]  ;;  %v2738_v50 = vrot.slane %v2719_v10, %v4752_v38  ;;  %v2993_v10 = vld [vmem:[#allocation10 + $0x10d0] sm:$0xff] }
0x10ec   :  { %3094 = vmatprep.subr.mxu0 %v2971_v25  ;;  %2857 = vmatprep.subr.mxu1 %v2800_v19  ;;  %v2797_v25 = vld [vmem:[#allocation10 + $0x11f8] sm:$0xff] }
0x10ed   :  { %3095 = vmatpush2.msra.mxu0 %v2970_v26  ;;  %2858 = vmatpush2.msra.mxu1 %v2799_v20  ;;  %v2319_v26 = vld [vmem:[#allocation12 + $0x24] sm:$0x3] }
0x10ee   :  { %3096 = vmatprep.subr.mxu0 %v2967_v27  ;;  %2859 = vmatprep.subr.mxu1 %v2798_v24  ;;  %v2639_v27 = vrot.slane %v2319_v26, %v4749_v37 }
0x10ef   :  { %3097 = vmatpush2.msra.mxu0 %v2966_v35  ;;  %2860 = vmatpush2.msra.mxu1 %v2797_v25  ;;  %v2643_v35 = vrot.slane %v2319_v26, %v4752_v38 }
0x10f0   :  { %3098 = vmatprep.subr.mxu0 %v2963_v7  ;;  %2861 = vmatprep.subr.mxu1 %v2796_v40  ;;  %v2929_v40 = vld [vmem:[#allocation10 + $0x650] sm:$0xff] }
0x10f1   :  { %3099 = vmatpush2.msra.mxu0 %v2962_v2  ;;  %2862 = vmatpush2.msra.mxu1 %v2795_v61  ;;  %v2928_v61 = vld [vmem:[#allocation10 + $0x648] sm:$0xff] }
0x10f2   :  { %3100 = vmatprep.subr.mxu0 %v2959_v8  ;;  %2863 = vmatprep.subr.mxu1 %v2794_v3  ;;  %v2924_v3 = vld [vmem:[#allocation10 + $0x5a0] sm:$0xff] }
0x10f3   :  { %3101 = vmatpush2.msra.mxu0 %v2958_v42  ;;  %2864 = vmatpush2.msra.mxu1 %v2793_v41  ;;  %v2921_v41 = vld [vmem:[#allocation10 + $0x500] sm:$0xff] }
0x10f4   :  { %3102 = vmatprep.subr.mxu0 %v2955_v30  ;;  %v4514_v30 = vld [vmem:[#allocation2 + $0x8] sm:$0xff]  ;;  %2865 = vmatprep.subr.mxu1 %v2792_v36  ;;  %v2920_v36 = vld [vmem:[#allocation10 + $0x4f8] sm:$0xff] }
0x10f5   :  { %3103 = vmatpush2.msra.mxu0 %v2954_v31  ;;  %2866 = vmatpush2.msra.mxu1 %v2791_v22  ;;  %v2917_v22 = vld [vmem:[#allocation10 + $0x458] sm:$0xff] }
0x10f6   :  { %3105 = vmatmul.mubr.f32.vlgmr.msra.gmra.mxu0 %v5032_v34  ;;  %4405 = vmatprep.subr.mxu0 %v4672_v0 }
0x10f7   :  { %3110 = vmatprep.mubr.f32.mxu0 %v4990_v12  ;;  %2867 = vmatprep.subr.mxu1 %v2790_v43  ;;  %v2916_v43 = vld [vmem:[#allocation10 + $0x450] sm:$0xff] }
0x10f8   :  { %2868 = vmatpush2.msra.mxu1 %v2789_v46  ;;  %v2913_v46 = vld [vmem:[#allocation10 + $0x3b0] sm:$0xff] }
0x10f9   :  { %2869 = vmatprep.subr.mxu1 %v2788_v47  ;;  %v2912_v47 = vld [vmem:[#allocation10 + $0x3a8] sm:$0xff] }
0x10fa   :  { %3111 = vmatmul.mubr.f32.gmra.mxu0 %v5039_v6  ;;  %2870 = vmatpush2.msra.mxu1 %v2787_v48  ;;  %v2909_v48 = vld [vmem:[#allocation10 + $0x308] sm:$0xff] }
0x10fb   :  { %4409 = vmatprep.mubr.msk.f32.mxu0 %vm4673_vm2, %v4672_v0  ;;  %2871 = vmatprep.subr.mxu1 %v2786_v52  ;;  %v2908_v52 = vld [vmem:[#allocation10 + $0x300] sm:$0xff] }
0x10fc   :  { %2872 = vmatpush2.msra.mxu1 %v2785_v51  ;;  %v2905_v51 = vld [vmem:[#allocation10 + $0x260] sm:$0xff] }
0x10fd   :  { %2873 = vmatprep.subr.mxu1 %v2784_v54  ;;  %v2904_v54 = vld [vmem:[#allocation10 + $0x258] sm:$0xff] }
0x10fe   :  { %2874 = vmatpush2.msra.mxu1 %v2783_v55  ;;  %v2901_v55 = vld [vmem:[#allocation10 + $0x1b8] sm:$0xff] }
0x10ff   :  { %2875 = vmatprep.subr.mxu1 %v2782_v56  ;;  %v2900_v56 = vld [vmem:[#allocation10 + $0x1b0] sm:$0xff] }
0x1100   :  { %2876 = vmatpush2.msra.mxu1 %v2781_v16  ;;  %v2897_v16 = vld [vmem:[#allocation10 + $0x110] sm:$0xff] }
0x1101   :  { %2877 = vmatprep.subr.mxu1 %v2780_v57  ;;  %v2896_v57 = vld [vmem:[#allocation10 + $0x108] sm:$0xff] }
0x1102   :  { %2878 = vmatpush2.msra.mxu1 %v2779_v58  ;;  %v2893_v58 = vld [vmem:[#allocation10 + $0x68] sm:$0xff] }
0x1103   :  { %2879 = vmatprep.subr.mxu1 %v2778_v15  ;;  %v2892_v15 = vld [vmem:[#allocation10 + $0x60] sm:$0xff] }
0x1104   :  { %2880 = vmatpush2.msra.mxu1 %v2777_v60  ;;  %v3017_v60 = vld [vmem:[#allocation10 + $0x14c0] sm:$0xff] }
0x1105   :  { %2881 = vmatprep.subr.mxu1 %v2776_v21  ;;  %v3016_v21 = vld [vmem:[#allocation10 + $0x14b8] sm:$0xff] }
0x1106   :  { %2882 = vmatpush2.msra.mxu1 %v2775_v59  ;;  %v3013_v59 = vld [vmem:[#allocation10 + $0x1418] sm:$0xff] }
0x1107   :  { %3117 = vmatprep.subr.mxu1 %v2953_v33  ;;  %v3012_v33 = vld [vmem:[#allocation10 + $0x1410] sm:$0xff] }
0x1176   :  { %v2712_v7 = vpop.f32.mrf.mxu0 }
0x1177   :  { %v2713_v2 = vadd.f32 %v2712_v7, %v2639_v27  ;;  %v2952_v27 = vld [vmem:[#allocation10 + $0xa38] sm:$0xff]  ;;  %v2948_v7 = vld [vmem:[#allocation10 + $0x990] sm:$0xff] }
0x1178   :  { %v2714_v8 = vpop.f32.mrf.mxu0 }
0x1179   :  { %v5046_v29 = vadd.f32 %v4513_v28, %v2713_v2  ;;  %v2715_v42 = vadd.f32 %v2714_v8, %v2643_v35  ;;  %v2949_v35 = vld [vmem:[#allocation10 + $0x998] sm:$0xff]  ;;  %v2945_v2 = vld [vmem:[#allocation10 + $0x8f0] sm:$0xff]  ;;  %v2944_v8 = vld [vmem:[#allocation10 + $0x8e8] sm:$0xff] }
0x117a   :  { %v2941_v28 = vld [vmem:[#allocation10 + $0x848] sm:$0xff] }
0x117b   :  { %v5048_v31 = vadd.f32 %v4514_v30, %v2715_v42  ;;  %v2720_v39 = vmul.f32 %v5046_v29, %v5046_v29  ;;  %v2940_v42 = vld [vmem:[#allocation10 + $0x840] sm:$0xff] }
0x117c   :  { %v2937_v30 = vld [vmem:[#allocation10 + $0x7a0] sm:$0xff] }
0x117d   :  { %v2721_v1 = vmul.f32 %v5048_v31, %v5048_v31 }
0x117f   :  { %v2722_v53 = vadd.f32 %v2721_v1, %v2720_v39  ;;  %v2936_v39 = vld [vmem:[#allocation10 + $0x798] sm:$0xff] }
0x1180   :  { %v2933_v1 = vld [vmem:[#allocation10 + $0x6f8] sm:$0xff] }
0x1181   :  { %2723 = vadd.xlane.f32.xlu1 %v2722_v53  ;;  %v2932_v53 = vld [vmem:[#allocation10 + $0x6f0] sm:$0xff] }
0x11b6   :  { %v3106_v45 = vpop.f32.mrf.mxu0 }
0x11b7   :  { %v3107_v14 = vadd.f32 %v3106_v45, %v3023_v63  ;;  %v3009_v45 = vld [vmem:[#allocation10 + $0x1370] sm:$0xff] }
0x11b8   :  { %v5056_v62 = vpop.f32.mrf.mxu0 }
0x11ba   :  { %v3112_v11 = vpop.f32.mrf.mxu0 }
0x11bb   :  { %v3113_v13 = vadd.f32 %v3112_v11, %v3023_v63  ;;  %v3008_v63 = vld [vmem:[#allocation10 + $0x1368] sm:$0xff] }
0x11bc   :  { %v3005_v11 = vld [vmem:[#allocation10 + $0x12c8] sm:$0xff] }
0x11bd   :  { %4406 = vmatpush3.xpose.msra.mxu0 %v3113_v13  ;;  %v3004_v13 = vld [vmem:[#allocation10 + $0x12c0] sm:$0xff] }
0x11be   :  { %4407 = vmatprep.subr.mxu0 %v4672_v0 }
0x11c1   :  { %4408 = vmatpush3.xpose.msra.mxu0 %v3107_v14  ;;  %v3001_v14 = vld [vmem:[#allocation10 + $0x1220] sm:$0xff] }
0x11c2   :  { %4412 = vmatprep.subr.mxu0 %v4672_v0 }
0x120a   :  { %v2724_v17 = vpop.xlane.xlu1 %2723 }
0x120b   :  { %v2725_v49 = vmul.f32 0.00390625, %v2724_v17  ;;  %v3000_v17 = vld [vmem:[#allocation10 + $0x1218] sm:$0xff] }
0x120d   :  { %v2726_v23 = vadd.f32 1e-06, %v2725_v49  ;;  %v2997_v49 = vld [vmem:[#allocation10 + $0x1178] sm:$0xff] }
0x120f   :  { %4495 = vrsqrt.f32 %v2726_v23  ;;  %v2996_v23 = vld [vmem:[#allocation10 + $0x1170] sm:$0xff] }
0x121c   :  { %v4496_v19 = vpop.eup %4495 }
0x121d   :  { %v2729_v20 = vmul.f32 %v4496_v19, %v5048_v31  ;;  %v2728_v24 = vmul.f32 %v4496_v19, %v5046_v29  ;;  %v2988_v19 = vld [vmem:[#allocation10 + $0x1020] sm:$0xff] }
0x121f   :  { %v2742_v25 = vmul.f32 %v2738_v50, %v2729_v20  ;;  %v2741_v26 = vmul.f32 %v2734_v18, %v2728_v24  ;;  %v2992_v18 = vld [vmem:[#allocation10 + $0x10c8] sm:$0xff]  ;;  %v2985_v20 = vld [vmem:[#allocation10 + $0xf80] sm:$0xff]  ;;  %v2984_v24 = vld [vmem:[#allocation10 + $0xf78] sm:$0xff] }
0x1220   :  { %v2989_v50 = vld [vmem:[#allocation10 + $0x1028] sm:$0xff] }
0x1221   :  { %2883 = vmatprep.mubr.f32.mxu1 %v2742_v25  ;;  %v2981_v25 = vld [vmem:[#allocation10 + $0xed8] sm:$0xff] }
0x1222   :  { %2884 = vmatmul.mubr.f32.vlgmr.msra.gmra.mxu1 %v2741_v26  ;;  %v2980_v26 = vld [vmem:[#allocation10 + $0xed0] sm:$0xff] }
0x1223   :  { %3118 = vmatpush1.msra.mxu1 %v2952_v27  ;;  %3181 = vmatprep.mubr.f32.mxu1 %v5024_v32  ;;  %v2925_v32 = vld [vmem:[#allocation10 + $0x5a8] sm:$0xff]  ;;  %v2977_v27 = vld [vmem:[#allocation10 + $0xe30] sm:$0xff] }
0x1224   :  { %3119 = vmatprep.subr.mxu1 %v2949_v35  ;;  %v2976_v35 = vld [vmem:[#allocation10 + $0xe28] sm:$0xff] }
0x1225   :  { %3120 = vmatpush1.msra.mxu1 %v2948_v7  ;;  %v2973_v7 = vld [vmem:[#allocation10 + $0xd88] sm:$0xff] }
0x1226   :  { %3121 = vmatprep.subr.mxu1 %v2945_v2  ;;  %v2972_v2 = vld [vmem:[#allocation10 + $0xd80] sm:$0xff] }
0x1227   :  { %3122 = vmatpush1.msra.mxu1 %v2944_v8  ;;  %v2969_v8 = vld [vmem:[#allocation10 + $0xce0] sm:$0xff] }
0x1228   :  { %3123 = vmatprep.subr.mxu1 %v2941_v28  ;;  %v2968_v28 = vld [vmem:[#allocation10 + $0xcd8] sm:$0xff] }
0x1229   :  { %3124 = vmatpush1.msra.mxu1 %v2940_v42  ;;  %v2965_v42 = vld [vmem:[#allocation10 + $0xc38] sm:$0xff] }
0x122a   :  { %3125 = vmatprep.subr.mxu1 %v2937_v30  ;;  %v2964_v30 = vld [vmem:[#allocation10 + $0xc30] sm:$0xff] }
0x122b   :  { %3126 = vmatpush1.msra.mxu1 %v2936_v39  ;;  %v2961_v39 = vld [vmem:[#allocation10 + $0xb90] sm:$0xff] }
0x122c   :  { %3127 = vmatprep.subr.mxu1 %v2933_v1  ;;  %v2960_v1 = vld [vmem:[#allocation10 + $0xb88] sm:$0xff] }
0x122d   :  { %3128 = vmatpush1.msra.mxu1 %v2932_v53  ;;  %v2957_v53 = vld [vmem:[#allocation10 + $0xae8] sm:$0xff] }
0x122e   :  { %3129 = vmatprep.subr.mxu1 %v2929_v40  ;;  %v2956_v40 = vld [vmem:[#allocation10 + $0xae0] sm:$0xff] }
0x122f   :  { %3130 = vmatpush1.msra.mxu1 %v2928_v61  ;;  %v2807_v61 = vld [vmem:[#allocation12 + $0x26] sm:$0x3] }
0x1230   :  { %3131 = vmatprep.subr.mxu1 %v2925_v32  ;;  %v2812_v32 = vrot.slane %v2807_v61, %v4749_v37 }
0x1231   :  { %3132 = vmatpush1.msra.mxu1 %v2924_v3 }
0x1232   :  { %3133 = vmatprep.subr.mxu1 %v2921_v41 }
0x1233   :  { %3134 = vmatpush1.msra.mxu1 %v2920_v36 }
0x1234   :  { %3135 = vmatprep.subr.mxu1 %v2917_v22 }
0x1235   :  { %3136 = vmatpush1.msra.mxu1 %v2916_v43 }
0x1236   :  { %3137 = vmatprep.subr.mxu1 %v2913_v46  ;;  %v3031_v46 = vrot.slane %v5054_v44, %v4821_v9 }
0x1237   :  { %3138 = vmatpush1.msra.mxu1 %v2912_v47 }
0x1238   :  { %3139 = vmatprep.subr.mxu1 %v2909_v48 }
0x1239   :  { %3140 = vmatpush1.msra.mxu1 %v2908_v52 }
0x123a   :  { %3141 = vmatprep.subr.mxu1 %v2905_v51 }
0x123b   :  { %3142 = vmatpush1.msra.mxu1 %v2904_v54 }
0x123c   :  { %3143 = vmatprep.subr.mxu1 %v2901_v55 }
0x123d   :  { %3144 = vmatpush1.msra.mxu1 %v2900_v56 }
0x123e   :  { %3145 = vmatprep.subr.mxu1 %v2897_v16 }
0x123f   :  { %3146 = vmatpush1.msra.mxu1 %v2896_v57 }
0x1240   :  { %3147 = vmatprep.subr.mxu1 %v2893_v58 }
0x1241   :  { %3148 = vmatpush1.msra.mxu1 %v2892_v15  ;;  %v3027_v15 = vrot.slane %v5054_v44, %v4752_v38 }
0x1242   :  { %3149 = vmatprep.subr.mxu1 %v3017_v60 }
0x1243   :  { %3150 = vmatpush2.msra.mxu1 %v3016_v21 }
0x1244   :  { %3151 = vmatprep.subr.mxu1 %v3013_v59  ;;  %v2816_v59 = vrot.slane %v2807_v61, %v4752_v38  ;;  %v3208_v61 = vld [vmem:[#allocation10 + $0x508] sm:$0xff] }
0x1245   :  { %3152 = vmatpush2.msra.mxu1 %v3012_v33  ;;  %v3109_v33 = vadd.f32 %v5056_v62, %v3027_v15 }
0x1246   :  { %3153 = vmatprep.subr.mxu1 %v3009_v45 }
0x1247   :  { %3154 = vmatpush2.msra.mxu1 %v3008_v63  ;;  %v3035_v63 = vrot.slane %v5054_v44, %v4814_v5 }
0x1248   :  { %3155 = vmatprep.subr.mxu1 %v3005_v11 }
0x1249   :  { %3156 = vmatpush2.msra.mxu1 %v3004_v13 }
0x124a   :  { %3157 = vmatprep.subr.mxu1 %v3001_v14 }
0x124b   :  { %3158 = vmatpush2.msra.mxu1 %v3000_v17 }
0x124c   :  { %3159 = vmatprep.subr.mxu1 %v2997_v49 }
0x124d   :  { %3160 = vmatpush2.msra.mxu1 %v2996_v23 }
0x124e   :  { %3161 = vmatprep.subr.mxu1 %v2993_v10 }
0x124f   :  { %3162 = vmatpush2.msra.mxu1 %v2992_v18 }
0x1250   :  { %3163 = vmatprep.subr.mxu1 %v2989_v50 }
0x1251   :  { %3164 = vmatpush2.msra.mxu1 %v2988_v19 }
0x1252   :  { %3165 = vmatprep.subr.mxu1 %v2985_v20  ;;  %v3224_v20 = vld [vmem:[#allocation10 + $0xa48] sm:$0xff] }
0x1253   :  { %3166 = vmatpush2.msra.mxu1 %v2984_v24  ;;  %v3223_v24 = vld [vmem:[#allocation10 + $0x9a8] sm:$0xff] }
0x1254   :  { %3167 = vmatprep.subr.mxu1 %v2981_v25  ;;  %v3222_v25 = vld [vmem:[#allocation10 + $0x9a0] sm:$0xff] }
0x1255   :  { %3168 = vmatpush2.msra.mxu1 %v2980_v26  ;;  %v3221_v26 = vld [vmem:[#allocation10 + $0x900] sm:$0xff] }
0x1256   :  { %3169 = vmatprep.subr.mxu1 %v2977_v27  ;;  %v3220_v27 = vld [vmem:[#allocation10 + $0x8f8] sm:$0xff] }
0x1257   :  { %3170 = vmatpush2.msra.mxu1 %v2976_v35  ;;  %v3219_v35 = vld [vmem:[#allocation10 + $0x858] sm:$0xff] }
0x1258   :  { %3171 = vmatprep.subr.mxu1 %v2973_v7  ;;  %v3218_v7 = vld [vmem:[#allocation10 + $0x850] sm:$0xff] }
0x1259   :  { %3172 = vmatpush2.msra.mxu1 %v2972_v2  ;;  %v3217_v2 = vld [vmem:[#allocation10 + $0x7b0] sm:$0xff] }
0x125a   :  { %3173 = vmatprep.subr.mxu1 %v2969_v8  ;;  %v3216_v8 = vld [vmem:[#allocation10 + $0x7a8] sm:$0xff] }
0x125b   :  { %3174 = vmatpush2.msra.mxu1 %v2968_v28  ;;  %v3215_v28 = vld [vmem:[#allocation10 + $0x708] sm:$0xff] }
0x125c   :  { %3175 = vmatprep.subr.mxu1 %v2965_v42  ;;  %v3214_v42 = vld [vmem:[#allocation10 + $0x700] sm:$0xff] }
0x125d   :  { %3176 = vmatpush2.msra.mxu1 %v2964_v30  ;;  %v3213_v30 = vld [vmem:[#allocation10 + $0x660] sm:$0xff] }
0x125e   :  { %3177 = vmatprep.subr.mxu1 %v2961_v39  ;;  %v3212_v39 = vld [vmem:[#allocation10 + $0x658] sm:$0xff] }
0x125f   :  { %3178 = vmatpush2.msra.mxu1 %v2960_v1  ;;  %v3211_v1 = vld [vmem:[#allocation10 + $0x5b8] sm:$0xff] }
0x1260   :  { %3179 = vmatprep.subr.mxu1 %v2957_v53  ;;  %v3210_v53 = vld [vmem:[#allocation10 + $0x5b0] sm:$0xff] }
0x1261   :  { %3180 = vmatpush2.msra.mxu1 %v2956_v40  ;;  %v3209_v40 = vld [vmem:[#allocation10 + $0x510] sm:$0xff] }
0x1262   :  { %3182 = vmatmul.mubr.f32.vlgmr.msra.gmra.mxu1 %v5032_v34 }
0x1263   :  { %3187 = vmatprep.mubr.f32.mxu1 %v4990_v12 }
0x1266   :  { %3188 = vmatmul.mubr.f32.gmra.mxu1 %v5039_v6  ;;  %v3114_v6 = vpop.f32.mrf.mxu0 }
0x1267   :  { %v3115_v21 = vadd.f32 %v3114_v6, %v3027_v15  ;;  %v3197_v6 = vld [vmem:[#allocation10 + $0x120] sm:$0xff]  ;;  %v3250_v15 = vld [vmem:[#allocation10 + $0x12d0] sm:$0xff] }
0x12e2   :  { %v2885_v3 = vpop.f32.mrf.mxu1 }
0x12e3   :  { %v2886_v41 = vadd.f32 %v2885_v3, %v2812_v32  ;;  %v3207_v32 = vld [vmem:[#allocation10 + $0x468] sm:$0xff]  ;;  %v3206_v3 = vld [vmem:[#allocation10 + $0x460] sm:$0xff] }
0x12e4   :  { %v2887_v36 = vpop.f32.mrf.mxu1 }
0x12e5   :  { %4410 = vmatmul.mubr.f32.vlgmr.msra.gmra.mxu0 %v2886_v41  ;;  %v2888_v11 = vadd.f32 %v2887_v36, %v2816_v59  ;;  %v3205_v41 = vld [vmem:[#allocation10 + $0x3c0] sm:$0xff]  ;;  %v3204_v36 = vld [vmem:[#allocation10 + $0x3b8] sm:$0xff]  ;;  %v3247_v59 = vld [vmem:[#allocation10 + $0x1188] sm:$0xff] }
0x12e6   :  { %4416 = vmatprep.mubr.msk.f32.mxu0 %vm4673_vm2, %v4672_v0 }
0x1322   :  { %v3183_v22 = vpop.f32.mrf.mxu1 }
0x1323   :  { %v3184_v12 = vadd.f32 %v3183_v22, %v3031_v46  ;;  %v3203_v22 = vld [vmem:[#allocation10 + $0x318] sm:$0xff] }
0x1324   :  { %v3185_v43 = vpop.f32.mrf.mxu1 }
0x1325   :  { %v3186_v14 = vadd.f32 %v3185_v43, %v3035_v63  ;;  %v3202_v43 = vld [vmem:[#allocation10 + $0x310] sm:$0xff] }
0x1326   :  { %v3189_v34 = vpop.f32.mrf.mxu1 }
0x1327   :  { %v3190_v47 = vadd.f32 %v3189_v34, %v3031_v46  ;;  %v3201_v46 = vld [vmem:[#allocation10 + $0x270] sm:$0xff]  ;;  %v3200_v34 = vld [vmem:[#allocation10 + $0x268] sm:$0xff] }
0x1328   :  { %v3191_v45 = vpop.f32.mrf.mxu1 }
0x1329   :  { %4413 = vmatpush3.msra.mxu0 %v3190_v47  ;;  %v3192_v13 = vadd.f32 %v3191_v45, %v3035_v63  ;;  %v3199_v47 = vld [vmem:[#allocation10 + $0x1c8] sm:$0xff]  ;;  %v3245_v45 = vld [vmem:[#allocation10 + $0x10e0] sm:$0xff]  ;;  %v3244_v63 = vld [vmem:[#allocation10 + $0x10d8] sm:$0xff] }
0x132a   :  { %4414 = vmatprep.subr.mxu0 %v4672_v0 }
0x132b   :  { %4415 = vmatpush3.msra.mxu0 %v3184_v12  ;;  %v3198_v12 = vld [vmem:[#allocation10 + $0x1c0] sm:$0xff] }
0x132c   :  { %4419 = vmatprep.subr.mxu0 %v4672_v0 }
0x13a5   :  { %v3325_v48 = vpop.f32.mrf.mxu0 }
0x13a6   :  { %v3329_v52 = vsel %vm895_vm0, %v3325_v48, -inf }
0x13a7   :  { %3330 = vmax.xlane.f32.xlu0 %v3329_v52  ;;  %v4411_v51 = vpop.f32.mrf.mxu0  ;;  %v3195_v52 = vld [vmem:[#allocation10 + $0x78] sm:$0xff] }
0x13a8   :  { %v3194_v51 = vld [vmem:[#allocation10 + $0x70] sm:$0xff] }
0x1430   :  { %v3331_v54 = vpop.xlane.xlu0 %3330 }
0x1431   :  { %v3332_v55 = vsub.f32 %v3325_v48, %v3331_v54  ;;  %v3196_v48 = vld [vmem:[#allocation10 + $0x118] sm:$0xff]  ;;  %v3257_v54 = vld [vmem:[#allocation10 + $0x14d0] sm:$0xff] }
0x1433   :  { %v3333_v56 = vmul.f32 1.442695, %v3332_v55  ;;  %v3256_v55 = vld [vmem:[#allocation10 + $0x14c8] sm:$0xff] }
0x1435   :  { %4497 = vpow2.f32 %v3333_v56  ;;  %v3255_v56 = vld [vmem:[#allocation10 + $0x1428] sm:$0xff] }
0x1442   :  { %v4498_v9 = vpop.eup %4497 }
0x1443   :  { %v3335_v16 = vsel %vm895_vm0, %v4498_v9, 0.0 }
0x1444   :  { %3336 = vadd.xlane.f32.xlu1 %v3335_v16  ;;  %v3253_v16 = vld [vmem:[#allocation10 + $0x1380] sm:$0xff] }
0x14cd   :  { %v3337_v57 = vpop.xlane.xlu1 %3336 }
0x14ce   :  { %4499 = vrcp.f32 %v3337_v57  ;;  %v3252_v57 = vld [vmem:[#allocation10 + $0x1378] sm:$0xff] }
0x14db   :  { %v4500_v58 = vpop.eup %4499 }
0x14dc   :  { %v3339_v60 = vmul.f32 %v4500_v58, %v4498_v9  ;;  %v3254_v9 = vld [vmem:[#allocation10 + $0x1420] sm:$0xff]  ;;  %v3251_v58 = vld [vmem:[#allocation10 + $0x12d8] sm:$0xff] }
0x14de   :  { %4417 = vmatmul.mubr.msk.f32.vlgmr.msra.gmra.mxu0 %vm895_vm0, %v3339_v60  ;;  %v3249_v60 = vld [vmem:[#allocation10 + $0x1230] sm:$0xff] }
0x14df   :  { %4420 = vmatpush3.xpose.msra.mxu0 %v3115_v21  ;;  %4423 = vmatprep.mubr.msk.f32.mxu0 %vm4673_vm2, %v4672_v0  ;;  %v3248_v21 = vld [vmem:[#allocation10 + $0x1228] sm:$0xff] }
0x14e0   :  { %4421 = vmatprep.subr.mxu0 %v4672_v0 }
0x14e3   :  { %4422 = vmatpush3.xpose.msra.mxu0 %v3109_v33  ;;  %v3246_v33 = vld [vmem:[#allocation10 + $0x1180] sm:$0xff] }
0x14e4   :  { %4426 = vmatprep.subr.mxu0 %v4672_v0 }
0x14e6   :  { %4424 = vmatmul.mubr.f32.vlgmr.msra.gmra.mxu0 %v2888_v11  ;;  %v3243_v11 = vld [vmem:[#allocation10 + $0x1038] sm:$0xff] }
0x14e7   :  { %4427 = vmatpush3.msra.mxu0 %v3192_v13  ;;  %4430 = vmatprep.mubr.msk.f32.mxu0 %vm4673_vm2, %v4672_v0  ;;  %v3242_v13 = vld [vmem:[#allocation10 + $0x1030] sm:$0xff]  ;;  %vm4157_vm2 = vcmask 1045509  }
0x14e8   :  { %4428 = vmatprep.subr.mxu0 %v4672_v0  ;;  %v3225_v0 = vld [vmem:[#allocation10 + $0xa50] sm:$0xff] }
0x14e9   :  { %4429 = vmatpush3.msra.mxu0 %v3186_v14  ;;  %3578 = vmatprep.subr.mxu1 %v3225_v0  ;;  %v3241_v14 = vld [vmem:[#allocation10 + $0xf90] sm:$0xff]  ;;  %v3232_v0 = vld [vmem:[#allocation10 + $0xce8] sm:$0xff] }
0x14ea   :  { %3579 = vmatpush1.msra.mxu1 %v3224_v20  ;;  %v3231_v20 = vld [vmem:[#allocation10 + $0xc48] sm:$0xff] }
0x14eb   :  { %3580 = vmatprep.subr.mxu1 %v3223_v24  ;;  %v3230_v24 = vld [vmem:[#allocation10 + $0xc40] sm:$0xff] }
0x14ec   :  { %3581 = vmatpush1.msra.mxu1 %v3222_v25  ;;  %v3229_v25 = vld [vmem:[#allocation10 + $0xba0] sm:$0xff] }
0x14ed   :  { %3582 = vmatprep.subr.mxu1 %v3221_v26  ;;  %v3228_v26 = vld [vmem:[#allocation10 + $0xb98] sm:$0xff] }
0x14ee   :  { %3583 = vmatpush1.msra.mxu1 %v3220_v27 }
0x14ef   :  { %3584 = vmatprep.subr.mxu1 %v3219_v35 }
0x14f0   :  { %3585 = vmatpush1.msra.mxu1 %v3218_v7 }
0x14f1   :  { %3586 = vmatprep.subr.mxu1 %v3217_v2  ;;  %v3227_v2 = vld [vmem:[#allocation10 + $0xaf8] sm:$0xff] }
0x14f2   :  { %3587 = vmatpush1.msra.mxu1 %v3216_v8  ;;  %v3226_v8 = vld [vmem:[#allocation10 + $0xaf0] sm:$0xff] }
0x14f3   :  { %3588 = vmatprep.subr.mxu1 %v3215_v28 }
0x14f4   :  { %3589 = vmatpush1.msra.mxu1 %v3214_v42 }
0x14f5   :  { %3590 = vmatprep.subr.mxu1 %v3213_v30  ;;  %v3706_v30 = vld [vmem:[#allocation10 + $0xa60] sm:$0xff] }
0x14f6   :  { %3591 = vmatpush1.msra.mxu1 %v3212_v39  ;;  %v3705_v39 = vld [vmem:[#allocation10 + $0xa58] sm:$0xff]  ;;  %3751 = vmatprep.subr.mxu0 %v3706_v30 }
0x14f7   :  { %3592 = vmatprep.subr.mxu1 %v3211_v1  ;;  %v3704_v1 = vld [vmem:[#allocation10 + $0x9b8] sm:$0xff] }
0x14f8   :  { %3593 = vmatpush1.msra.mxu1 %v3210_v53  ;;  %v3703_v53 = vld [vmem:[#allocation10 + $0x9b0] sm:$0xff]  ;;  %v3721_v30 = vld [vmem:[#allocation10 + $0xf98] sm:$0xff] }
0x14f9   :  { %3594 = vmatprep.subr.mxu1 %v3209_v40  ;;  %v3702_v40 = vld [vmem:[#allocation10 + $0x910] sm:$0xff] }
0x14fa   :  { %3595 = vmatpush1.msra.mxu1 %v3208_v61  ;;  %v3700_v61 = vld [vmem:[#allocation10 + $0x868] sm:$0xff] }
0x14fb   :  { %3596 = vmatprep.subr.mxu1 %v3207_v32  ;;  %v3699_v32 = vld [vmem:[#allocation10 + $0x860] sm:$0xff] }
0x14fc   :  { %3597 = vmatpush1.msra.mxu1 %v3206_v3  ;;  %v3698_v3 = vld [vmem:[#allocation10 + $0x7c0] sm:$0xff] }
0x14fd   :  { %3598 = vmatprep.subr.mxu1 %v3205_v41  ;;  %v3697_v41 = vld [vmem:[#allocation10 + $0x7b8] sm:$0xff] }
0x14fe   :  { %3599 = vmatpush1.msra.mxu1 %v3204_v36  ;;  %v3696_v36 = vld [vmem:[#allocation10 + $0x718] sm:$0xff] }
0x14ff   :  { %3600 = vmatprep.subr.mxu1 %v3203_v22  ;;  %v3694_v22 = vld [vmem:[#allocation10 + $0x670] sm:$0xff] }
0x1500   :  { %3601 = vmatpush1.msra.mxu1 %v3202_v43  ;;  %v3693_v43 = vld [vmem:[#allocation10 + $0x668] sm:$0xff] }
0x1501   :  { %3602 = vmatprep.subr.mxu1 %v3201_v46  ;;  %v3692_v46 = vld [vmem:[#allocation10 + $0x5c8] sm:$0xff] }
0x1502   :  { %3603 = vmatpush1.msra.mxu1 %v3200_v34  ;;  %v3691_v34 = vld [vmem:[#allocation10 + $0x5c0] sm:$0xff] }
0x1503   :  { %3604 = vmatprep.subr.mxu1 %v3199_v47  ;;  %v3690_v47 = vld [vmem:[#allocation10 + $0x520] sm:$0xff] }
0x1504   :  { %3605 = vmatpush1.msra.mxu1 %v3198_v12  ;;  %v3689_v12 = vld [vmem:[#allocation10 + $0x518] sm:$0xff] }
0x1505   :  { %3606 = vmatprep.subr.mxu1 %v3197_v6  ;;  %v3688_v6 = vld [vmem:[#allocation10 + $0x478] sm:$0xff] }
0x1506   :  { %3607 = vmatpush1.msra.mxu1 %v3196_v48  ;;  %v3687_v48 = vld [vmem:[#allocation10 + $0x470] sm:$0xff] }
0x1507   :  { %3608 = vmatprep.subr.mxu1 %v3195_v52  ;;  %v3686_v52 = vld [vmem:[#allocation10 + $0x3d0] sm:$0xff] }
0x1508   :  { %3609 = vmatpush1.msra.mxu1 %v3194_v51  ;;  %v3685_v51 = vld [vmem:[#allocation10 + $0x3c8] sm:$0xff] }
0x1509   :  { %3610 = vmatprep.subr.mxu1 %v3257_v54  ;;  %v3684_v54 = vld [vmem:[#allocation10 + $0x328] sm:$0xff] }
0x150a   :  { %3611 = vmatpush2.msra.mxu1 %v3256_v55  ;;  %v3683_v55 = vld [vmem:[#allocation10 + $0x320] sm:$0xff] }
0x150b   :  { %3612 = vmatprep.subr.mxu1 %v3255_v56  ;;  %v3682_v56 = vld [vmem:[#allocation10 + $0x280] sm:$0xff] }
0x150c   :  { %3613 = vmatpush2.msra.mxu1 %v3254_v9  ;;  %v3681_v9 = vld [vmem:[#allocation10 + $0x278] sm:$0xff] }
0x150d   :  { %3614 = vmatprep.subr.mxu1 %v3253_v16  ;;  %v3680_v16 = vld [vmem:[#allocation10 + $0x1d8] sm:$0xff] }
0x150e   :  { %3615 = vmatpush2.msra.mxu1 %v3252_v57  ;;  %v3679_v57 = vld [vmem:[#allocation10 + $0x1d0] sm:$0xff] }
0x150f   :  { %3616 = vmatprep.subr.mxu1 %v3251_v58  ;;  %v3678_v58 = vld [vmem:[#allocation10 + $0x130] sm:$0xff] }
0x1510   :  { %3617 = vmatpush2.msra.mxu1 %v3250_v15  ;;  %v3677_v15 = vld [vmem:[#allocation10 + $0x128] sm:$0xff] }
0x1511   :  { %3618 = vmatprep.subr.mxu1 %v3249_v60  ;;  %v3676_v60 = vld [vmem:[#allocation10 + $0x88] sm:$0xff] }
0x1512   :  { %3619 = vmatpush2.msra.mxu1 %v3248_v21  ;;  %v3675_v21 = vld [vmem:[#allocation10 + $0x80] sm:$0xff] }
0x1513   :  { %3620 = vmatprep.subr.mxu1 %v3247_v59  ;;  %v3738_v59 = vld [vmem:[#allocation10 + $0x14e0] sm:$0xff] }
0x1514   :  { %3621 = vmatpush2.msra.mxu1 %v3246_v33  ;;  %v3737_v33 = vld [vmem:[#allocation10 + $0x14d8] sm:$0xff] }
0x1515   :  { %3622 = vmatprep.subr.mxu1 %v3245_v45  ;;  %v3736_v45 = vld [vmem:[#allocation10 + $0x1438] sm:$0xff] }
0x1516   :  { %3623 = vmatpush2.msra.mxu1 %v3244_v63  ;;  %v3735_v63 = vld [vmem:[#allocation10 + $0x1430] sm:$0xff] }
0x1517   :  { %3624 = vmatprep.subr.mxu1 %v3243_v11  ;;  %v3734_v11 = vld [vmem:[#allocation10 + $0x1390] sm:$0xff] }
0x1518   :  { %3625 = vmatpush2.msra.mxu1 %v3242_v13  ;;  %v3733_v13 = vld [vmem:[#allocation10 + $0x1388] sm:$0xff] }
0x1519   :  { %3626 = vmatprep.subr.mxu1 %v3241_v14  ;;  %v3732_v14 = vld [vmem:[#allocation10 + $0x12e8] sm:$0xff] }
0x159e   :  { %v5093_v17 = vpop.f32.mrf.mxu0 }
0x15a0   :  { %v4418_v62 = vpop.f32.mrf.mxu0 }
0x15a1   :  { %v3240_v62 = vld [vmem:[#allocation10 + $0xf88] sm:$0xff] }
0x15a2   :  { %3627 = vmatpush2.msra.mxu1 %v3240_v62  ;;  %v3731_v62 = vld [vmem:[#allocation10 + $0x12e0] sm:$0xff] }
0x15a6   :  { %v3479_v49 = vpop.f32.mrf.mxu0 }
0x15a7   :  { %v3483_v5 = vsel %vm895_vm0, %v3479_v49, -inf }
0x15a8   :  { %3484 = vmax.xlane.f32.xlu0 %v3483_v5  ;;  %v4425_v44 = vpop.f32.mrf.mxu0  ;;  %v3238_v5 = vld [vmem:[#allocation10 + $0xee0] sm:$0xff] }
0x15a9   :  { %v3237_v44 = vld [vmem:[#allocation10 + $0xe40] sm:$0xff] }
0x1631   :  { %v3485_v23 = vpop.xlane.xlu0 %3484 }
0x1632   :  { %v3486_v10 = vsub.f32 %v3479_v49, %v3485_v23  ;;  %v3239_v49 = vld [vmem:[#allocation10 + $0xee8] sm:$0xff]  ;;  %v3236_v23 = vld [vmem:[#allocation10 + $0xe38] sm:$0xff] }
0x1633   :  { %3628 = vmatprep.subr.mxu1 %v3239_v49  ;;  %v3730_v49 = vld [vmem:[#allocation10 + $0x1240] sm:$0xff] }
0x1634   :  { %v3487_v18 = vmul.f32 1.442695, %v3486_v10  ;;  %3629 = vmatpush2.msra.mxu1 %v3238_v5  ;;  %v3235_v10 = vld [vmem:[#allocation10 + $0xd98] sm:$0xff]  ;;  %v3258_v5 = vld [vmem:[#allocation12 + $0x2c] sm:$0x3] }
0x1635   :  { %3630 = vmatprep.subr.mxu1 %v3237_v44  ;;  %v3571_v44 = vrot.slane %v3258_v5, %v4749_v37 }
0x1636   :  { %4501 = vpow2.f32 %v3487_v18  ;;  %v3234_v18 = vld [vmem:[#allocation10 + $0xd90] sm:$0xff]  ;;  %3631 = vmatpush2.msra.mxu1 %v3236_v23  ;;  %v3575_v23 = vrot.slane %v3258_v5, %v4752_v38  ;;  %v3829_v5 = vld [vmem:[#allocation10 + $0x1e8] sm:$0xff] }
0x1637   :  { %3632 = vmatprep.subr.mxu1 %v3235_v10 }
0x1638   :  { %3633 = vmatpush2.msra.mxu1 %v3234_v18 }
0x1643   :  { %v5096_v50 = vpop.eup %4501 }
0x1644   :  { %v3489_v19 = vsel %vm895_vm0, %v5096_v50, 0.0 }
0x1645   :  { %3490 = vadd.xlane.f32.xlu1 %v3489_v19  ;;  %v3233_v19 = vld [vmem:[#allocation10 + $0xcf0] sm:$0xff] }
0x1646   :  { %3634 = vmatprep.subr.mxu1 %v3233_v19 }
0x1647   :  { %3635 = vmatpush2.msra.mxu1 %v3232_v0 }
0x1648   :  { %3636 = vmatprep.subr.mxu1 %v3231_v20 }
0x1649   :  { %3637 = vmatpush2.msra.mxu1 %v3230_v24 }
0x164a   :  { %3638 = vmatprep.subr.mxu1 %v3229_v25 }
0x164b   :  { %3639 = vmatpush2.msra.mxu1 %v3228_v26 }
0x164c   :  { %3640 = vmatprep.subr.mxu1 %v3227_v2  ;;  %v3727_v2 = vld [vmem:[#allocation10 + $0x1190] sm:$0xff] }
0x164d   :  { %3641 = vmatpush2.msra.mxu1 %v3226_v8  ;;  %v3725_v8 = vld [vmem:[#allocation10 + $0x10e8] sm:$0xff] }
0x16ce   :  { %v3491_v27 = vpop.xlane.xlu1 %3490 }
0x16cf   :  { %4503 = vrcp.f32 %v3491_v27 }
0x16dc   :  { %v4504_v35 = vpop.eup %4503 }
0x16dd   :  { %v3493_v7 = vmul.f32 %v4504_v35, %v5096_v50  ;;  %v3701_v50 = vld [vmem:[#allocation10 + $0x908] sm:$0xff]  ;;  %v3729_v35 = vld [vmem:[#allocation10 + $0x1238] sm:$0xff] }
0x16df   :  { %4431 = vmatmul.mubr.msk.f32.vlgmr.msra.gmra.mxu0 %vm895_vm0, %v3493_v7  ;;  %v3728_v7 = vld [vmem:[#allocation10 + $0x1198] sm:$0xff]  ;;  %vm4141_vm0 = vcmask 1043459  }
0x16e0   :  { %3752 = vmatpush1.msra.mxu0 %v3705_v39  ;;  %v3720_v39 = vld [vmem:[#allocation10 + $0xef8] sm:$0xff] }
0x16e1   :  { %3753 = vmatprep.subr.mxu0 %v3704_v1  ;;  %v3719_v1 = vld [vmem:[#allocation10 + $0xef0] sm:$0xff] }
0x16e2   :  { %3754 = vmatpush1.msra.mxu0 %v3703_v53  ;;  %v3718_v53 = vld [vmem:[#allocation10 + $0xe50] sm:$0xff] }
0x16e3   :  { %3755 = vmatprep.subr.mxu0 %v3702_v40  ;;  %v3717_v40 = vld [vmem:[#allocation10 + $0xe48] sm:$0xff] }
0x16e4   :  { %3756 = vmatpush1.msra.mxu0 %v3701_v50  ;;  %v3716_v50 = vld [vmem:[#allocation10 + $0xda8] sm:$0xff] }
0x16e5   :  { %3757 = vmatprep.subr.mxu0 %v3700_v61  ;;  %v3715_v61 = vld [vmem:[#allocation10 + $0xda0] sm:$0xff] }
0x16e6   :  { %3758 = vmatpush1.msra.mxu0 %v3699_v32  ;;  %v3714_v32 = vld [vmem:[#allocation10 + $0xd00] sm:$0xff] }
0x16e7   :  { %3759 = vmatprep.subr.mxu0 %v3698_v3  ;;  %v3713_v3 = vld [vmem:[#allocation10 + $0xcf8] sm:$0xff] }
0x16e8   :  { %3760 = vmatpush1.msra.mxu0 %v3697_v41  ;;  %v3712_v41 = vld [vmem:[#allocation10 + $0xc58] sm:$0xff] }
0x16e9   :  { %3761 = vmatprep.subr.mxu0 %v3696_v36  ;;  %v3711_v36 = vld [vmem:[#allocation10 + $0xc50] sm:$0xff] }
0x179f   :  { %v3563_v28 = vpop.f32.mrf.mxu0 }
0x17a0   :  { %3642 = vmatprep.mubr.f32.mxu1 %v3563_v28  ;;  %v3723_v28 = vld [vmem:[#allocation10 + $0x1040] sm:$0xff] }
0x17a1   :  { %v4432_v42 = vpop.f32.mrf.mxu0  ;;  %3643 = vmatmul.mubr.f32.vlgmr.msra.gmra.mxu1 %v5093_v17  ;;  %v3695_v17 = vld [vmem:[#allocation10 + $0x710] sm:$0xff] }
0x17a2   :  { %3762 = vmatpush1.msra.mxu0 %v3695_v17  ;;  %v3722_v42 = vld [vmem:[#allocation10 + $0xfa0] sm:$0xff]  ;;  %v3710_v17 = vld [vmem:[#allocation10 + $0xbb0] sm:$0xff] }
0x17a3   :  { %3763 = vmatprep.subr.mxu0 %v3694_v22  ;;  %v3709_v22 = vld [vmem:[#allocation10 + $0xba8] sm:$0xff] }
0x17a4   :  { %3764 = vmatpush1.msra.mxu0 %v3693_v43  ;;  %v3708_v43 = vld [vmem:[#allocation10 + $0xb08] sm:$0xff] }
0x17a5   :  { %3765 = vmatprep.subr.mxu0 %v3692_v46  ;;  %v3707_v46 = vld [vmem:[#allocation10 + $0xb00] sm:$0xff] }
0x17a6   :  { %3766 = vmatpush1.msra.mxu0 %v3691_v34  ;;  %v3855_v34 = vld [vmem:[#allocation10 + $0xa70] sm:$0xff] }
0x17a7   :  { %3767 = vmatprep.subr.mxu0 %v3690_v47  ;;  %v3854_v47 = vld [vmem:[#allocation10 + $0xa68] sm:$0xff]  ;;  %3888 = vmatprep.subr.mxu1 %v3855_v34  ;;  %v3651_v34 = vld [vmem:[#allocation12 + $0x1a] sm:$0x3] }
0x17a8   :  { %3768 = vmatpush1.msra.mxu0 %v3689_v12  ;;  %v3853_v12 = vld [vmem:[#allocation10 + $0x9c8] sm:$0xff]  ;;  %3889 = vmatpush1.msra.mxu1 %v3854_v47  ;;  %v3666_v47 = vrot.slane %v3651_v34, %v4749_v37 }
0x17a9   :  { %3769 = vmatprep.subr.mxu0 %v3688_v6  ;;  %v3852_v6 = vld [vmem:[#allocation10 + $0x9c0] sm:$0xff]  ;;  %3890 = vmatprep.subr.mxu1 %v3853_v12  ;;  %v3670_v12 = vrot.slane %v3651_v34, %v4752_v38  ;;  %v4020_v34 = vld [vmem:[#allocation10 + $0xd18] sm:$0xff] }
0x17aa   :  { %3770 = vmatpush1.msra.mxu0 %v3687_v48  ;;  %v3851_v48 = vld [vmem:[#allocation10 + $0x920] sm:$0xff]  ;;  %3891 = vmatpush1.msra.mxu1 %v3852_v6 }
0x17ab   :  { %3771 = vmatprep.subr.mxu0 %v3686_v52  ;;  %v3850_v52 = vld [vmem:[#allocation10 + $0x918] sm:$0xff]  ;;  %3892 = vmatprep.subr.mxu1 %v3851_v48 }
0x17ac   :  { %3772 = vmatpush1.msra.mxu0 %v3685_v51  ;;  %v3849_v51 = vld [vmem:[#allocation10 + $0x878] sm:$0xff]  ;;  %3893 = vmatpush1.msra.mxu1 %v3850_v52 }
0x17ad   :  { %3773 = vmatprep.subr.mxu0 %v3684_v54  ;;  %v3848_v54 = vld [vmem:[#allocation10 + $0x870] sm:$0xff]  ;;  %3894 = vmatprep.subr.mxu1 %v3849_v51 }
0x17ae   :  { %3774 = vmatpush1.msra.mxu0 %v3683_v55  ;;  %v3847_v55 = vld [vmem:[#allocation10 + $0x7d0] sm:$0xff]  ;;  %3895 = vmatpush1.msra.mxu1 %v3848_v54 }
0x17af   :  { %3775 = vmatprep.subr.mxu0 %v3682_v56  ;;  %v3846_v56 = vld [vmem:[#allocation10 + $0x7c8] sm:$0xff]  ;;  %3896 = vmatprep.subr.mxu1 %v3847_v55  ;;  %v3863_v55 = vld [vmem:[#allocation10 + $0xd10] sm:$0xff] }
0x17b0   :  { %3776 = vmatpush1.msra.mxu0 %v3681_v9  ;;  %v3845_v9 = vld [vmem:[#allocation10 + $0x728] sm:$0xff]  ;;  %3897 = vmatpush1.msra.mxu1 %v3846_v56 }
0x17b1   :  { %3777 = vmatprep.subr.mxu0 %v3680_v16  ;;  %v3844_v16 = vld [vmem:[#allocation10 + $0x720] sm:$0xff]  ;;  %3898 = vmatprep.subr.mxu1 %v3845_v9  ;;  %v3862_v56 = vld [vmem:[#allocation10 + $0xd08] sm:$0xff] }
0x17b2   :  { %3778 = vmatpush1.msra.mxu0 %v3679_v57  ;;  %v3843_v57 = vld [vmem:[#allocation10 + $0x680] sm:$0xff]  ;;  %3899 = vmatpush1.msra.mxu1 %v3844_v16  ;;  %v3861_v9 = vld [vmem:[#allocation10 + $0xc68] sm:$0xff] }
0x17b3   :  { %3779 = vmatprep.subr.mxu0 %v3678_v58  ;;  %v3842_v58 = vld [vmem:[#allocation10 + $0x678] sm:$0xff]  ;;  %3900 = vmatprep.subr.mxu1 %v3843_v57  ;;  %v3860_v16 = vld [vmem:[#allocation10 + $0xc60] sm:$0xff] }
0x17b4   :  { %3780 = vmatpush1.msra.mxu0 %v3677_v15  ;;  %v3841_v15 = vld [vmem:[#allocation10 + $0x5d8] sm:$0xff]  ;;  %3901 = vmatpush1.msra.mxu1 %v3842_v58  ;;  %v3859_v57 = vld [vmem:[#allocation10 + $0xbc0] sm:$0xff] }
0x17b5   :  { %3781 = vmatprep.subr.mxu0 %v3676_v60  ;;  %v3840_v60 = vld [vmem:[#allocation10 + $0x5d0] sm:$0xff]  ;;  %3902 = vmatprep.subr.mxu1 %v3841_v15  ;;  %v3858_v58 = vld [vmem:[#allocation10 + $0xbb8] sm:$0xff] }
0x17b6   :  { %3782 = vmatpush1.msra.mxu0 %v3675_v21  ;;  %v3839_v21 = vld [vmem:[#allocation10 + $0x530] sm:$0xff]  ;;  %3903 = vmatpush1.msra.mxu1 %v3840_v60  ;;  %v3857_v15 = vld [vmem:[#allocation10 + $0xb18] sm:$0xff] }
0x17b7   :  { %3783 = vmatprep.subr.mxu0 %v3738_v59  ;;  %v3838_v59 = vld [vmem:[#allocation10 + $0x528] sm:$0xff]  ;;  %3904 = vmatprep.subr.mxu1 %v3839_v21  ;;  %v3856_v60 = vld [vmem:[#allocation10 + $0xb10] sm:$0xff] }
0x17b8   :  { %3784 = vmatpush2.msra.mxu0 %v3737_v33  ;;  %v3837_v33 = vld [vmem:[#allocation10 + $0x488] sm:$0xff]  ;;  %3905 = vmatpush1.msra.mxu1 %v3838_v59 }
0x17b9   :  { %3785 = vmatprep.subr.mxu0 %v3736_v45  ;;  %v3836_v45 = vld [vmem:[#allocation10 + $0x480] sm:$0xff]  ;;  %3906 = vmatprep.subr.mxu1 %v3837_v33  ;;  %v3739_v21 = vld [vmem:[#allocation12 + $0x2e] sm:$0x3] }
0x17ba   :  { %3786 = vmatpush2.msra.mxu0 %v3735_v63  ;;  %v3835_v63 = vld [vmem:[#allocation10 + $0x3e0] sm:$0xff]  ;;  %3907 = vmatpush1.msra.mxu1 %v3836_v45  ;;  %v3744_v59 = vrot.slane %v3739_v21, %v4749_v37  ;;  %v3748_v33 = vrot.slane %v3739_v21, %v4752_v38 }
0x17bb   :  { %3787 = vmatprep.subr.mxu0 %v3734_v11  ;;  %v3834_v11 = vld [vmem:[#allocation10 + $0x3d8] sm:$0xff]  ;;  %3908 = vmatprep.subr.mxu1 %v3835_v63 }
0x17bc   :  { %3788 = vmatpush2.msra.mxu0 %v3733_v13  ;;  %v3833_v13 = vld [vmem:[#allocation10 + $0x338] sm:$0xff]  ;;  %3909 = vmatpush1.msra.mxu1 %v3834_v11 }
0x17bd   :  { %3789 = vmatprep.subr.mxu0 %v3732_v14  ;;  %v3832_v14 = vld [vmem:[#allocation10 + $0x330] sm:$0xff]  ;;  %3910 = vmatprep.subr.mxu1 %v3833_v13 }
0x17be   :  { %3790 = vmatpush2.msra.mxu0 %v3731_v62  ;;  %v3831_v62 = vld [vmem:[#allocation10 + $0x290] sm:$0xff]  ;;  %3911 = vmatpush1.msra.mxu1 %v3832_v14 }
0x17bf   :  { %3791 = vmatprep.subr.mxu0 %v3730_v49  ;;  %v3830_v49 = vld [vmem:[#allocation10 + $0x288] sm:$0xff]  ;;  %3912 = vmatprep.subr.mxu1 %v3831_v62 }
0x17c0   :  { %3792 = vmatpush2.msra.mxu0 %v3729_v35  ;;  %3913 = vmatpush1.msra.mxu1 %v3830_v49  ;;  %v3883_v35 = vld [vmem:[#allocation10 + $0x13a0] sm:$0xff]  ;;  %v4032_v49 = vld [vmem:[#allocation10 + $0x14f8] sm:$0xff] }
0x17c1   :  { %3793 = vmatprep.subr.mxu0 %v3728_v7  ;;  %3914 = vmatprep.subr.mxu1 %v3829_v5  ;;  %v3882_v7 = vld [vmem:[#allocation10 + $0x1398] sm:$0xff] }
0x17c2   :  { %3794 = vmatpush2.msra.mxu0 %v3727_v2  ;;  %v3881_v2 = vld [vmem:[#allocation10 + $0x12f8] sm:$0xff] }
0x17c3   :  { %v4016_v5 = vld [vmem:[#allocation10 + $0xa78] sm:$0xff] }
0x1861   :  { %v3644_v10 = vpop.f32.mrf.mxu1 }
0x1862   :  { %v3645_v18 = vadd.f32 %v3644_v10, %v3571_v44  ;;  %v3828_v44 = vld [vmem:[#allocation10 + $0x1e0] sm:$0xff]  ;;  %v3826_v10 = vld [vmem:[#allocation10 + $0x138] sm:$0xff] }
0x1863   :  { %v3646_v19 = vpop.f32.mrf.mxu1  ;;  %3915 = vmatpush1.msra.mxu1 %v3828_v44  ;;  %v4031_v44 = vld [vmem:[#allocation10 + $0x1450] sm:$0xff] }
0x1864   :  { %v5106_v0 = vadd.f32 %v3645_v18, %v5046_v29  ;;  %v3647_v20 = vadd.f32 %v3646_v19, %v3575_v23  ;;  %v3726_v29 = vld [vmem:[#allocation10 + $0x10f0] sm:$0xff]  ;;  %v3827_v23 = vld [vmem:[#allocation10 + $0x140] sm:$0xff]  ;;  %v3825_v18 = vld [vmem:[#allocation10 + $0x98] sm:$0xff] }
0x1865   :  { %3795 = vmatprep.subr.mxu0 %v3726_v29  ;;  %3916 = vmatprep.subr.mxu1 %v3827_v23  ;;  %v3824_v19 = vld [vmem:[#allocation10 + $0x90] sm:$0xff] }
0x1866   :  { %v5109_v24 = vadd.f32 %v3647_v20, %v5048_v31  ;;  %v3652_v25 = vmul.f32 %v5106_v0, %v5106_v0  ;;  %3796 = vmatpush2.msra.mxu0 %v3725_v8  ;;  %v3724_v31 = vld [vmem:[#allocation10 + $0x1048] sm:$0xff]  ;;  %3917 = vmatpush1.msra.mxu1 %v3826_v10  ;;  %v3887_v20 = vld [vmem:[#allocation10 + $0x14f0] sm:$0xff] }
0x1867   :  { %3797 = vmatprep.subr.mxu0 %v3724_v31  ;;  %3918 = vmatprep.subr.mxu1 %v3825_v18  ;;  %v3880_v29 = vld [vmem:[#allocation10 + $0x12f0] sm:$0xff]  ;;  %v3878_v31 = vld [vmem:[#allocation10 + $0x1248] sm:$0xff] }
0x1868   :  { %v3653_v26 = vmul.f32 %v5109_v24, %v5109_v24  ;;  %3798 = vmatpush2.msra.mxu0 %v3723_v28  ;;  %3919 = vmatpush1.msra.mxu1 %v3824_v19  ;;  %v3879_v8 = vld [vmem:[#allocation10 + $0x1250] sm:$0xff]  ;;  %v3877_v28 = vld [vmem:[#allocation10 + $0x11a8] sm:$0xff]  ;;  %v4029_v19 = vld [vmem:[#allocation10 + $0x1300] sm:$0xff] }
0x1869   :  { %3799 = vmatprep.subr.mxu0 %v3722_v42  ;;  %3920 = vmatprep.subr.mxu1 %v3887_v20  ;;  %v3876_v42 = vld [vmem:[#allocation10 + $0x11a0] sm:$0xff]  ;;  %v4015_v23 = vld [vmem:[#allocation10 + $0x9d0] sm:$0xff]  ;;  %v4030_v10 = vld [vmem:[#allocation10 + $0x13a8] sm:$0xff] }
0x186a   :  { %v3654_v27 = vadd.f32 %v3653_v26, %v3652_v25  ;;  %3800 = vmatpush2.msra.mxu0 %v3721_v30  ;;  %v3886_v25 = vld [vmem:[#allocation10 + $0x14e8] sm:$0xff]  ;;  %v3875_v30 = vld [vmem:[#allocation10 + $0x1100] sm:$0xff]  ;;  %v3961_v20 = vld [vmem:[#allocation12 + $0x30] sm:$0x3] }
0x186b   :  { %3801 = vmatprep.subr.mxu0 %v3720_v39  ;;  %v3885_v26 = vld [vmem:[#allocation10 + $0x1448] sm:$0xff]  ;;  %3921 = vmatpush2.msra.mxu1 %v3886_v25  ;;  %v3874_v39 = vld [vmem:[#allocation10 + $0x10f8] sm:$0xff]  ;;  %v3966_v25 = vrot.slane %v3961_v20, %v4749_v37 }
0x186c   :  { %3655 = vadd.xlane.f32.xlu0 %v3654_v27  ;;  %3802 = vmatpush2.msra.mxu0 %v3719_v1  ;;  %v3884_v27 = vld [vmem:[#allocation10 + $0x1440] sm:$0xff]  ;;  %v3873_v1 = vld [vmem:[#allocation10 + $0x1058] sm:$0xff]  ;;  %v4014_v18 = vld [vmem:[#allocation10 + $0x928] sm:$0xff] }
0x186d   :  { %3803 = vmatprep.subr.mxu0 %v3718_v53  ;;  %3922 = vmatprep.subr.mxu1 %v3885_v26  ;;  %v3872_v53 = vld [vmem:[#allocation10 + $0x1050] sm:$0xff] }
0x186e   :  { %3804 = vmatpush2.msra.mxu0 %v3717_v40  ;;  %3923 = vmatpush2.msra.mxu1 %v3884_v27  ;;  %v3871_v40 = vld [vmem:[#allocation10 + $0xfb0] sm:$0xff] }
0x186f   :  { %3805 = vmatprep.subr.mxu0 %v3716_v50  ;;  %3924 = vmatprep.subr.mxu1 %v3883_v35  ;;  %v3870_v50 = vld [vmem:[#allocation10 + $0xfa8] sm:$0xff]  ;;  %v3970_v35 = vrot.slane %v3961_v20, %v4752_v38 }
0x1870   :  { %3806 = vmatpush2.msra.mxu0 %v3715_v61  ;;  %3925 = vmatpush2.msra.mxu1 %v3882_v7  ;;  %v3869_v61 = vld [vmem:[#allocation10 + $0xf08] sm:$0xff] }
0x1871   :  { %3807 = vmatprep.subr.mxu0 %v3714_v32  ;;  %3926 = vmatprep.subr.mxu1 %v3881_v2  ;;  %v3868_v32 = vld [vmem:[#allocation10 + $0xf00] sm:$0xff] }
0x1872   :  { %3808 = vmatpush2.msra.mxu0 %v3713_v3  ;;  %3927 = vmatpush2.msra.mxu1 %v3880_v29  ;;  %v3867_v3 = vld [vmem:[#allocation10 + $0xe60] sm:$0xff] }
0x1873   :  { %3809 = vmatprep.subr.mxu0 %v3712_v41  ;;  %3928 = vmatprep.subr.mxu1 %v3879_v8  ;;  %v3866_v41 = vld [vmem:[#allocation10 + $0xe58] sm:$0xff] }
0x1874   :  { %3810 = vmatpush2.msra.mxu0 %v3711_v36  ;;  %3929 = vmatpush2.msra.mxu1 %v3878_v31  ;;  %v3865_v36 = vld [vmem:[#allocation10 + $0xdb8] sm:$0xff] }
0x1875   :  { %3811 = vmatprep.subr.mxu0 %v3710_v17  ;;  %3930 = vmatprep.subr.mxu1 %v3877_v28  ;;  %v3864_v17 = vld [vmem:[#allocation10 + $0xdb0] sm:$0xff] }
0x1876   :  { %3812 = vmatpush2.msra.mxu0 %v3709_v22  ;;  %3931 = vmatpush2.msra.mxu1 %v3876_v42 }
0x1877   :  { %3813 = vmatprep.subr.mxu0 %v3708_v43  ;;  %3932 = vmatprep.subr.mxu1 %v3875_v30  ;;  %v4013_v30 = vld [vmem:[#allocation10 + $0x880] sm:$0xff] }
0x1878   :  { %3814 = vmatpush2.msra.mxu0 %v3707_v46  ;;  %3933 = vmatpush2.msra.mxu1 %v3874_v39  ;;  %v4012_v39 = vld [vmem:[#allocation10 + $0x7d8] sm:$0xff] }
0x1879   :  { %3934 = vmatprep.subr.mxu1 %v3873_v1  ;;  %4322 = vmatprep.subr.mxu0 %v4032_v49  ;;  %v4027_v1 = vld [vmem:[#allocation10 + $0x11b0] sm:$0xff]  ;;  %v4146_v49 = vstv %s4274_s0 }
0x187a   :  { %3935 = vmatpush2.msra.mxu1 %v3872_v53  ;;  %v4011_v53 = vld [vmem:[#allocation10 + $0x730] sm:$0xff]  ;;  %vm4147_vm9 = vcmp.eq.s32.totalorder %v5001_v4, %v4146_v49 }
0x187b   :  { %3936 = vmatprep.subr.mxu1 %v3871_v40  ;;  %v4010_v40 = vld [vmem:[#allocation10 + $0x688] sm:$0xff] }
0x187c   :  { %3937 = vmatpush2.msra.mxu1 %v3870_v50  ;;  %v4025_v50 = vld [vmem:[#allocation10 + $0x1060] sm:$0xff] }
0x187d   :  { %3938 = vmatprep.subr.mxu1 %v3869_v61  ;;  %v4009_v61 = vld [vmem:[#allocation10 + $0x5e0] sm:$0xff] }
0x187e   :  { %3939 = vmatpush2.msra.mxu1 %v3868_v32  ;;  %v4024_v32 = vld [vmem:[#allocation10 + $0xfb8] sm:$0xff] }
0x187f   :  { %3940 = vmatprep.subr.mxu1 %v3867_v3  ;;  %v4008_v3 = vld [vmem:[#allocation10 + $0x538] sm:$0xff] }
0x1880   :  { %3941 = vmatpush2.msra.mxu1 %v3866_v41  ;;  %v4023_v41 = vld [vmem:[#allocation10 + $0xf10] sm:$0xff] }
0x1881   :  { %3942 = vmatprep.subr.mxu1 %v3865_v36  ;;  %v4007_v36 = vld [vmem:[#allocation10 + $0x490] sm:$0xff] }
0x1882   :  { %3943 = vmatpush2.msra.mxu1 %v3864_v17  ;;  %v4022_v17 = vld [vmem:[#allocation10 + $0xe68] sm:$0xff] }
0x1883   :  { %3944 = vmatprep.subr.mxu1 %v3863_v55 }
0x1884   :  { %3945 = vmatpush2.msra.mxu1 %v3862_v56 }
0x1885   :  { %3946 = vmatprep.subr.mxu1 %v3861_v9 }
0x1886   :  { %3947 = vmatpush2.msra.mxu1 %v3860_v16  ;;  %v3975_v16 = vld [vmem:[#allocation12 + $0x1c] sm:$0x3] }
0x1887   :  { %3948 = vmatprep.subr.mxu1 %v3859_v57  ;;  %v3990_v57 = vrot.slane %v3975_v16, %v4749_v37 }
0x1888   :  { %3949 = vmatpush2.msra.mxu1 %v3858_v58  ;;  %v3994_v58 = vrot.slane %v3975_v16, %v4752_v38  ;;  %v4130_v38 = vstv %s4272_s30 }
0x1889   :  { %3950 = vmatprep.subr.mxu1 %v3857_v15  ;;  %vm4131_vm7 = vcmp.eq.s32.totalorder %v5001_v4, %v4130_v38 }
0x188a   :  { %3951 = vmatpush2.msra.mxu1 %v3856_v60 }
0x18f5   :  { %v3656_v22 = vpop.xlane.xlu0 %3655 }
0x18f6   :  { %v3657_v43 = vmul.f32 0.00390625, %v3656_v22  ;;  %v4006_v22 = vld [vmem:[#allocation10 + $0x3e8] sm:$0xff] }
0x18f8   :  { %v3658_v46 = vadd.f32 1e-06, %v3657_v43  ;;  %v4021_v43 = vld [vmem:[#allocation10 + $0xdc0] sm:$0xff] }
0x18fa   :  { %4505 = vrsqrt.f32 %v3658_v46  ;;  %v4005_v46 = vld [vmem:[#allocation10 + $0x340] sm:$0xff] }
0x1907   :  { %v4506_v6 = vpop.eup %4505 }
0x1908   :  { %v3661_v48 = vmul.f32 %v4506_v6, %v5109_v24  ;;  %v3660_v52 = vmul.f32 %v4506_v6, %v5106_v0  ;;  %v4003_v6 = vld [vmem:[#allocation10 + $0x1f0] sm:$0xff] }
0x190a   :  { %v3674_v51 = vmul.f32 %v3670_v12, %v3661_v48  ;;  %v3673_v54 = vmul.f32 %v3666_v47, %v3660_v52  ;;  %v4004_v47 = vld [vmem:[#allocation10 + $0x298] sm:$0xff]  ;;  %v4019_v12 = vld [vmem:[#allocation10 + $0xc70] sm:$0xff]  ;;  %v4018_v48 = vld [vmem:[#allocation10 + $0xbc8] sm:$0xff] }
0x190b   :  { %v4002_v52 = vld [vmem:[#allocation10 + $0x148] sm:$0xff] }
0x190c   :  { %3815 = vmatprep.mubr.f32.mxu0 %v3674_v51  ;;  %v4017_v51 = vld [vmem:[#allocation10 + $0xb20] sm:$0xff] }
0x190d   :  { %3816 = vmatmul.mubr.f32.vlgmr.msra.gmra.mxu0 %v3673_v54  ;;  %v4001_v54 = vld [vmem:[#allocation10 + $0xa0] sm:$0xff] }
0x190e   :  { %4323 = vmatpush3.msra.mxu0 %v4016_v5 }
0x190f   :  { %4324 = vmatprep.subr.mxu0 %v4031_v44 }
0x1910   :  { %4325 = vmatpush3.msra.mxu0 %v4015_v23  ;;  %v4162_v23 = vstv %s4276_s10 }
0x1911   :  { %4326 = vmatprep.subr.mxu0 %v4030_v10  ;;  %vm4163_vm11 = vcmp.eq.s32.totalorder %v5001_v4, %v4162_v23 }
0x1912   :  { %4327 = vmatpush3.msra.mxu0 %v4014_v18 }
0x1913   :  { %4328 = vmatprep.subr.mxu0 %v4029_v19 }
0x1914   :  { %4329 = vmatpush3.msra.mxu0 %v4013_v30  ;;  %v4170_v30 = vstv %s4277_s15 }
0x1915   :  { %vm4171_vm3 = vcmp.eq.s32.totalorder %v5001_v4, %v4170_v30 }
0x19cd   :  { %v3817_v45 = vpop.f32.mrf.mxu0 }
0x19ce   :  { %v3818_v63 = vadd.f32 %v3817_v45, %v3744_v59 }
0x19cf   :  { %v3819_v11 = vpop.f32.mrf.mxu0 }
0x19d0   :  { %v3820_v13 = vadd.f32 %v3819_v11, %v3748_v33  ;;  %v3822_v62 = vmax.f32 %v3818_v63, 0.0  ;;  %v4114_v11 = vstv %s4270_s29 }
0x19d1   :  { %vm4115_vm5 = vcmp.eq.s32.totalorder %v5001_v4, %v4114_v11 }
0x19d2   :  { %v3823_v14 = vmax.f32 %v3820_v13, 0.0 }
0x19d4   :  { %3952 = vmatprep.mubr.f32.mxu1 %v3823_v14 }
0x19d5   :  { %3953 = vmatmul.mubr.f32.vlgmr.msra.gmra.mxu1 %v3822_v62 }
0x1a95   :  { %v3954_v26 = vpop.f32.mrf.mxu1 }
0x1a96   :  { %v3959_v27 = vadd.f32 %v3954_v26, %v5106_v0  ;;  %v4028_v0 = vld [vmem:[#allocation10 + $0x1258] sm:$0xff] }
0x1a97   :  { %v3956_v7 = vpop.f32.mrf.mxu1  ;;  %4330 = vmatprep.subr.mxu0 %v4028_v0 }
0x1a98   :  { %v5124_v2 = vadd.f32 %v3966_v25, %v3959_v27  ;;  %v3960_v29 = vadd.f32 %v3956_v7, %v5109_v24  ;;  %4331 = vmatpush3.msra.mxu0 %v4012_v39  ;;  %v4026_v24 = vld [vmem:[#allocation10 + $0x1108] sm:$0xff]  ;;  %v4122_v7 = vstv %s4271_s12 }
0x1a99   :  { %4332 = vmatprep.subr.mxu0 %v4027_v1  ;;  %vm4123_vm13 = vcmp.eq.s32.totalorder %v5001_v4, %v4122_v7 }
0x1a9a   :  { %v5127_v8 = vadd.f32 %v3970_v35, %v3960_v29  ;;  %v3976_v31 = vmul.f32 %v5124_v2, %v5124_v2  ;;  %4333 = vmatpush3.msra.mxu0 %v4011_v53 }
0x1a9b   :  { %4334 = vmatprep.subr.mxu0 %v4026_v24 }
0x1a9c   :  { %v3977_v28 = vmul.f32 %v5127_v8, %v5127_v8  ;;  %4335 = vmatpush3.msra.mxu0 %v4010_v40  ;;  %v4675_v40 = vmov 0  }
0x1a9d   :  { %4336 = vmatprep.subr.mxu0 %v4025_v50  ;;  %4452 = vset.pattern.permute.xlu0 %v4675_v40 }
0x1a9e   :  { %v3978_v42 = vadd.f32 %v3977_v28, %v3976_v31  ;;  %4337 = vmatpush3.msra.mxu0 %v4009_v61  ;;  %v4154_v31 = vstv %s4275_s14 }
0x1a9f   :  { %4338 = vmatprep.subr.mxu0 %v4024_v32  ;;  %vm4155_vm1 = vcmp.eq.s32.totalorder %v5001_v4, %v4154_v31 }
0x1aa0   :  { %3979 = vadd.xlane.f32.xlu1 %v3978_v42  ;;  %4339 = vmatpush3.msra.mxu0 %v4008_v3 }
0x1aa1   :  { %4340 = vmatprep.subr.mxu0 %v4023_v41 }
0x1aa2   :  { %4341 = vmatpush3.msra.mxu0 %v4007_v36 }
0x1aa3   :  { %4342 = vmatprep.subr.mxu0 %v4022_v17 }
0x1aa4   :  { %4343 = vmatpush3.msra.mxu0 %v4006_v22 }
0x1aa5   :  { %4344 = vmatprep.subr.mxu0 %v4021_v43 }
0x1aa6   :  { %4345 = vmatpush3.msra.mxu0 %v4005_v46 }
0x1aa7   :  { %4346 = vmatprep.subr.mxu0 %v4020_v34 }
0x1aa8   :  { %4347 = vmatpush3.msra.mxu0 %v4004_v47 }
0x1aa9   :  { %4348 = vmatprep.subr.mxu0 %v4019_v12 }
0x1aaa   :  { %4349 = vmatpush3.msra.mxu0 %v4003_v6 }
0x1aab   :  { %4350 = vmatprep.subr.mxu0 %v4018_v48 }
0x1aac   :  { %4351 = vmatpush3.msra.mxu0 %v4002_v52 }
0x1aad   :  { %4352 = vmatprep.subr.mxu0 %v4017_v51 }
0x1aae   :  { %4353 = vmatpush3.msra.mxu0 %v4001_v54 }
0x1b29   :  { %v3980_v55 = vpop.xlane.xlu1 %3979 }
0x1b2a   :  { %v3981_v56 = vmul.f32 0.00390625, %v3980_v55 }
0x1b2c   :  { %v3982_v9 = vadd.f32 1e-06, %v3981_v56 }
0x1b2e   :  { %4507 = vrsqrt.f32 %v3982_v9 }
0x1b3b   :  { %v4508_v15 = vpop.eup %4507 }
0x1b3c   :  { %v3985_v60 = vmul.f32 %v4508_v15, %v5127_v8  ;;  %v3984_v21 = vmul.f32 %v4508_v15, %v5124_v2  ;;  %v4138_v2 = vstv %s4273_s13 }
0x1b3d   :  { %vm4139_vm15 = vcmp.eq.s32.totalorder %v5001_v4, %v4138_v2 }
0x1b3e   :  { %v3998_v59 = vmul.f32 %v3994_v58, %v3985_v60  ;;  %v3997_v33 = vmul.f32 %v3990_v57, %v3984_v21 }
0x1b40   :  { %v4000_v45 = vmul.f32 0.0625, %v3998_v59  ;;  %v3999_v63 = vmul.f32 0.0625, %v3997_v33 }
0x1b42   :  { %4097 = vmatprep.mubr.f32.mxu0 %v4000_v45 }
0x1b43   :  { %4098 = vmatmul.mubr.f32.vlgmr.msra.gmra.mxu0 %v3999_v63 }
0x1c03   :  { %v4354_v13 = vpop.f32.mrf.mxu0 }
0x1c05   :  { %v4355_v14 = vpop.f32.mrf.mxu0 }
0x1c06   :  { %v4356_v37 = vadd.f32 %v4355_v14, %v4354_v13 }
0x1c08   :  { %4200 = vst [vmem:[%s5160_s7] sm:$0xff] %v4356_v37  ;;  %4103 = vmax.xlane.f32.xlu0 %v4356_v37  ;;  %v4116_v62 = vsel %vm4115_vm5, %v4356_v37, 0.0  ;;  %v4132_v44 = vsel %vm4131_vm7, %v4356_v37, 0.0  ;;  %v4148_v18 = vsel %vm4147_vm9, %v4356_v37, 0.0  ;;  %v4164_v20 = vsel %vm4163_vm11, %v4356_v37, 0.0 }
0x1c09   :  { %v4118_v5 = vsel %vm4117_vm6, %v4116_v62, 0.0  ;;  %v4134_v10 = vsel %vm4133_vm8, %v4132_v44, 0.0  ;;  %v4150_v19 = vsel %vm4149_vm10, %v4148_v18, 0.0  ;;  %v4166_v25 = vsel %vm4165_vm12, %v4164_v20, 0.0 }
0x1c0a   :  { %v4124_v8 = vsel %vm4123_vm13, %v4356_v37, 0.0  ;;  %v4140_v42 = vsel %vm4139_vm15, %v4356_v37, 0.0  ;;  %v4156_v39 = vsel %vm4155_vm1, %v4356_v37, 0.0  ;;  %v4172_v53 = vsel %vm4171_vm3, %v4356_v37, 0.0 }
0x1c0b   :  { %v4126_v28 = vsel %vm4125_vm14, %v4124_v8, 0.0  ;;  %v4142_v0 = vsel %vm4141_vm0, %v4140_v42, 0.0  ;;  %v4158_v1 = vsel %vm4157_vm2, %v4156_v39, 0.0  ;;  %v4174_v24 = vsel %vm4173_vm4, %v4172_v53, 0.0 }
0x1c0c   :  { %4119 = vadd.xlane.f32.xlu0 %v4118_v5  ;;  %vm4178_vm5 = vcmask 1041408   ;;  %vm4180_vm7 = vcmask 1042432   ;;  %vm4182_vm8 = vcmask 1043456   ;;  %vm4184_vm9 = vcmask 1044480  }
0x1c0d   :  { %vm4186_vm10 = vcmask 1045504   ;;  %vm4188_vm11 = vcmask 1046528  }
0x1c10   :  { %4135 = vadd.xlane.f32.xlu0 %v4134_v10 }
0x1c14   :  { %4151 = vadd.xlane.f32.xlu0 %v4150_v19 }
0x1c18   :  { %4167 = vadd.xlane.f32.xlu0 %v4166_v25 }
0x1c91   :  { %v4104_v26 = vpop.xlane.xlu0 %4103 }
0x1c92   :  { %v4105_v27 = vsub.f32 %v4356_v37, %v4104_v26 }
0x1c94   :  { %v4106_v35 = vmul.f32 1.442695, %v4105_v27 }
0x1c95   :  { %v4120_v50 = vpop.xlane.xlu0 %4119 }
0x1c96   :  { %4509 = vpow2.f32 %v4106_v35 }
0x1c99   :  { %v4136_v32 = vpop.xlane.xlu0 %4135 }
0x1c9d   :  { %v4152_v4 = vpop.xlane.xlu0 %4151 }
0x1ca1   :  { %v4168_v12 = vpop.xlane.xlu0 %4167 }
0x1ca3   :  { %v4510_v29 = vpop.eup %4509 }
0x1ca4   :  { %4108 = vadd.xlane.f32.xlu1 %v4510_v29 }
0x1ca8   :  { %4127 = vadd.xlane.f32.xlu1 %v4126_v28 }
0x1cac   :  { %4143 = vadd.xlane.f32.xlu1 %v4142_v0 }
0x1cb0   :  { %4159 = vadd.xlane.f32.xlu1 %v4158_v1 }
0x1cb4   :  { %4175 = vadd.xlane.f32.xlu1 %v4174_v24 }
0x1d2d   :  { %v4109_v61 = vpop.xlane.xlu1 %4108 }
0x1d2e   :  { %4511 = vlog2.f32 %v4109_v61 }
0x1d31   :  { %v4128_v3 = vpop.xlane.xlu1 %4127 }
0x1d32   :  { %v4177_v41 = vsel %vm4117_vm6, %v4120_v50, %v4128_v3  ;;  %vm4191_vm6 = vcmask 7168  }
0x1d33   :  { %v4179_v17 = vsel %vm4178_vm5, %v4177_v41, %v4136_v32 }
0x1d35   :  { %v4144_v36 = vpop.xlane.xlu1 %4143 }
0x1d36   :  { %v4181_v22 = vsel %vm4180_vm7, %v4179_v17, %v4144_v36 }
0x1d37   :  { %v4183_v46 = vsel %vm4182_vm8, %v4181_v22, %v4152_v4 }
0x1d39   :  { %v4160_v43 = vpop.xlane.xlu1 %4159 }
0x1d3a   :  { %v4185_v34 = vsel %vm4184_vm9, %v4183_v46, %v4160_v43 }
0x1d3b   :  { %v4512_v47 = vpop.eup %4511  ;;  %v4187_v52 = vsel %vm4186_vm10, %v4185_v34, %v4168_v12 }
0x1d3c   :  { %v4111_v6 = vmul.f32 0.6931472, %v4512_v47 }
0x1d3d   :  { %v4176_v48 = vpop.xlane.xlu1 %4175 }
0x1d3e   :  { %v4112_v51 = vadd.f32 %v4111_v6, %v4104_v26  ;;  %v4189_v54 = vsel %vm4188_vm11, %v4187_v52, %v4176_v48 }
0x1d40   :  { %v4190_v55 = vsub.f32 %v4112_v51, %v4189_v54 }
0x1d42   :  { %v4192_v56 = vsel %vm4191_vm6, %v4190_v55, 0.0 }
0x1d43   :  { %v4193_v9 = vrot.slane %v4192_v56, 4 }
0x1d45   :  { %v4194_v16 = vadd.f32 %v4193_v9, %v4192_v56 }
0x1d47   :  { %v4195_v57 = vrot.slane %v4194_v16, 2 }
0x1d49   :  { %v4196_v58 = vadd.f32 %v4195_v57, %v4194_v16 }
0x1d4b   :  { %v4197_v15 = vrot.slane %v4196_v58, 1 }
0x1d4d   :  { %v4198_v60 = vadd.f32 %v4197_v15, %v4196_v58 }
0x1d4f   :  { %v4199_v21 = vmul.f32 0.125, %v4198_v60 }
0x1d51   :  { %4203 = vperm.xlu0 %4452, %v4199_v21  }
0x1dcc   :  { %v4204_v59 = vpop.permute.xlu0 %4203 }
0x1dcd   :  { %4206 = vst [vmem:[%s5160_s7 + $0x8] sm:$0xff] %v4204_v59 }
0x1dce   :  { %4211 = vsyncpa [#allocation6], 1 }
0x1dcf   :  { %4212 = vsyncpa [#allocation8], 1 }
0x1dd0   :  { %4213 = vsyncpa [#allocation11], 1 }
0x1dd1   :  { %4214 = vsyncpa [#allocation14], 1 }

</bundles_post_ra>
